<compile_context>
chip_gen: v5e
topology: v5e:2x2
jax: 0.10.0
libtpu: 0.0.40
codegen_flags: <defaults>
</compile_context>

<pallas_src>
import jax
import jax.numpy as jnp
import numpy as np
from jax.experimental import pallas as pl
from jax.experimental.pallas import tpu as pltpu


# --------------------------------------------------------------------------
# Shared per-sample network math.  Used both inside the Pallas kernel (args
# are Refs) and by the bf16-matched jnp reference (args are arrays); only
# `[static_int]` and `[...]` indexing is used so it works for both.
# --------------------------------------------------------------------------
def _forward_one(x, ref_e, layer_ops, head_ops):
    """x: (H0*W0, Cin0) bf16; ref_e: (1, cond_dim) bf16  ->  (1, 1) f32."""
    y = None
    for (g, w, sh) in layer_ops:
        kk = g.shape[0]          # k*k taps
        howo = g.shape[1]        # Ho*Wo of this layer
        cout = w.shape[2]
        acc = jnp.zeros((howo, cout), jnp.float32)
        for t in range(kk):
            # spatial gather of tap t (exact: g is 0/1, picks one input pixel
            # per output pixel, zero where the tap falls in the SAME padding)
            sel = jnp.dot(g[t], x, preferred_element_type=jnp.float32)
            # channel matmul for this tap (BN scale already folded into w)
            acc = acc + jnp.dot(sel.astype(jnp.bfloat16), w[t],
                                preferred_element_type=jnp.float32)
        y = acc + sh[...]                    # conv bias + BN(eval) shift
        y = jnp.where(y > 0, y, 0.2 * y)     # LeakyReLU(0.2)
        x = y.astype(jnp.bfloat16)           # next layer's input (stays in VMEM)

    wfc, bfc, w1, b1, w2, b2 = head_ops
    pooled = jnp.mean(y, axis=0, keepdims=True)                    # AdaptiveAvgPool2d(1)
    out = jnp.dot(pooled.astype(jnp.bfloat16), wfc[...],
                  preferred_element_type=jnp.float32) + bfc[...]   # out_fc
    h = jnp.dot(ref_e, w1[...], preferred_element_type=jnp.float32) + b1[...]
    r = jnp.dot(h.astype(jnp.bfloat16), w2[...],
                preferred_element_type=jnp.float32) + b2[...]      # cond_mlp
    c = jnp.sum(pooled * r, axis=1, keepdims=True)                 # projection
    return out + c


def _make_kernel(num_layers):
    def kernel(*refs):
        x_ref, ref_ref = refs[0], refs[1]
        layer_ops = [tuple(refs[2 + 3 * l: 2 + 3 * l + 3]) for l in range(num_layers)]
        head_ops = tuple(refs[2 + 3 * num_layers: 2 + 3 * num_layers + 6])
        o_ref = refs[-1]
        res = _forward_one(x_ref[0], ref_ref[0], layer_ops, head_ops)   # (1, 1) f32
        # lane-dense full-block store; host slices back to (N, 1)
        o_ref[0] = jnp.broadcast_to(res, o_ref.shape[1:])
    return kernel


def forward_pallas(prep, src_audio_nchw, ref_embedding):
    N, C0, H, W = src_audio_nchw.shape
    x_flat = jnp.transpose(src_audio_nchw, (0, 2, 3, 1)).reshape(N, H * W, C0)
    x_flat = x_flat.astype(jnp.bfloat16)
    ref_b = ref_embedding.reshape(N, 1, -1).astype(jnp.bfloat16)

    operands = [x_flat, ref_b]
    in_specs = [
        pl.BlockSpec((1, H * W, C0), lambda n: (n, 0, 0)),
        pl.BlockSpec((1, 1, ref_b.shape[-1]), lambda n: (n, 0, 0)),
    ]
    # per-layer constants: resident in VMEM across the grid (constant index_map)
    for (g, w, sh) in prep["layers"]:
        operands += [g, w, sh]
        in_specs += [
            pl.BlockSpec(g.shape, lambda n: (0, 0, 0)),
            pl.BlockSpec(w.shape, lambda n: (0, 0, 0)),
            pl.BlockSpec(sh.shape, lambda n: (0, 0)),
        ]
    for p in prep["head"]:
        operands.append(p)
        in_specs.append(pl.BlockSpec(p.shape, lambda n: (0, 0)))

    out = pl.pallas_call(
        _make_kernel(len(prep["layers"])),
        out_shape=jax.ShapeDtypeStruct((N, 8, 128), jnp.float32),
        grid_spec=pltpu.PrefetchScalarGridSpec(
            num_scalar_prefetch=0,
            grid=(N,),                       # parallel over batch -> both v7x TCs busy
            in_specs=in_specs,
            out_specs=pl.BlockSpec((1, 8, 128), lambda n: (n, 0, 0)),
        ),
        compiler_params=pltpu.CompilerParams(
            dimension_semantics=("parallel",),
            vmem_limit_bytes=32 * 1024 * 1024),   # fits v5e/v6e/v7x scoped VMEM
    )(*operands)
    return out[:, 0, :1]


# --------------------------------------------------------------------------
# Host-side constant construction
# --------------------------------------------------------------------------
def make_gather_mats(h_in, w_in, k, s, d):
    """0/1 matrices G[t] of shape (Ho*Wo, Hin*Win): tap-t spatial gather with
    SAME padding folded in (out-of-bounds taps contribute zero rows)."""
    pad_total = d * (k - 1)
    p0 = pad_total // 2
    h_out = (h_in + pad_total - d * (k - 1) - 1) // s + 1
    w_out = (w_in + pad_total - d * (k - 1) - 1) // s + 1
    g = np.zeros((k * k, h_out * w_out, h_in * w_in), np.float32)
    for i in range(k):
        for j in range(k):
            t = i * k + j
            for y in range(h_out):
                h = s * y + d * i - p0
                if h < 0 or h >= h_in:
                    continue
                for x in range(w_out):
                    w = s * x + d * j - p0
                    if 0 <= w < w_in:
                        g[t, y * w_out + x, h * w_in + w] = 1.0
    return g, h_out, w_out


def prepare_operands(params, H, W):
    """Fold BN scale into bf16 per-tap weights, build gather matrices."""
    layers = []
    h, w = H, W
    for lp in params["conv_layers"]:
        k, s, d = lp["k"], lp["s"], lp["d"]
        g_np, ho, wo = make_gather_mats(h, w, k, s, d)
        cout, cin = lp["weight"].shape[0], lp["weight"].shape[1]
        wt = jnp.transpose(lp["weight"], (2, 3, 1, 0)).reshape(k * k, cin, cout)
        wt = wt * lp["eff_scale"].reshape(1, 1, cout)          # fold BN scale
        layers.append((jnp.asarray(g_np, jnp.bfloat16),
                       wt.astype(jnp.bfloat16),
                       lp["eff_shift"].reshape(1, cout).astype(jnp.float32)))
        h, w = ho, wo
    hd = params["head"]
    head = (hd["wfc"].astype(jnp.bfloat16), hd["bfc"].astype(jnp.float32),
            hd["w1"].astype(jnp.bfloat16), hd["b1"].astype(jnp.float32),
            hd["w2"].astype(jnp.bfloat16), hd["b2"].astype(jnp.float32))
    return {"layers": layers, "head": head}


# --------------------------------------------------------------------------
# References
# --------------------------------------------------------------------------
def forward_bf16_reference(prep, src_audio_nchw, ref_embedding):
    """Same folded bf16 math as the kernel, in plain jnp (no Pallas)."""
    N, C0, H, W = src_audio_nchw.shape
    x_flat = jnp.transpose(src_audio_nchw, (0, 2, 3, 1)).reshape(N, H * W, C0)
    x_flat = x_flat.astype(jnp.bfloat16)
    ref_b = ref_embedding.reshape(N, 1, -1).astype(jnp.bfloat16)
    outs = [_forward_one(x_flat[n], ref_b[n], prep["layers"], prep["head"])
            for n in range(N)]
    return jnp.concatenate(outs, axis=0)


def forward_f32_reference(params, src_audio_nchw, ref_embedding):
    """f32 ground truth of the module semantics (conv + BN eval + lrelu + head)."""
    hp = jax.lax.Precision.HIGHEST
    x = jnp.transpose(src_audio_nchw, (0, 2, 3, 1)).astype(jnp.float32)
    for lp in params["conv_layers"]:
        k, s, d = lp["k"], lp["s"], lp["d"]
        pad_total = d * (k - 1)
        p0, p1 = pad_total // 2, pad_total - pad_total // 2
        w_hwio = jnp.transpose(lp["weight"], (2, 3, 1, 0))
        y = jax.lax.conv_general_dilated(
            x, w_hwio, window_strides=(s, s), padding=((p0, p1), (p0, p1)),
            rhs_dilation=(d, d), dimension_numbers=("NHWC", "HWIO", "NHWC"),
            precision=hp)
        y = y * lp["eff_scale"].reshape(1, 1, 1, -1) + lp["eff_shift"].reshape(1, 1, 1, -1)
        x = jnp.where(y > 0, y, 0.2 * y)
    N = x.shape[0]
    pooled = jnp.mean(x.reshape(N, -1, x.shape[-1]), axis=1)
    hd = params["head"]
    out = jnp.dot(pooled, hd["wfc"], precision=hp) + hd["bfc"]
    hh = jnp.dot(ref_embedding, hd["w1"], precision=hp) + hd["b1"]
    r = jnp.dot(hh, hd["w2"], precision=hp) + hd["b2"]
    return out + jnp.sum(pooled * r, axis=1, keepdims=True)


# --------------------------------------------------------------------------
# Parameter building
# --------------------------------------------------------------------------
def spectral_normalize(w, key, n_iter=8, eps=1e-12):
    """PyTorch-style spectral norm of a (out, in) matrix (power iteration)."""
    u = jax.random.normal(key, (w.shape[0],), dtype=jnp.float32)
    u = u / (jnp.linalg.norm(u) + eps)
    v = None
    for _ in range(n_iter):
        v = w.T @ u
        v = v / (jnp.linalg.norm(v) + eps)
        u = w @ v
        u = u / (jnp.linalg.norm(u) + eps)
    sigma = u @ (w @ v)
    return w / sigma


def init_params(key, config):
    eps = 1e-5
    chans = [2] + list(config["channels"])      # module does channels.insert(0, 2)
    keys = iter(jax.random.split(key, 256))

    conv_layers = []
    for i in range(len(config["kernels"])):
        for l in range(config["conv_layer_num"]):
            in_c = chans[i] if l == 0 else chans[i + 1]
            out_c = chans[i + 1]
            k = config["kernels"][i]
            s = config["strides"][i] if l == 0 else 1
            d = config["dilation"][i]
            w = 0.1 * jax.random.normal(next(keys), (out_c, in_c, k, k), jnp.float32)
            b = 0.05 * jax.random.normal(next(keys), (out_c,), jnp.float32)
            gamma = 1.0 + 0.1 * jax.random.normal(next(keys), (out_c,), jnp.float32)
            beta = 0.1 * jax.random.normal(next(keys), (out_c,), jnp.float32)
            mean = 0.1 * jax.random.normal(next(keys), (out_c,), jnp.float32)
            var = 1.0 + 0.1 * jnp.abs(jax.random.normal(next(keys), (out_c,), jnp.float32))
            eff_scale = gamma / jnp.sqrt(var + eps)
            eff_shift = (b - mean) * eff_scale + beta
            conv_layers.append({
                "weight": w, "k": k, "s": s, "d": d,
                "eff_scale": eff_scale.reshape(1, out_c),
                "eff_shift": eff_shift.reshape(1, out_c),
            })

    c_last = chans[-1]
    cond_dim = config["condition_dimension"]
    wfc = 0.1 * jax.random.normal(next(keys), (1, c_last), jnp.float32)
    wfc = spectral_normalize(wfc, next(keys))
    bfc = 0.05 * jax.random.normal(next(keys), (1,), jnp.float32)
    w1 = 0.1 * jax.random.normal(next(keys), (1024, cond_dim), jnp.float32)
    b1 = 0.05 * jax.random.normal(next(keys), (1024,), jnp.float32)
    w2 = 0.1 * jax.random.normal(next(keys), (c_last, 1024), jnp.float32)
    w2 = spectral_normalize(w2, next(keys))
    b2 = 0.05 * jax.random.normal(next(keys), (c_last,), jnp.float32)

    head = {
        "wfc": wfc.T,                  # (c_last, 1)
        "bfc": bfc.reshape(1, 1),
        "w1": w1.T,                    # (cond_dim, 1024)
        "b1": b1.reshape(1, 1024),
        "w2": w2.T,                    # (1024, c_last)
        "b2": b2.reshape(1, c_last),
    }
    return {"conv_layers": conv_layers, "head": head}


# ----------------------------------- main -----------------------------------
if __name__ == "__main__":
    config = {
        "channels": [8, 16],
        "kernels": [3, 3],
        "strides": [2, 2],
        "dilation": [1, 1],
        "conv_layer_num": 2,
        "norm": "batch",
        "activation": "lrelu",
        "condition_dimension": 16,
    }

    key = jax.random.PRNGKey(0)
    k_params, k_x, k_ref = jax.random.split(key, 3)
    params = init_params(k_params, config)

    src_audio = jax.random.normal(k_x, (2, 2, 16, 16), jnp.float32)      # NCHW
    ref_embedding = jax.random.normal(k_ref, (2, config["condition_dimension"]),
                                      jnp.float32)

    prep = prepare_operands(params, src_audio.shape[2], src_audio.shape[3])

    out = jax.block_until_ready(forward_pallas(prep, src_audio, ref_embedding))
    assert out.shape == (2, 1)

    # bf16-matched jnp reference (identical math, no Pallas): tight tolerance
    out_bf16_ref = jax.block_until_ready(
        forward_bf16_reference(prep, src_audio, ref_embedding))
    np.testing.assert_allclose(np.asarray(out), np.asarray(out_bf16_ref),
                               rtol=2e-3, atol=2e-3)

    # f32 ground truth of module semantics: loose tolerance (bf16 MXU operands)
    out_f32_ref = jax.block_until_ready(
        forward_f32_reference(params, src_audio, ref_embedding))
    np.testing.assert_allclose(np.asarray(out), np.asarray(out_f32_ref),
                               rtol=1e-1, atol=1e-1)

    print("KERNEL_OK")
</pallas_src>

<mosaic_0001>
module attributes {stable_mosaic.version = 11 : i64} {
  func.func @kernel(%arg0: i32, %arg1: memref<1x256x2xbf16, #tpu.memory_space<vmem>>, %arg2: memref<1x1x16xbf16, #tpu.memory_space<vmem>>, %arg3: memref<9x64x256xbf16, #tpu.memory_space<vmem>>, %arg4: memref<9x2x8xbf16, #tpu.memory_space<vmem>>, %arg5: memref<1x8xf32, #tpu.memory_space<vmem>>, %arg6: memref<9x64x64xbf16, #tpu.memory_space<vmem>>, %arg7: memref<9x8x8xbf16, #tpu.memory_space<vmem>>, %arg8: memref<1x8xf32, #tpu.memory_space<vmem>>, %arg9: memref<9x16x64xbf16, #tpu.memory_space<vmem>>, %arg10: memref<9x8x16xbf16, #tpu.memory_space<vmem>>, %arg11: memref<1x16xf32, #tpu.memory_space<vmem>>, %arg12: memref<9x16x16xbf16, #tpu.memory_space<vmem>>, %arg13: memref<9x16x16xbf16, #tpu.memory_space<vmem>>, %arg14: memref<1x16xf32, #tpu.memory_space<vmem>>, %arg15: memref<16x1xbf16, #tpu.memory_space<vmem>>, %arg16: memref<1x1xf32, #tpu.memory_space<vmem>>, %arg17: memref<16x1024xbf16, #tpu.memory_space<vmem>>, %arg18: memref<1x1024xf32, #tpu.memory_space<vmem>>, %arg19: memref<1024x16xbf16, #tpu.memory_space<vmem>>, %arg20: memref<1x16xf32, #tpu.memory_space<vmem>>, %arg21: memref<1x8x128xf32, #tpu.memory_space<vmem>>) attributes {dimension_semantics = [#tpu.dimension_semantics<parallel>], iteration_bounds = array<i64: 2>, scalar_prefetch = 0 : i64, scratch_operands = 0 : i64, tpu.core_type = #tpu.core_type<tc>, window_params = [{transform_indices = @transform_0, window_bounds = array<i64: 1, 256, 2>}, {transform_indices = @transform_1, window_bounds = array<i64: 1, 1, 16>}, {pipeline_mode = #tpu.pipeline_mode<synchronous>, transform_indices = @transform_2, window_bounds = array<i64: 9, 64, 256>}, {pipeline_mode = #tpu.pipeline_mode<synchronous>, transform_indices = @transform_3, window_bounds = array<i64: 9, 2, 8>}, {pipeline_mode = #tpu.pipeline_mode<synchronous>, transform_indices = @transform_4, window_bounds = array<i64: 1, 8>}, {pipeline_mode = #tpu.pipeline_mode<synchronous>, transform_indices = @transform_5, window_bounds = array<i64: 9, 64, 64>}, {pipeline_mode = #tpu.pipeline_mode<synchronous>, transform_indices = @transform_6, window_bounds = array<i64: 9, 8, 8>}, {pipeline_mode = #tpu.pipeline_mode<synchronous>, transform_indices = @transform_7, window_bounds = array<i64: 1, 8>}, {pipeline_mode = #tpu.pipeline_mode<synchronous>, transform_indices = @transform_8, window_bounds = array<i64: 9, 16, 64>}, {pipeline_mode = #tpu.pipeline_mode<synchronous>, transform_indices = @transform_9, window_bounds = array<i64: 9, 8, 16>}, {pipeline_mode = #tpu.pipeline_mode<synchronous>, transform_indices = @transform_10, window_bounds = array<i64: 1, 16>}, {pipeline_mode = #tpu.pipeline_mode<synchronous>, transform_indices = @transform_11, window_bounds = array<i64: 9, 16, 16>}, {pipeline_mode = #tpu.pipeline_mode<synchronous>, transform_indices = @transform_12, window_bounds = array<i64: 9, 16, 16>}, {pipeline_mode = #tpu.pipeline_mode<synchronous>, transform_indices = @transform_13, window_bounds = array<i64: 1, 16>}, {pipeline_mode = #tpu.pipeline_mode<synchronous>, transform_indices = @transform_14, window_bounds = array<i64: 16, 1>}, {pipeline_mode = #tpu.pipeline_mode<synchronous>, transform_indices = @transform_15, window_bounds = array<i64: 1, 1>}, {pipeline_mode = #tpu.pipeline_mode<synchronous>, transform_indices = @transform_16, window_bounds = array<i64: 16, 1024>}, {pipeline_mode = #tpu.pipeline_mode<synchronous>, transform_indices = @transform_17, window_bounds = array<i64: 1, 1024>}, {pipeline_mode = #tpu.pipeline_mode<synchronous>, transform_indices = @transform_18, window_bounds = array<i64: 1024, 16>}, {pipeline_mode = #tpu.pipeline_mode<synchronous>, transform_indices = @transform_19, window_bounds = array<i64: 1, 16>}, {transform_indices = @transform_20, window_bounds = array<i64: 1, 8, 128>}]} {
    %c0 = arith.constant 0 : index
    %c0_0 = arith.constant 0 : index
    %c0_1 = arith.constant 0 : index
    %0 = vector.load %arg1[%c0, %c0_0, %c0_1] : memref<1x256x2xbf16, #tpu.memory_space<vmem>>, vector<1x256x2xbf16>
    %1 = vector.shape_cast %0 : vector<1x256x2xbf16> to vector<256x2xbf16>
    %c0_2 = arith.constant 0 : index
    %c0_3 = arith.constant 0 : index
    %c0_4 = arith.constant 0 : index
    %2 = vector.load %arg2[%c0_2, %c0_3, %c0_4] : memref<1x1x16xbf16, #tpu.memory_space<vmem>>, vector<1x1x16xbf16>
    %3 = vector.shape_cast %2 : vector<1x1x16xbf16> to vector<1x16xbf16>
    %cst = arith.constant 0.000000e+00 : f32
    %4 = vector.broadcast %cst : f32 to vector<64x8xf32>
    %c0_5 = arith.constant 0 : index
    %c0_6 = arith.constant 0 : index
    %c0_7 = arith.constant 0 : index
    %5 = vector.load %arg3[%c0_5, %c0_6, %c0_7] : memref<9x64x256xbf16, #tpu.memory_space<vmem>>, vector<1x64x256xbf16>
    %6 = vector.shape_cast %5 : vector<1x64x256xbf16> to vector<64x256xbf16>
    %cst_8 = arith.constant dense<0.000000e+00> : vector<64x2xf32>
    %7 = tpu.matmul %6, %1, %cst_8 {dimension_numbers = #tpu.dot_dimension_numbers<[1], [0], [0], [1], [0, 0, 1, 1], [], []>} : vector<64x256xbf16>, vector<256x2xbf16>, vector<64x2xf32> -> vector<64x2xf32>
    %8 = arith.truncf %7 : vector<64x2xf32> to vector<64x2xbf16>
    %c0_9 = arith.constant 0 : index
    %c0_10 = arith.constant 0 : index
    %c0_11 = arith.constant 0 : index
    %9 = vector.load %arg4[%c0_9, %c0_10, %c0_11] : memref<9x2x8xbf16, #tpu.memory_space<vmem>>, vector<1x2x8xbf16>
    %10 = vector.shape_cast %9 : vector<1x2x8xbf16> to vector<2x8xbf16>
    %cst_12 = arith.constant dense<0.000000e+00> : vector<64x8xf32>
    %11 = tpu.matmul %8, %10, %cst_12 {dimension_numbers = #tpu.dot_dimension_numbers<[1], [0], [0], [1], [0, 0, 1, 1], [], []>} : vector<64x2xbf16>, vector<2x8xbf16>, vector<64x8xf32> -> vector<64x8xf32>
    %12 = arith.addf %4, %11 : vector<64x8xf32>
    %c1 = arith.constant 1 : index
    %c0_13 = arith.constant 0 : index
    %c0_14 = arith.constant 0 : index
    %13 = vector.load %arg3[%c1, %c0_13, %c0_14] : memref<9x64x256xbf16, #tpu.memory_space<vmem>>, vector<1x64x256xbf16>
    %14 = vector.shape_cast %13 : vector<1x64x256xbf16> to vector<64x256xbf16>
    %cst_15 = arith.constant dense<0.000000e+00> : vector<64x2xf32>
    %15 = tpu.matmul %14, %1, %cst_15 {dimension_numbers = #tpu.dot_dimension_numbers<[1], [0], [0], [1], [0, 0, 1, 1], [], []>} : vector<64x256xbf16>, vector<256x2xbf16>, vector<64x2xf32> -> vector<64x2xf32>
    %16 = arith.truncf %15 : vector<64x2xf32> to vector<64x2xbf16>
    %c1_16 = arith.constant 1 : index
    %c0_17 = arith.constant 0 : index
    %c0_18 = arith.constant 0 : index
    %17 = vector.load %arg4[%c1_16, %c0_17, %c0_18] : memref<9x2x8xbf16, #tpu.memory_space<vmem>>, vector<1x2x8xbf16>
    %18 = vector.shape_cast %17 : vector<1x2x8xbf16> to vector<2x8xbf16>
    %cst_19 = arith.constant dense<0.000000e+00> : vector<64x8xf32>
    %19 = tpu.matmul %16, %18, %cst_19 {dimension_numbers = #tpu.dot_dimension_numbers<[1], [0], [0], [1], [0, 0, 1, 1], [], []>} : vector<64x2xbf16>, vector<2x8xbf16>, vector<64x8xf32> -> vector<64x8xf32>
    %20 = arith.addf %12, %19 : vector<64x8xf32>
    %c2 = arith.constant 2 : index
    %c0_20 = arith.constant 0 : index
    %c0_21 = arith.constant 0 : index
    %21 = vector.load %arg3[%c2, %c0_20, %c0_21] : memref<9x64x256xbf16, #tpu.memory_space<vmem>>, vector<1x64x256xbf16>
    %22 = vector.shape_cast %21 : vector<1x64x256xbf16> to vector<64x256xbf16>
    %cst_22 = arith.constant dense<0.000000e+00> : vector<64x2xf32>
    %23 = tpu.matmul %22, %1, %cst_22 {dimension_numbers = #tpu.dot_dimension_numbers<[1], [0], [0], [1], [0, 0, 1, 1], [], []>} : vector<64x256xbf16>, vector<256x2xbf16>, vector<64x2xf32> -> vector<64x2xf32>
    %24 = arith.truncf %23 : vector<64x2xf32> to vector<64x2xbf16>
    %c2_23 = arith.constant 2 : index
    %c0_24 = arith.constant 0 : index
    %c0_25 = arith.constant 0 : index
    %25 = vector.load %arg4[%c2_23, %c0_24, %c0_25] : memref<9x2x8xbf16, #tpu.memory_space<vmem>>, vector<1x2x8xbf16>
    %26 = vector.shape_cast %25 : vector<1x2x8xbf16> to vector<2x8xbf16>
    %cst_26 = arith.constant dense<0.000000e+00> : vector<64x8xf32>
    %27 = tpu.matmul %24, %26, %cst_26 {dimension_numbers = #tpu.dot_dimension_numbers<[1], [0], [0], [1], [0, 0, 1, 1], [], []>} : vector<64x2xbf16>, vector<2x8xbf16>, vector<64x8xf32> -> vector<64x8xf32>
    %28 = arith.addf %20, %27 : vector<64x8xf32>
    %c3 = arith.constant 3 : index
    %c0_27 = arith.constant 0 : index
    %c0_28 = arith.constant 0 : index
    %29 = vector.load %arg3[%c3, %c0_27, %c0_28] : memref<9x64x256xbf16, #tpu.memory_space<vmem>>, vector<1x64x256xbf16>
    %30 = vector.shape_cast %29 : vector<1x64x256xbf16> to vector<64x256xbf16>
    %cst_29 = arith.constant dense<0.000000e+00> : vector<64x2xf32>
    %31 = tpu.matmul %30, %1, %cst_29 {dimension_numbers = #tpu.dot_dimension_numbers<[1], [0], [0], [1], [0, 0, 1, 1], [], []>} : vector<64x256xbf16>, vector<256x2xbf16>, vector<64x2xf32> -> vector<64x2xf32>
    %32 = arith.truncf %31 : vector<64x2xf32> to vector<64x2xbf16>
    %c3_30 = arith.constant 3 : index
    %c0_31 = arith.constant 0 : index
    %c0_32 = arith.constant 0 : index
    %33 = vector.load %arg4[%c3_30, %c0_31, %c0_32] : memref<9x2x8xbf16, #tpu.memory_space<vmem>>, vector<1x2x8xbf16>
    %34 = vector.shape_cast %33 : vector<1x2x8xbf16> to vector<2x8xbf16>
    %cst_33 = arith.constant dense<0.000000e+00> : vector<64x8xf32>
    %35 = tpu.matmul %32, %34, %cst_33 {dimension_numbers = #tpu.dot_dimension_numbers<[1], [0], [0], [1], [0, 0, 1, 1], [], []>} : vector<64x2xbf16>, vector<2x8xbf16>, vector<64x8xf32> -> vector<64x8xf32>
    %36 = arith.addf %28, %35 : vector<64x8xf32>
    %c4 = arith.constant 4 : index
    %c0_34 = arith.constant 0 : index
    %c0_35 = arith.constant 0 : index
    %37 = vector.load %arg3[%c4, %c0_34, %c0_35] : memref<9x64x256xbf16, #tpu.memory_space<vmem>>, vector<1x64x256xbf16>
    %38 = vector.shape_cast %37 : vector<1x64x256xbf16> to vector<64x256xbf16>
    %cst_36 = arith.constant dense<0.000000e+00> : vector<64x2xf32>
    %39 = tpu.matmul %38, %1, %cst_36 {dimension_numbers = #tpu.dot_dimension_numbers<[1], [0], [0], [1], [0, 0, 1, 1], [], []>} : vector<64x256xbf16>, vector<256x2xbf16>, vector<64x2xf32> -> vector<64x2xf32>
    %40 = arith.truncf %39 : vector<64x2xf32> to vector<64x2xbf16>
    %c4_37 = arith.constant 4 : index
    %c0_38 = arith.constant 0 : index
    %c0_39 = arith.constant 0 : index
    %41 = vector.load %arg4[%c4_37, %c0_38, %c0_39] : memref<9x2x8xbf16, #tpu.memory_space<vmem>>, vector<1x2x8xbf16>
    %42 = vector.shape_cast %41 : vector<1x2x8xbf16> to vector<2x8xbf16>
    %cst_40 = arith.constant dense<0.000000e+00> : vector<64x8xf32>
    %43 = tpu.matmul %40, %42, %cst_40 {dimension_numbers = #tpu.dot_dimension_numbers<[1], [0], [0], [1], [0, 0, 1, 1], [], []>} : vector<64x2xbf16>, vector<2x8xbf16>, vector<64x8xf32> -> vector<64x8xf32>
    %44 = arith.addf %36, %43 : vector<64x8xf32>
    %c5 = arith.constant 5 : index
    %c0_41 = arith.constant 0 : index
    %c0_42 = arith.constant 0 : index
    %45 = vector.load %arg3[%c5, %c0_41, %c0_42] : memref<9x64x256xbf16, #tpu.memory_space<vmem>>, vector<1x64x256xbf16>
    %46 = vector.shape_cast %45 : vector<1x64x256xbf16> to vector<64x256xbf16>
    %cst_43 = arith.constant dense<0.000000e+00> : vector<64x2xf32>
    %47 = tpu.matmul %46, %1, %cst_43 {dimension_numbers = #tpu.dot_dimension_numbers<[1], [0], [0], [1], [0, 0, 1, 1], [], []>} : vector<64x256xbf16>, vector<256x2xbf16>, vector<64x2xf32> -> vector<64x2xf32>
    %48 = arith.truncf %47 : vector<64x2xf32> to vector<64x2xbf16>
    %c5_44 = arith.constant 5 : index
    %c0_45 = arith.constant 0 : index
    %c0_46 = arith.constant 0 : index
    %49 = vector.load %arg4[%c5_44, %c0_45, %c0_46] : memref<9x2x8xbf16, #tpu.memory_space<vmem>>, vector<1x2x8xbf16>
    %50 = vector.shape_cast %49 : vector<1x2x8xbf16> to vector<2x8xbf16>
    %cst_47 = arith.constant dense<0.000000e+00> : vector<64x8xf32>
    %51 = tpu.matmul %48, %50, %cst_47 {dimension_numbers = #tpu.dot_dimension_numbers<[1], [0], [0], [1], [0, 0, 1, 1], [], []>} : vector<64x2xbf16>, vector<2x8xbf16>, vector<64x8xf32> -> vector<64x8xf32>
    %52 = arith.addf %44, %51 : vector<64x8xf32>
    %c6 = arith.constant 6 : index
    %c0_48 = arith.constant 0 : index
    %c0_49 = arith.constant 0 : index
    %53 = vector.load %arg3[%c6, %c0_48, %c0_49] : memref<9x64x256xbf16, #tpu.memory_space<vmem>>, vector<1x64x256xbf16>
    %54 = vector.shape_cast %53 : vector<1x64x256xbf16> to vector<64x256xbf16>
    %cst_50 = arith.constant dense<0.000000e+00> : vector<64x2xf32>
    %55 = tpu.matmul %54, %1, %cst_50 {dimension_numbers = #tpu.dot_dimension_numbers<[1], [0], [0], [1], [0, 0, 1, 1], [], []>} : vector<64x256xbf16>, vector<256x2xbf16>, vector<64x2xf32> -> vector<64x2xf32>
    %56 = arith.truncf %55 : vector<64x2xf32> to vector<64x2xbf16>
    %c6_51 = arith.constant 6 : index
    %c0_52 = arith.constant 0 : index
    %c0_53 = arith.constant 0 : index
    %57 = vector.load %arg4[%c6_51, %c0_52, %c0_53] : memref<9x2x8xbf16, #tpu.memory_space<vmem>>, vector<1x2x8xbf16>
    %58 = vector.shape_cast %57 : vector<1x2x8xbf16> to vector<2x8xbf16>
    %cst_54 = arith.constant dense<0.000000e+00> : vector<64x8xf32>
    %59 = tpu.matmul %56, %58, %cst_54 {dimension_numbers = #tpu.dot_dimension_numbers<[1], [0], [0], [1], [0, 0, 1, 1], [], []>} : vector<64x2xbf16>, vector<2x8xbf16>, vector<64x8xf32> -> vector<64x8xf32>
    %60 = arith.addf %52, %59 : vector<64x8xf32>
    %c7 = arith.constant 7 : index
    %c0_55 = arith.constant 0 : index
    %c0_56 = arith.constant 0 : index
    %61 = vector.load %arg3[%c7, %c0_55, %c0_56] : memref<9x64x256xbf16, #tpu.memory_space<vmem>>, vector<1x64x256xbf16>
    %62 = vector.shape_cast %61 : vector<1x64x256xbf16> to vector<64x256xbf16>
    %cst_57 = arith.constant dense<0.000000e+00> : vector<64x2xf32>
    %63 = tpu.matmul %62, %1, %cst_57 {dimension_numbers = #tpu.dot_dimension_numbers<[1], [0], [0], [1], [0, 0, 1, 1], [], []>} : vector<64x256xbf16>, vector<256x2xbf16>, vector<64x2xf32> -> vector<64x2xf32>
    %64 = arith.truncf %63 : vector<64x2xf32> to vector<64x2xbf16>
    %c7_58 = arith.constant 7 : index
    %c0_59 = arith.constant 0 : index
    %c0_60 = arith.constant 0 : index
    %65 = vector.load %arg4[%c7_58, %c0_59, %c0_60] : memref<9x2x8xbf16, #tpu.memory_space<vmem>>, vector<1x2x8xbf16>
    %66 = vector.shape_cast %65 : vector<1x2x8xbf16> to vector<2x8xbf16>
    %cst_61 = arith.constant dense<0.000000e+00> : vector<64x8xf32>
    %67 = tpu.matmul %64, %66, %cst_61 {dimension_numbers = #tpu.dot_dimension_numbers<[1], [0], [0], [1], [0, 0, 1, 1], [], []>} : vector<64x2xbf16>, vector<2x8xbf16>, vector<64x8xf32> -> vector<64x8xf32>
    %68 = arith.addf %60, %67 : vector<64x8xf32>
    %c8 = arith.constant 8 : index
    %c0_62 = arith.constant 0 : index
    %c0_63 = arith.constant 0 : index
    %69 = vector.load %arg3[%c8, %c0_62, %c0_63] : memref<9x64x256xbf16, #tpu.memory_space<vmem>>, vector<1x64x256xbf16>
    %70 = vector.shape_cast %69 : vector<1x64x256xbf16> to vector<64x256xbf16>
    %cst_64 = arith.constant dense<0.000000e+00> : vector<64x2xf32>
    %71 = tpu.matmul %70, %1, %cst_64 {dimension_numbers = #tpu.dot_dimension_numbers<[1], [0], [0], [1], [0, 0, 1, 1], [], []>} : vector<64x256xbf16>, vector<256x2xbf16>, vector<64x2xf32> -> vector<64x2xf32>
    %72 = arith.truncf %71 : vector<64x2xf32> to vector<64x2xbf16>
    %c8_65 = arith.constant 8 : index
    %c0_66 = arith.constant 0 : index
    %c0_67 = arith.constant 0 : index
    %73 = vector.load %arg4[%c8_65, %c0_66, %c0_67] : memref<9x2x8xbf16, #tpu.memory_space<vmem>>, vector<1x2x8xbf16>
    %74 = vector.shape_cast %73 : vector<1x2x8xbf16> to vector<2x8xbf16>
    %cst_68 = arith.constant dense<0.000000e+00> : vector<64x8xf32>
    %75 = tpu.matmul %72, %74, %cst_68 {dimension_numbers = #tpu.dot_dimension_numbers<[1], [0], [0], [1], [0, 0, 1, 1], [], []>} : vector<64x2xbf16>, vector<2x8xbf16>, vector<64x8xf32> -> vector<64x8xf32>
    %76 = arith.addf %68, %75 : vector<64x8xf32>
    %c0_69 = arith.constant 0 : index
    %c0_70 = arith.constant 0 : index
    %77 = vector.load %arg5[%c0_69, %c0_70] : memref<1x8xf32, #tpu.memory_space<vmem>>, vector<1x8xf32>
    %78 = vector.broadcast %77 : vector<1x8xf32> to vector<64x8xf32>
    %79 = arith.addf %76, %78 : vector<64x8xf32>
    %cst_71 = arith.constant 0.000000e+00 : f32
    %80 = vector.broadcast %cst_71 : f32 to vector<64x8xf32>
    %81 = arith.cmpf ogt, %79, %80 : vector<64x8xf32>
    %cst_72 = arith.constant 2.000000e-01 : f32
    %82 = vector.broadcast %cst_72 : f32 to vector<64x8xf32>
    %83 = arith.mulf %82, %79 : vector<64x8xf32>
    %84 = arith.select %81, %79, %83 : vector<64x8xi1>, vector<64x8xf32>
    %85 = arith.truncf %84 : vector<64x8xf32> to vector<64x8xbf16>
    %cst_73 = arith.constant 0.000000e+00 : f32
    %86 = vector.broadcast %cst_73 : f32 to vector<64x8xf32>
    %c0_74 = arith.constant 0 : index
    %c0_75 = arith.constant 0 : index
    %c0_76 = arith.constant 0 : index
    %87 = vector.load %arg6[%c0_74, %c0_75, %c0_76] : memref<9x64x64xbf16, #tpu.memory_space<vmem>>, vector<1x64x64xbf16>
    %88 = vector.shape_cast %87 : vector<1x64x64xbf16> to vector<64x64xbf16>
    %cst_77 = arith.constant dense<0.000000e+00> : vector<64x8xf32>
    %89 = tpu.matmul %88, %85, %cst_77 {dimension_numbers = #tpu.dot_dimension_numbers<[1], [0], [0], [1], [0, 0, 1, 1], [], []>} : vector<64x64xbf16>, vector<64x8xbf16>, vector<64x8xf32> -> vector<64x8xf32>
    %90 = arith.truncf %89 : vector<64x8xf32> to vector<64x8xbf16>
    %c0_78 = arith.constant 0 : index
    %c0_79 = arith.constant 0 : index
    %c0_80 = arith.constant 0 : index
    %91 = vector.load %arg7[%c0_78, %c0_79, %c0_80] : memref<9x8x8xbf16, #tpu.memory_space<vmem>>, vector<1x8x8xbf16>
    %92 = vector.shape_cast %91 : vector<1x8x8xbf16> to vector<8x8xbf16>
    %cst_81 = arith.constant dense<0.000000e+00> : vector<64x8xf32>
    %93 = tpu.matmul %90, %92, %cst_81 {dimension_numbers = #tpu.dot_dimension_numbers<[1], [0], [0], [1], [0, 0, 1, 1], [], []>} : vector<64x8xbf16>, vector<8x8xbf16>, vector<64x8xf32> -> vector<64x8xf32>
    %94 = arith.addf %86, %93 : vector<64x8xf32>
    %c1_82 = arith.constant 1 : index
    %c0_83 = arith.constant 0 : index
    %c0_84 = arith.constant 0 : index
    %95 = vector.load %arg6[%c1_82, %c0_83, %c0_84] : memref<9x64x64xbf16, #tpu.memory_space<vmem>>, vector<1x64x64xbf16>
    %96 = vector.shape_cast %95 : vector<1x64x64xbf16> to vector<64x64xbf16>
    %cst_85 = arith.constant dense<0.000000e+00> : vector<64x8xf32>
    %97 = tpu.matmul %96, %85, %cst_85 {dimension_numbers = #tpu.dot_dimension_numbers<[1], [0], [0], [1], [0, 0, 1, 1], [], []>} : vector<64x64xbf16>, vector<64x8xbf16>, vector<64x8xf32> -> vector<64x8xf32>
    %98 = arith.truncf %97 : vector<64x8xf32> to vector<64x8xbf16>
    %c1_86 = arith.constant 1 : index
    %c0_87 = arith.constant 0 : index
    %c0_88 = arith.constant 0 : index
    %99 = vector.load %arg7[%c1_86, %c0_87, %c0_88] : memref<9x8x8xbf16, #tpu.memory_space<vmem>>, vector<1x8x8xbf16>
    %100 = vector.shape_cast %99 : vector<1x8x8xbf16> to vector<8x8xbf16>
    %cst_89 = arith.constant dense<0.000000e+00> : vector<64x8xf32>
    %101 = tpu.matmul %98, %100, %cst_89 {dimension_numbers = #tpu.dot_dimension_numbers<[1], [0], [0], [1], [0, 0, 1, 1], [], []>} : vector<64x8xbf16>, vector<8x8xbf16>, vector<64x8xf32> -> vector<64x8xf32>
    %102 = arith.addf %94, %101 : vector<64x8xf32>
    %c2_90 = arith.constant 2 : index
    %c0_91 = arith.constant 0 : index
    %c0_92 = arith.constant 0 : index
    %103 = vector.load %arg6[%c2_90, %c0_91, %c0_92] : memref<9x64x64xbf16, #tpu.memory_space<vmem>>, vector<1x64x64xbf16>
    %104 = vector.shape_cast %103 : vector<1x64x64xbf16> to vector<64x64xbf16>
    %cst_93 = arith.constant dense<0.000000e+00> : vector<64x8xf32>
    %105 = tpu.matmul %104, %85, %cst_93 {dimension_numbers = #tpu.dot_dimension_numbers<[1], [0], [0], [1], [0, 0, 1, 1], [], []>} : vector<64x64xbf16>, vector<64x8xbf16>, vector<64x8xf32> -> vector<64x8xf32>
    %106 = arith.truncf %105 : vector<64x8xf32> to vector<64x8xbf16>
    %c2_94 = arith.constant 2 : index
    %c0_95 = arith.constant 0 : index
    %c0_96 = arith.constant 0 : index
    %107 = vector.load %arg7[%c2_94, %c0_95, %c0_96] : memref<9x8x8xbf16, #tpu.memory_space<vmem>>, vector<1x8x8xbf16>
    %108 = vector.shape_cast %107 : vector<1x8x8xbf16> to vector<8x8xbf16>
    %cst_97 = arith.constant dense<0.000000e+00> : vector<64x8xf32>
    %109 = tpu.matmul %106, %108, %cst_97 {dimension_numbers = #tpu.dot_dimension_numbers<[1], [0], [0], [1], [0, 0, 1, 1], [], []>} : vector<64x8xbf16>, vector<8x8xbf16>, vector<64x8xf32> -> vector<64x8xf32>
    %110 = arith.addf %102, %109 : vector<64x8xf32>
    %c3_98 = arith.constant 3 : index
    %c0_99 = arith.constant 0 : index
    %c0_100 = arith.constant 0 : index
    %111 = vector.load %arg6[%c3_98, %c0_99, %c0_100] : memref<9x64x64xbf16, #tpu.memory_space<vmem>>, vector<1x64x64xbf16>
    %112 = vector.shape_cast %111 : vector<1x64x64xbf16> to vector<64x64xbf16>
    %cst_101 = arith.constant dense<0.000000e+00> : vector<64x8xf32>
    %113 = tpu.matmul %112, %85, %cst_101 {dimension_numbers = #tpu.dot_dimension_numbers<[1], [0], [0], [1], [0, 0, 1, 1], [], []>} : vector<64x64xbf16>, vector<64x8xbf16>, vector<64x8xf32> -> vector<64x8xf32>
    %114 = arith.truncf %113 : vector<64x8xf32> to vector<64x8xbf16>
    %c3_102 = arith.constant 3 : index
    %c0_103 = arith.constant 0 : index
    %c0_104 = arith.constant 0 : index
    %115 = vector.load %arg7[%c3_102, %c0_103, %c0_104] : memref<9x8x8xbf16, #tpu.memory_space<vmem>>, vector<1x8x8xbf16>
    %116 = vector.shape_cast %115 : vector<1x8x8xbf16> to vector<8x8xbf16>
    %cst_105 = arith.constant dense<0.000000e+00> : vector<64x8xf32>
    %117 = tpu.matmul %114, %116, %cst_105 {dimension_numbers = #tpu.dot_dimension_numbers<[1], [0], [0], [1], [0, 0, 1, 1], [], []>} : vector<64x8xbf16>, vector<8x8xbf16>, vector<64x8xf32> -> vector<64x8xf32>
    %118 = arith.addf %110, %117 : vector<64x8xf32>
    %c4_106 = arith.constant 4 : index
    %c0_107 = arith.constant 0 : index
    %c0_108 = arith.constant 0 : index
    %119 = vector.load %arg6[%c4_106, %c0_107, %c0_108] : memref<9x64x64xbf16, #tpu.memory_space<vmem>>, vector<1x64x64xbf16>
    %120 = vector.shape_cast %119 : vector<1x64x64xbf16> to vector<64x64xbf16>
    %cst_109 = arith.constant dense<0.000000e+00> : vector<64x8xf32>
    %121 = tpu.matmul %120, %85, %cst_109 {dimension_numbers = #tpu.dot_dimension_numbers<[1], [0], [0], [1], [0, 0, 1, 1], [], []>} : vector<64x64xbf16>, vector<64x8xbf16>, vector<64x8xf32> -> vector<64x8xf32>
    %122 = arith.truncf %121 : vector<64x8xf32> to vector<64x8xbf16>
    %c4_110 = arith.constant 4 : index
    %c0_111 = arith.constant 0 : index
    %c0_112 = arith.constant 0 : index
    %123 = vector.load %arg7[%c4_110, %c0_111, %c0_112] : memref<9x8x8xbf16, #tpu.memory_space<vmem>>, vector<1x8x8xbf16>
    %124 = vector.shape_cast %123 : vector<1x8x8xbf16> to vector<8x8xbf16>
    %cst_113 = arith.constant dense<0.000000e+00> : vector<64x8xf32>
    %125 = tpu.matmul %122, %124, %cst_113 {dimension_numbers = #tpu.dot_dimension_numbers<[1], [0], [0], [1], [0, 0, 1, 1], [], []>} : vector<64x8xbf16>, vector<8x8xbf16>, vector<64x8xf32> -> vector<64x8xf32>
    %126 = arith.addf %118, %125 : vector<64x8xf32>
    %c5_114 = arith.constant 5 : index
    %c0_115 = arith.constant 0 : index
    %c0_116 = arith.constant 0 : index
    %127 = vector.load %arg6[%c5_114, %c0_115, %c0_116] : memref<9x64x64xbf16, #tpu.memory_space<vmem>>, vector<1x64x64xbf16>
    %128 = vector.shape_cast %127 : vector<1x64x64xbf16> to vector<64x64xbf16>
    %cst_117 = arith.constant dense<0.000000e+00> : vector<64x8xf32>
    %129 = tpu.matmul %128, %85, %cst_117 {dimension_numbers = #tpu.dot_dimension_numbers<[1], [0], [0], [1], [0, 0, 1, 1], [], []>} : vector<64x64xbf16>, vector<64x8xbf16>, vector<64x8xf32> -> vector<64x8xf32>
    %130 = arith.truncf %129 : vector<64x8xf32> to vector<64x8xbf16>
    %c5_118 = arith.constant 5 : index
    %c0_119 = arith.constant 0 : index
    %c0_120 = arith.constant 0 : index
    %131 = vector.load %arg7[%c5_118, %c0_119, %c0_120] : memref<9x8x8xbf16, #tpu.memory_space<vmem>>, vector<1x8x8xbf16>
    %132 = vector.shape_cast %131 : vector<1x8x8xbf16> to vector<8x8xbf16>
    %cst_121 = arith.constant dense<0.000000e+00> : vector<64x8xf32>
    %133 = tpu.matmul %130, %132, %cst_121 {dimension_numbers = #tpu.dot_dimension_numbers<[1], [0], [0], [1], [0, 0, 1, 1], [], []>} : vector<64x8xbf16>, vector<8x8xbf16>, vector<64x8xf32> -> vector<64x8xf32>
    %134 = arith.addf %126, %133 : vector<64x8xf32>
    %c6_122 = arith.constant 6 : index
    %c0_123 = arith.constant 0 : index
    %c0_124 = arith.constant 0 : index
    %135 = vector.load %arg6[%c6_122, %c0_123, %c0_124] : memref<9x64x64xbf16, #tpu.memory_space<vmem>>, vector<1x64x64xbf16>
    %136 = vector.shape_cast %135 : vector<1x64x64xbf16> to vector<64x64xbf16>
    %cst_125 = arith.constant dense<0.000000e+00> : vector<64x8xf32>
    %137 = tpu.matmul %136, %85, %cst_125 {dimension_numbers = #tpu.dot_dimension_numbers<[1], [0], [0], [1], [0, 0, 1, 1], [], []>} : vector<64x64xbf16>, vector<64x8xbf16>, vector<64x8xf32> -> vector<64x8xf32>
    %138 = arith.truncf %137 : vector<64x8xf32> to vector<64x8xbf16>
    %c6_126 = arith.constant 6 : index
    %c0_127 = arith.constant 0 : index
    %c0_128 = arith.constant 0 : index
    %139 = vector.load %arg7[%c6_126, %c0_127, %c0_128] : memref<9x8x8xbf16, #tpu.memory_space<vmem>>, vector<1x8x8xbf16>
    %140 = vector.shape_cast %139 : vector<1x8x8xbf16> to vector<8x8xbf16>
    %cst_129 = arith.constant dense<0.000000e+00> : vector<64x8xf32>
    %141 = tpu.matmul %138, %140, %cst_129 {dimension_numbers = #tpu.dot_dimension_numbers<[1], [0], [0], [1], [0, 0, 1, 1], [], []>} : vector<64x8xbf16>, vector<8x8xbf16>, vector<64x8xf32> -> vector<64x8xf32>
    %142 = arith.addf %134, %141 : vector<64x8xf32>
    %c7_130 = arith.constant 7 : index
    %c0_131 = arith.constant 0 : index
    %c0_132 = arith.constant 0 : index
    %143 = vector.load %arg6[%c7_130, %c0_131, %c0_132] : memref<9x64x64xbf16, #tpu.memory_space<vmem>>, vector<1x64x64xbf16>
    %144 = vector.shape_cast %143 : vector<1x64x64xbf16> to vector<64x64xbf16>
    %cst_133 = arith.constant dense<0.000000e+00> : vector<64x8xf32>
    %145 = tpu.matmul %144, %85, %cst_133 {dimension_numbers = #tpu.dot_dimension_numbers<[1], [0], [0], [1], [0, 0, 1, 1], [], []>} : vector<64x64xbf16>, vector<64x8xbf16>, vector<64x8xf32> -> vector<64x8xf32>
    %146 = arith.truncf %145 : vector<64x8xf32> to vector<64x8xbf16>
    %c7_134 = arith.constant 7 : index
    %c0_135 = arith.constant 0 : index
    %c0_136 = arith.constant 0 : index
    %147 = vector.load %arg7[%c7_134, %c0_135, %c0_136] : memref<9x8x8xbf16, #tpu.memory_space<vmem>>, vector<1x8x8xbf16>
    %148 = vector.shape_cast %147 : vector<1x8x8xbf16> to vector<8x8xbf16>
    %cst_137 = arith.constant dense<0.000000e+00> : vector<64x8xf32>
    %149 = tpu.matmul %146, %148, %cst_137 {dimension_numbers = #tpu.dot_dimension_numbers<[1], [0], [0], [1], [0, 0, 1, 1], [], []>} : vector<64x8xbf16>, vector<8x8xbf16>, vector<64x8xf32> -> vector<64x8xf32>
    %150 = arith.addf %142, %149 : vector<64x8xf32>
    %c8_138 = arith.constant 8 : index
    %c0_139 = arith.constant 0 : index
    %c0_140 = arith.constant 0 : index
    %151 = vector.load %arg6[%c8_138, %c0_139, %c0_140] : memref<9x64x64xbf16, #tpu.memory_space<vmem>>, vector<1x64x64xbf16>
    %152 = vector.shape_cast %151 : vector<1x64x64xbf16> to vector<64x64xbf16>
    %cst_141 = arith.constant dense<0.000000e+00> : vector<64x8xf32>
    %153 = tpu.matmul %152, %85, %cst_141 {dimension_numbers = #tpu.dot_dimension_numbers<[1], [0], [0], [1], [0, 0, 1, 1], [], []>} : vector<64x64xbf16>, vector<64x8xbf16>, vector<64x8xf32> -> vector<64x8xf32>
    %154 = arith.truncf %153 : vector<64x8xf32> to vector<64x8xbf16>
    %c8_142 = arith.constant 8 : index
    %c0_143 = arith.constant 0 : index
    %c0_144 = arith.constant 0 : index
    %155 = vector.load %arg7[%c8_142, %c0_143, %c0_144] : memref<9x8x8xbf16, #tpu.memory_space<vmem>>, vector<1x8x8xbf16>
    %156 = vector.shape_cast %155 : vector<1x8x8xbf16> to vector<8x8xbf16>
    %cst_145 = arith.constant dense<0.000000e+00> : vector<64x8xf32>
    %157 = tpu.matmul %154, %156, %cst_145 {dimension_numbers = #tpu.dot_dimension_numbers<[1], [0], [0], [1], [0, 0, 1, 1], [], []>} : vector<64x8xbf16>, vector<8x8xbf16>, vector<64x8xf32> -> vector<64x8xf32>
    %158 = arith.addf %150, %157 : vector<64x8xf32>
    %c0_146 = arith.constant 0 : index
    %c0_147 = arith.constant 0 : index
    %159 = vector.load %arg8[%c0_146, %c0_147] : memref<1x8xf32, #tpu.memory_space<vmem>>, vector<1x8xf32>
    %160 = vector.broadcast %159 : vector<1x8xf32> to vector<64x8xf32>
    %161 = arith.addf %158, %160 : vector<64x8xf32>
    %cst_148 = arith.constant 0.000000e+00 : f32
    %162 = vector.broadcast %cst_148 : f32 to vector<64x8xf32>
    %163 = arith.cmpf ogt, %161, %162 : vector<64x8xf32>
    %cst_149 = arith.constant 2.000000e-01 : f32
    %164 = vector.broadcast %cst_149 : f32 to vector<64x8xf32>
    %165 = arith.mulf %164, %161 : vector<64x8xf32>
    %166 = arith.select %163, %161, %165 : vector<64x8xi1>, vector<64x8xf32>
    %167 = arith.truncf %166 : vector<64x8xf32> to vector<64x8xbf16>
    %cst_150 = arith.constant 0.000000e+00 : f32
    %168 = vector.broadcast %cst_150 : f32 to vector<16x16xf32>
    %c0_151 = arith.constant 0 : index
    %c0_152 = arith.constant 0 : index
    %c0_153 = arith.constant 0 : index
    %169 = vector.load %arg9[%c0_151, %c0_152, %c0_153] : memref<9x16x64xbf16, #tpu.memory_space<vmem>>, vector<1x16x64xbf16>
    %170 = vector.shape_cast %169 : vector<1x16x64xbf16> to vector<16x64xbf16>
    %cst_154 = arith.constant dense<0.000000e+00> : vector<16x8xf32>
    %171 = tpu.matmul %170, %167, %cst_154 {dimension_numbers = #tpu.dot_dimension_numbers<[1], [0], [0], [1], [0, 0, 1, 1], [], []>} : vector<16x64xbf16>, vector<64x8xbf16>, vector<16x8xf32> -> vector<16x8xf32>
    %172 = arith.truncf %171 : vector<16x8xf32> to vector<16x8xbf16>
    %c0_155 = arith.constant 0 : index
    %c0_156 = arith.constant 0 : index
    %c0_157 = arith.constant 0 : index
    %173 = vector.load %arg10[%c0_155, %c0_156, %c0_157] : memref<9x8x16xbf16, #tpu.memory_space<vmem>>, vector<1x8x16xbf16>
    %174 = vector.shape_cast %173 : vector<1x8x16xbf16> to vector<8x16xbf16>
    %cst_158 = arith.constant dense<0.000000e+00> : vector<16x16xf32>
    %175 = tpu.matmul %172, %174, %cst_158 {dimension_numbers = #tpu.dot_dimension_numbers<[1], [0], [0], [1], [0, 0, 1, 1], [], []>} : vector<16x8xbf16>, vector<8x16xbf16>, vector<16x16xf32> -> vector<16x16xf32>
    %176 = arith.addf %168, %175 : vector<16x16xf32>
    %c1_159 = arith.constant 1 : index
    %c0_160 = arith.constant 0 : index
    %c0_161 = arith.constant 0 : index
    %177 = vector.load %arg9[%c1_159, %c0_160, %c0_161] : memref<9x16x64xbf16, #tpu.memory_space<vmem>>, vector<1x16x64xbf16>
    %178 = vector.shape_cast %177 : vector<1x16x64xbf16> to vector<16x64xbf16>
    %cst_162 = arith.constant dense<0.000000e+00> : vector<16x8xf32>
    %179 = tpu.matmul %178, %167, %cst_162 {dimension_numbers = #tpu.dot_dimension_numbers<[1], [0], [0], [1], [0, 0, 1, 1], [], []>} : vector<16x64xbf16>, vector<64x8xbf16>, vector<16x8xf32> -> vector<16x8xf32>
    %180 = arith.truncf %179 : vector<16x8xf32> to vector<16x8xbf16>
    %c1_163 = arith.constant 1 : index
    %c0_164 = arith.constant 0 : index
    %c0_165 = arith.constant 0 : index
    %181 = vector.load %arg10[%c1_163, %c0_164, %c0_165] : memref<9x8x16xbf16, #tpu.memory_space<vmem>>, vector<1x8x16xbf16>
    %182 = vector.shape_cast %181 : vector<1x8x16xbf16> to vector<8x16xbf16>
    %cst_166 = arith.constant dense<0.000000e+00> : vector<16x16xf32>
    %183 = tpu.matmul %180, %182, %cst_166 {dimension_numbers = #tpu.dot_dimension_numbers<[1], [0], [0], [1], [0, 0, 1, 1], [], []>} : vector<16x8xbf16>, vector<8x16xbf16>, vector<16x16xf32> -> vector<16x16xf32>
    %184 = arith.addf %176, %183 : vector<16x16xf32>
    %c2_167 = arith.constant 2 : index
    %c0_168 = arith.constant 0 : index
    %c0_169 = arith.constant 0 : index
    %185 = vector.load %arg9[%c2_167, %c0_168, %c0_169] : memref<9x16x64xbf16, #tpu.memory_space<vmem>>, vector<1x16x64xbf16>
    %186 = vector.shape_cast %185 : vector<1x16x64xbf16> to vector<16x64xbf16>
    %cst_170 = arith.constant dense<0.000000e+00> : vector<16x8xf32>
    %187 = tpu.matmul %186, %167, %cst_170 {dimension_numbers = #tpu.dot_dimension_numbers<[1], [0], [0], [1], [0, 0, 1, 1], [], []>} : vector<16x64xbf16>, vector<64x8xbf16>, vector<16x8xf32> -> vector<16x8xf32>
    %188 = arith.truncf %187 : vector<16x8xf32> to vector<16x8xbf16>
    %c2_171 = arith.constant 2 : index
    %c0_172 = arith.constant 0 : index
    %c0_173 = arith.constant 0 : index
    %189 = vector.load %arg10[%c2_171, %c0_172, %c0_173] : memref<9x8x16xbf16, #tpu.memory_space<vmem>>, vector<1x8x16xbf16>
    %190 = vector.shape_cast %189 : vector<1x8x16xbf16> to vector<8x16xbf16>
    %cst_174 = arith.constant dense<0.000000e+00> : vector<16x16xf32>
    %191 = tpu.matmul %188, %190, %cst_174 {dimension_numbers = #tpu.dot_dimension_numbers<[1], [0], [0], [1], [0, 0, 1, 1], [], []>} : vector<16x8xbf16>, vector<8x16xbf16>, vector<16x16xf32> -> vector<16x16xf32>
    %192 = arith.addf %184, %191 : vector<16x16xf32>
    %c3_175 = arith.constant 3 : index
    %c0_176 = arith.constant 0 : index
    %c0_177 = arith.constant 0 : index
    %193 = vector.load %arg9[%c3_175, %c0_176, %c0_177] : memref<9x16x64xbf16, #tpu.memory_space<vmem>>, vector<1x16x64xbf16>
    %194 = vector.shape_cast %193 : vector<1x16x64xbf16> to vector<16x64xbf16>
    %cst_178 = arith.constant dense<0.000000e+00> : vector<16x8xf32>
    %195 = tpu.matmul %194, %167, %cst_178 {dimension_numbers = #tpu.dot_dimension_numbers<[1], [0], [0], [1], [0, 0, 1, 1], [], []>} : vector<16x64xbf16>, vector<64x8xbf16>, vector<16x8xf32> -> vector<16x8xf32>
    %196 = arith.truncf %195 : vector<16x8xf32> to vector<16x8xbf16>
    %c3_179 = arith.constant 3 : index
    %c0_180 = arith.constant 0 : index
    %c0_181 = arith.constant 0 : index
    %197 = vector.load %arg10[%c3_179, %c0_180, %c0_181] : memref<9x8x16xbf16, #tpu.memory_space<vmem>>, vector<1x8x16xbf16>
    %198 = vector.shape_cast %197 : vector<1x8x16xbf16> to vector<8x16xbf16>
    %cst_182 = arith.constant dense<0.000000e+00> : vector<16x16xf32>
    %199 = tpu.matmul %196, %198, %cst_182 {dimension_numbers = #tpu.dot_dimension_numbers<[1], [0], [0], [1], [0, 0, 1, 1], [], []>} : vector<16x8xbf16>, vector<8x16xbf16>, vector<16x16xf32> -> vector<16x16xf32>
    %200 = arith.addf %192, %199 : vector<16x16xf32>
    %c4_183 = arith.constant 4 : index
    %c0_184 = arith.constant 0 : index
    %c0_185 = arith.constant 0 : index
    %201 = vector.load %arg9[%c4_183, %c0_184, %c0_185] : memref<9x16x64xbf16, #tpu.memory_space<vmem>>, vector<1x16x64xbf16>
    %202 = vector.shape_cast %201 : vector<1x16x64xbf16> to vector<16x64xbf16>
    %cst_186 = arith.constant dense<0.000000e+00> : vector<16x8xf32>
    %203 = tpu.matmul %202, %167, %cst_186 {dimension_numbers = #tpu.dot_dimension_numbers<[1], [0], [0], [1], [0, 0, 1, 1], [], []>} : vector<16x64xbf16>, vector<64x8xbf16>, vector<16x8xf32> -> vector<16x8xf32>
    %204 = arith.truncf %203 : vector<16x8xf32> to vector<16x8xbf16>
    %c4_187 = arith.constant 4 : index
    %c0_188 = arith.constant 0 : index
    %c0_189 = arith.constant 0 : index
    %205 = vector.load %arg10[%c4_187, %c0_188, %c0_189] : memref<9x8x16xbf16, #tpu.memory_space<vmem>>, vector<1x8x16xbf16>
    %206 = vector.shape_cast %205 : vector<1x8x16xbf16> to vector<8x16xbf16>
    %cst_190 = arith.constant dense<0.000000e+00> : vector<16x16xf32>
    %207 = tpu.matmul %204, %206, %cst_190 {dimension_numbers = #tpu.dot_dimension_numbers<[1], [0], [0], [1], [0, 0, 1, 1], [], []>} : vector<16x8xbf16>, vector<8x16xbf16>, vector<16x16xf32> -> vector<16x16xf32>
    %208 = arith.addf %200, %207 : vector<16x16xf32>
    %c5_191 = arith.constant 5 : index
    %c0_192 = arith.constant 0 : index
    %c0_193 = arith.constant 0 : index
    %209 = vector.load %arg9[%c5_191, %c0_192, %c0_193] : memref<9x16x64xbf16, #tpu.memory_space<vmem>>, vector<1x16x64xbf16>
    %210 = vector.shape_cast %209 : vector<1x16x64xbf16> to vector<16x64xbf16>
    %cst_194 = arith.constant dense<0.000000e+00> : vector<16x8xf32>
    %211 = tpu.matmul %210, %167, %cst_194 {dimension_numbers = #tpu.dot_dimension_numbers<[1], [0], [0], [1], [0, 0, 1, 1], [], []>} : vector<16x64xbf16>, vector<64x8xbf16>, vector<16x8xf32> -> vector<16x8xf32>
    %212 = arith.truncf %211 : vector<16x8xf32> to vector<16x8xbf16>
    %c5_195 = arith.constant 5 : index
    %c0_196 = arith.constant 0 : index
    %c0_197 = arith.constant 0 : index
    %213 = vector.load %arg10[%c5_195, %c0_196, %c0_197] : memref<9x8x16xbf16, #tpu.memory_space<vmem>>, vector<1x8x16xbf16>
    %214 = vector.shape_cast %213 : vector<1x8x16xbf16> to vector<8x16xbf16>
    %cst_198 = arith.constant dense<0.000000e+00> : vector<16x16xf32>
    %215 = tpu.matmul %212, %214, %cst_198 {dimension_numbers = #tpu.dot_dimension_numbers<[1], [0], [0], [1], [0, 0, 1, 1], [], []>} : vector<16x8xbf16>, vector<8x16xbf16>, vector<16x16xf32> -> vector<16x16xf32>
    %216 = arith.addf %208, %215 : vector<16x16xf32>
    %c6_199 = arith.constant 6 : index
    %c0_200 = arith.constant 0 : index
    %c0_201 = arith.constant 0 : index
    %217 = vector.load %arg9[%c6_199, %c0_200, %c0_201] : memref<9x16x64xbf16, #tpu.memory_space<vmem>>, vector<1x16x64xbf16>
    %218 = vector.shape_cast %217 : vector<1x16x64xbf16> to vector<16x64xbf16>
    %cst_202 = arith.constant dense<0.000000e+00> : vector<16x8xf32>
    %219 = tpu.matmul %218, %167, %cst_202 {dimension_numbers = #tpu.dot_dimension_numbers<[1], [0], [0], [1], [0, 0, 1, 1], [], []>} : vector<16x64xbf16>, vector<64x8xbf16>, vector<16x8xf32> -> vector<16x8xf32>
    %220 = arith.truncf %219 : vector<16x8xf32> to vector<16x8xbf16>
    %c6_203 = arith.constant 6 : index
    %c0_204 = arith.constant 0 : index
    %c0_205 = arith.constant 0 : index
    %221 = vector.load %arg10[%c6_203, %c0_204, %c0_205] : memref<9x8x16xbf16, #tpu.memory_space<vmem>>, vector<1x8x16xbf16>
    %222 = vector.shape_cast %221 : vector<1x8x16xbf16> to vector<8x16xbf16>
    %cst_206 = arith.constant dense<0.000000e+00> : vector<16x16xf32>
    %223 = tpu.matmul %220, %222, %cst_206 {dimension_numbers = #tpu.dot_dimension_numbers<[1], [0], [0], [1], [0, 0, 1, 1], [], []>} : vector<16x8xbf16>, vector<8x16xbf16>, vector<16x16xf32> -> vector<16x16xf32>
    %224 = arith.addf %216, %223 : vector<16x16xf32>
    %c7_207 = arith.constant 7 : index
    %c0_208 = arith.constant 0 : index
    %c0_209 = arith.constant 0 : index
    %225 = vector.load %arg9[%c7_207, %c0_208, %c0_209] : memref<9x16x64xbf16, #tpu.memory_space<vmem>>, vector<1x16x64xbf16>
    %226 = vector.shape_cast %225 : vector<1x16x64xbf16> to vector<16x64xbf16>
    %cst_210 = arith.constant dense<0.000000e+00> : vector<16x8xf32>
    %227 = tpu.matmul %226, %167, %cst_210 {dimension_numbers = #tpu.dot_dimension_numbers<[1], [0], [0], [1], [0, 0, 1, 1], [], []>} : vector<16x64xbf16>, vector<64x8xbf16>, vector<16x8xf32> -> vector<16x8xf32>
    %228 = arith.truncf %227 : vector<16x8xf32> to vector<16x8xbf16>
    %c7_211 = arith.constant 7 : index
    %c0_212 = arith.constant 0 : index
    %c0_213 = arith.constant 0 : index
    %229 = vector.load %arg10[%c7_211, %c0_212, %c0_213] : memref<9x8x16xbf16, #tpu.memory_space<vmem>>, vector<1x8x16xbf16>
    %230 = vector.shape_cast %229 : vector<1x8x16xbf16> to vector<8x16xbf16>
    %cst_214 = arith.constant dense<0.000000e+00> : vector<16x16xf32>
    %231 = tpu.matmul %228, %230, %cst_214 {dimension_numbers = #tpu.dot_dimension_numbers<[1], [0], [0], [1], [0, 0, 1, 1], [], []>} : vector<16x8xbf16>, vector<8x16xbf16>, vector<16x16xf32> -> vector<16x16xf32>
    %232 = arith.addf %224, %231 : vector<16x16xf32>
    %c8_215 = arith.constant 8 : index
    %c0_216 = arith.constant 0 : index
    %c0_217 = arith.constant 0 : index
    %233 = vector.load %arg9[%c8_215, %c0_216, %c0_217] : memref<9x16x64xbf16, #tpu.memory_space<vmem>>, vector<1x16x64xbf16>
    %234 = vector.shape_cast %233 : vector<1x16x64xbf16> to vector<16x64xbf16>
    %cst_218 = arith.constant dense<0.000000e+00> : vector<16x8xf32>
    %235 = tpu.matmul %234, %167, %cst_218 {dimension_numbers = #tpu.dot_dimension_numbers<[1], [0], [0], [1], [0, 0, 1, 1], [], []>} : vector<16x64xbf16>, vector<64x8xbf16>, vector<16x8xf32> -> vector<16x8xf32>
    %236 = arith.truncf %235 : vector<16x8xf32> to vector<16x8xbf16>
    %c8_219 = arith.constant 8 : index
    %c0_220 = arith.constant 0 : index
    %c0_221 = arith.constant 0 : index
    %237 = vector.load %arg10[%c8_219, %c0_220, %c0_221] : memref<9x8x16xbf16, #tpu.memory_space<vmem>>, vector<1x8x16xbf16>
    %238 = vector.shape_cast %237 : vector<1x8x16xbf16> to vector<8x16xbf16>
    %cst_222 = arith.constant dense<0.000000e+00> : vector<16x16xf32>
    %239 = tpu.matmul %236, %238, %cst_222 {dimension_numbers = #tpu.dot_dimension_numbers<[1], [0], [0], [1], [0, 0, 1, 1], [], []>} : vector<16x8xbf16>, vector<8x16xbf16>, vector<16x16xf32> -> vector<16x16xf32>
    %240 = arith.addf %232, %239 : vector<16x16xf32>
    %c0_223 = arith.constant 0 : index
    %c0_224 = arith.constant 0 : index
    %241 = vector.load %arg11[%c0_223, %c0_224] : memref<1x16xf32, #tpu.memory_space<vmem>>, vector<1x16xf32>
    %242 = vector.broadcast %241 : vector<1x16xf32> to vector<16x16xf32>
    %243 = arith.addf %240, %242 : vector<16x16xf32>
    %cst_225 = arith.constant 0.000000e+00 : f32
    %244 = vector.broadcast %cst_225 : f32 to vector<16x16xf32>
    %245 = arith.cmpf ogt, %243, %244 : vector<16x16xf32>
    %cst_226 = arith.constant 2.000000e-01 : f32
    %246 = vector.broadcast %cst_226 : f32 to vector<16x16xf32>
    %247 = arith.mulf %246, %243 : vector<16x16xf32>
    %248 = arith.select %245, %243, %247 : vector<16x16xi1>, vector<16x16xf32>
    %249 = arith.truncf %248 : vector<16x16xf32> to vector<16x16xbf16>
    %cst_227 = arith.constant 0.000000e+00 : f32
    %250 = vector.broadcast %cst_227 : f32 to vector<16x16xf32>
    %c0_228 = arith.constant 0 : index
    %c0_229 = arith.constant 0 : index
    %c0_230 = arith.constant 0 : index
    %251 = vector.load %arg12[%c0_228, %c0_229, %c0_230] : memref<9x16x16xbf16, #tpu.memory_space<vmem>>, vector<1x16x16xbf16>
    %252 = vector.shape_cast %251 : vector<1x16x16xbf16> to vector<16x16xbf16>
    %cst_231 = arith.constant dense<0.000000e+00> : vector<16x16xf32>
    %253 = tpu.matmul %252, %249, %cst_231 {dimension_numbers = #tpu.dot_dimension_numbers<[1], [0], [0], [1], [0, 0, 1, 1], [], []>} : vector<16x16xbf16>, vector<16x16xbf16>, vector<16x16xf32> -> vector<16x16xf32>
    %254 = arith.truncf %253 : vector<16x16xf32> to vector<16x16xbf16>
    %c0_232 = arith.constant 0 : index
    %c0_233 = arith.constant 0 : index
    %c0_234 = arith.constant 0 : index
    %255 = vector.load %arg13[%c0_232, %c0_233, %c0_234] : memref<9x16x16xbf16, #tpu.memory_space<vmem>>, vector<1x16x16xbf16>
    %256 = vector.shape_cast %255 : vector<1x16x16xbf16> to vector<16x16xbf16>
    %cst_235 = arith.constant dense<0.000000e+00> : vector<16x16xf32>
    %257 = tpu.matmul %254, %256, %cst_235 {dimension_numbers = #tpu.dot_dimension_numbers<[1], [0], [0], [1], [0, 0, 1, 1], [], []>} : vector<16x16xbf16>, vector<16x16xbf16>, vector<16x16xf32> -> vector<16x16xf32>
    %258 = arith.addf %250, %257 : vector<16x16xf32>
    %c1_236 = arith.constant 1 : index
    %c0_237 = arith.constant 0 : index
    %c0_238 = arith.constant 0 : index
    %259 = vector.load %arg12[%c1_236, %c0_237, %c0_238] : memref<9x16x16xbf16, #tpu.memory_space<vmem>>, vector<1x16x16xbf16>
    %260 = vector.shape_cast %259 : vector<1x16x16xbf16> to vector<16x16xbf16>
    %cst_239 = arith.constant dense<0.000000e+00> : vector<16x16xf32>
    %261 = tpu.matmul %260, %249, %cst_239 {dimension_numbers = #tpu.dot_dimension_numbers<[1], [0], [0], [1], [0, 0, 1, 1], [], []>} : vector<16x16xbf16>, vector<16x16xbf16>, vector<16x16xf32> -> vector<16x16xf32>
    %262 = arith.truncf %261 : vector<16x16xf32> to vector<16x16xbf16>
    %c1_240 = arith.constant 1 : index
    %c0_241 = arith.constant 0 : index
    %c0_242 = arith.constant 0 : index
    %263 = vector.load %arg13[%c1_240, %c0_241, %c0_242] : memref<9x16x16xbf16, #tpu.memory_space<vmem>>, vector<1x16x16xbf16>
    %264 = vector.shape_cast %263 : vector<1x16x16xbf16> to vector<16x16xbf16>
    %cst_243 = arith.constant dense<0.000000e+00> : vector<16x16xf32>
    %265 = tpu.matmul %262, %264, %cst_243 {dimension_numbers = #tpu.dot_dimension_numbers<[1], [0], [0], [1], [0, 0, 1, 1], [], []>} : vector<16x16xbf16>, vector<16x16xbf16>, vector<16x16xf32> -> vector<16x16xf32>
    %266 = arith.addf %258, %265 : vector<16x16xf32>
    %c2_244 = arith.constant 2 : index
    %c0_245 = arith.constant 0 : index
    %c0_246 = arith.constant 0 : index
    %267 = vector.load %arg12[%c2_244, %c0_245, %c0_246] : memref<9x16x16xbf16, #tpu.memory_space<vmem>>, vector<1x16x16xbf16>
    %268 = vector.shape_cast %267 : vector<1x16x16xbf16> to vector<16x16xbf16>
    %cst_247 = arith.constant dense<0.000000e+00> : vector<16x16xf32>
    %269 = tpu.matmul %268, %249, %cst_247 {dimension_numbers = #tpu.dot_dimension_numbers<[1], [0], [0], [1], [0, 0, 1, 1], [], []>} : vector<16x16xbf16>, vector<16x16xbf16>, vector<16x16xf32> -> vector<16x16xf32>
    %270 = arith.truncf %269 : vector<16x16xf32> to vector<16x16xbf16>
    %c2_248 = arith.constant 2 : index
    %c0_249 = arith.constant 0 : index
    %c0_250 = arith.constant 0 : index
    %271 = vector.load %arg13[%c2_248, %c0_249, %c0_250] : memref<9x16x16xbf16, #tpu.memory_space<vmem>>, vector<1x16x16xbf16>
    %272 = vector.shape_cast %271 : vector<1x16x16xbf16> to vector<16x16xbf16>
    %cst_251 = arith.constant dense<0.000000e+00> : vector<16x16xf32>
    %273 = tpu.matmul %270, %272, %cst_251 {dimension_numbers = #tpu.dot_dimension_numbers<[1], [0], [0], [1], [0, 0, 1, 1], [], []>} : vector<16x16xbf16>, vector<16x16xbf16>, vector<16x16xf32> -> vector<16x16xf32>
    %274 = arith.addf %266, %273 : vector<16x16xf32>
    %c3_252 = arith.constant 3 : index
    %c0_253 = arith.constant 0 : index
    %c0_254 = arith.constant 0 : index
    %275 = vector.load %arg12[%c3_252, %c0_253, %c0_254] : memref<9x16x16xbf16, #tpu.memory_space<vmem>>, vector<1x16x16xbf16>
    %276 = vector.shape_cast %275 : vector<1x16x16xbf16> to vector<16x16xbf16>
    %cst_255 = arith.constant dense<0.000000e+00> : vector<16x16xf32>
    %277 = tpu.matmul %276, %249, %cst_255 {dimension_numbers = #tpu.dot_dimension_numbers<[1], [0], [0], [1], [0, 0, 1, 1], [], []>} : vector<16x16xbf16>, vector<16x16xbf16>, vector<16x16xf32> -> vector<16x16xf32>
    %278 = arith.truncf %277 : vector<16x16xf32> to vector<16x16xbf16>
    %c3_256 = arith.constant 3 : index
    %c0_257 = arith.constant 0 : index
    %c0_258 = arith.constant 0 : index
    %279 = vector.load %arg13[%c3_256, %c0_257, %c0_258] : memref<9x16x16xbf16, #tpu.memory_space<vmem>>, vector<1x16x16xbf16>
    %280 = vector.shape_cast %279 : vector<1x16x16xbf16> to vector<16x16xbf16>
    %cst_259 = arith.constant dense<0.000000e+00> : vector<16x16xf32>
    %281 = tpu.matmul %278, %280, %cst_259 {dimension_numbers = #tpu.dot_dimension_numbers<[1], [0], [0], [1], [0, 0, 1, 1], [], []>} : vector<16x16xbf16>, vector<16x16xbf16>, vector<16x16xf32> -> vector<16x16xf32>
    %282 = arith.addf %274, %281 : vector<16x16xf32>
    %c4_260 = arith.constant 4 : index
    %c0_261 = arith.constant 0 : index
    %c0_262 = arith.constant 0 : index
    %283 = vector.load %arg12[%c4_260, %c0_261, %c0_262] : memref<9x16x16xbf16, #tpu.memory_space<vmem>>, vector<1x16x16xbf16>
    %284 = vector.shape_cast %283 : vector<1x16x16xbf16> to vector<16x16xbf16>
    %cst_263 = arith.constant dense<0.000000e+00> : vector<16x16xf32>
    %285 = tpu.matmul %284, %249, %cst_263 {dimension_numbers = #tpu.dot_dimension_numbers<[1], [0], [0], [1], [0, 0, 1, 1], [], []>} : vector<16x16xbf16>, vector<16x16xbf16>, vector<16x16xf32> -> vector<16x16xf32>
    %286 = arith.truncf %285 : vector<16x16xf32> to vector<16x16xbf16>
    %c4_264 = arith.constant 4 : index
    %c0_265 = arith.constant 0 : index
    %c0_266 = arith.constant 0 : index
    %287 = vector.load %arg13[%c4_264, %c0_265, %c0_266] : memref<9x16x16xbf16, #tpu.memory_space<vmem>>, vector<1x16x16xbf16>
    %288 = vector.shape_cast %287 : vector<1x16x16xbf16> to vector<16x16xbf16>
    %cst_267 = arith.constant dense<0.000000e+00> : vector<16x16xf32>
    %289 = tpu.matmul %286, %288, %cst_267 {dimension_numbers = #tpu.dot_dimension_numbers<[1], [0], [0], [1], [0, 0, 1, 1], [], []>} : vector<16x16xbf16>, vector<16x16xbf16>, vector<16x16xf32> -> vector<16x16xf32>
    %290 = arith.addf %282, %289 : vector<16x16xf32>
    %c5_268 = arith.constant 5 : index
    %c0_269 = arith.constant 0 : index
    %c0_270 = arith.constant 0 : index
    %291 = vector.load %arg12[%c5_268, %c0_269, %c0_270] : memref<9x16x16xbf16, #tpu.memory_space<vmem>>, vector<1x16x16xbf16>
    %292 = vector.shape_cast %291 : vector<1x16x16xbf16> to vector<16x16xbf16>
    %cst_271 = arith.constant dense<0.000000e+00> : vector<16x16xf32>
    %293 = tpu.matmul %292, %249, %cst_271 {dimension_numbers = #tpu.dot_dimension_numbers<[1], [0], [0], [1], [0, 0, 1, 1], [], []>} : vector<16x16xbf16>, vector<16x16xbf16>, vector<16x16xf32> -> vector<16x16xf32>
    %294 = arith.truncf %293 : vector<16x16xf32> to vector<16x16xbf16>
    %c5_272 = arith.constant 5 : index
    %c0_273 = arith.constant 0 : index
    %c0_274 = arith.constant 0 : index
    %295 = vector.load %arg13[%c5_272, %c0_273, %c0_274] : memref<9x16x16xbf16, #tpu.memory_space<vmem>>, vector<1x16x16xbf16>
    %296 = vector.shape_cast %295 : vector<1x16x16xbf16> to vector<16x16xbf16>
    %cst_275 = arith.constant dense<0.000000e+00> : vector<16x16xf32>
    %297 = tpu.matmul %294, %296, %cst_275 {dimension_numbers = #tpu.dot_dimension_numbers<[1], [0], [0], [1], [0, 0, 1, 1], [], []>} : vector<16x16xbf16>, vector<16x16xbf16>, vector<16x16xf32> -> vector<16x16xf32>
    %298 = arith.addf %290, %297 : vector<16x16xf32>
    %c6_276 = arith.constant 6 : index
    %c0_277 = arith.constant 0 : index
    %c0_278 = arith.constant 0 : index
    %299 = vector.load %arg12[%c6_276, %c0_277, %c0_278] : memref<9x16x16xbf16, #tpu.memory_space<vmem>>, vector<1x16x16xbf16>
    %300 = vector.shape_cast %299 : vector<1x16x16xbf16> to vector<16x16xbf16>
    %cst_279 = arith.constant dense<0.000000e+00> : vector<16x16xf32>
    %301 = tpu.matmul %300, %249, %cst_279 {dimension_numbers = #tpu.dot_dimension_numbers<[1], [0], [0], [1], [0, 0, 1, 1], [], []>} : vector<16x16xbf16>, vector<16x16xbf16>, vector<16x16xf32> -> vector<16x16xf32>
    %302 = arith.truncf %301 : vector<16x16xf32> to vector<16x16xbf16>
    %c6_280 = arith.constant 6 : index
    %c0_281 = arith.constant 0 : index
    %c0_282 = arith.constant 0 : index
    %303 = vector.load %arg13[%c6_280, %c0_281, %c0_282] : memref<9x16x16xbf16, #tpu.memory_space<vmem>>, vector<1x16x16xbf16>
    %304 = vector.shape_cast %303 : vector<1x16x16xbf16> to vector<16x16xbf16>
    %cst_283 = arith.constant dense<0.000000e+00> : vector<16x16xf32>
    %305 = tpu.matmul %302, %304, %cst_283 {dimension_numbers = #tpu.dot_dimension_numbers<[1], [0], [0], [1], [0, 0, 1, 1], [], []>} : vector<16x16xbf16>, vector<16x16xbf16>, vector<16x16xf32> -> vector<16x16xf32>
    %306 = arith.addf %298, %305 : vector<16x16xf32>
    %c7_284 = arith.constant 7 : index
    %c0_285 = arith.constant 0 : index
    %c0_286 = arith.constant 0 : index
    %307 = vector.load %arg12[%c7_284, %c0_285, %c0_286] : memref<9x16x16xbf16, #tpu.memory_space<vmem>>, vector<1x16x16xbf16>
    %308 = vector.shape_cast %307 : vector<1x16x16xbf16> to vector<16x16xbf16>
    %cst_287 = arith.constant dense<0.000000e+00> : vector<16x16xf32>
    %309 = tpu.matmul %308, %249, %cst_287 {dimension_numbers = #tpu.dot_dimension_numbers<[1], [0], [0], [1], [0, 0, 1, 1], [], []>} : vector<16x16xbf16>, vector<16x16xbf16>, vector<16x16xf32> -> vector<16x16xf32>
    %310 = arith.truncf %309 : vector<16x16xf32> to vector<16x16xbf16>
    %c7_288 = arith.constant 7 : index
    %c0_289 = arith.constant 0 : index
    %c0_290 = arith.constant 0 : index
    %311 = vector.load %arg13[%c7_288, %c0_289, %c0_290] : memref<9x16x16xbf16, #tpu.memory_space<vmem>>, vector<1x16x16xbf16>
    %312 = vector.shape_cast %311 : vector<1x16x16xbf16> to vector<16x16xbf16>
    %cst_291 = arith.constant dense<0.000000e+00> : vector<16x16xf32>
    %313 = tpu.matmul %310, %312, %cst_291 {dimension_numbers = #tpu.dot_dimension_numbers<[1], [0], [0], [1], [0, 0, 1, 1], [], []>} : vector<16x16xbf16>, vector<16x16xbf16>, vector<16x16xf32> -> vector<16x16xf32>
    %314 = arith.addf %306, %313 : vector<16x16xf32>
    %c8_292 = arith.constant 8 : index
    %c0_293 = arith.constant 0 : index
    %c0_294 = arith.constant 0 : index
    %315 = vector.load %arg12[%c8_292, %c0_293, %c0_294] : memref<9x16x16xbf16, #tpu.memory_space<vmem>>, vector<1x16x16xbf16>
    %316 = vector.shape_cast %315 : vector<1x16x16xbf16> to vector<16x16xbf16>
    %cst_295 = arith.constant dense<0.000000e+00> : vector<16x16xf32>
    %317 = tpu.matmul %316, %249, %cst_295 {dimension_numbers = #tpu.dot_dimension_numbers<[1], [0], [0], [1], [0, 0, 1, 1], [], []>} : vector<16x16xbf16>, vector<16x16xbf16>, vector<16x16xf32> -> vector<16x16xf32>
    %318 = arith.truncf %317 : vector<16x16xf32> to vector<16x16xbf16>
    %c8_296 = arith.constant 8 : index
    %c0_297 = arith.constant 0 : index
    %c0_298 = arith.constant 0 : index
    %319 = vector.load %arg13[%c8_296, %c0_297, %c0_298] : memref<9x16x16xbf16, #tpu.memory_space<vmem>>, vector<1x16x16xbf16>
    %320 = vector.shape_cast %319 : vector<1x16x16xbf16> to vector<16x16xbf16>
    %cst_299 = arith.constant dense<0.000000e+00> : vector<16x16xf32>
    %321 = tpu.matmul %318, %320, %cst_299 {dimension_numbers = #tpu.dot_dimension_numbers<[1], [0], [0], [1], [0, 0, 1, 1], [], []>} : vector<16x16xbf16>, vector<16x16xbf16>, vector<16x16xf32> -> vector<16x16xf32>
    %322 = arith.addf %314, %321 : vector<16x16xf32>
    %c0_300 = arith.constant 0 : index
    %c0_301 = arith.constant 0 : index
    %323 = vector.load %arg14[%c0_300, %c0_301] : memref<1x16xf32, #tpu.memory_space<vmem>>, vector<1x16xf32>
    %324 = vector.broadcast %323 : vector<1x16xf32> to vector<16x16xf32>
    %325 = arith.addf %322, %324 : vector<16x16xf32>
    %cst_302 = arith.constant 0.000000e+00 : f32
    %326 = vector.broadcast %cst_302 : f32 to vector<16x16xf32>
    %327 = arith.cmpf ogt, %325, %326 : vector<16x16xf32>
    %cst_303 = arith.constant 2.000000e-01 : f32
    %328 = vector.broadcast %cst_303 : f32 to vector<16x16xf32>
    %329 = arith.mulf %328, %325 : vector<16x16xf32>
    %330 = arith.select %327, %325, %329 : vector<16x16xi1>, vector<16x16xf32>
    %cst_304 = arith.constant dense<0.000000e+00> : vector<16xf32>
    %331 = vector.multi_reduction <add>, %330, %cst_304 [0] : vector<16x16xf32> to vector<16xf32>
    %332 = vector.shape_cast %331 : vector<16xf32> to vector<1x16xf32>
    %cst_305 = arith.constant 1.600000e+01 : f32
    %333 = vector.broadcast %cst_305 : f32 to vector<1x16xf32>
    %334 = arith.divf %332, %333 : vector<1x16xf32>
    %335 = arith.truncf %334 : vector<1x16xf32> to vector<1x16xbf16>
    %c0_306 = arith.constant 0 : index
    %c0_307 = arith.constant 0 : index
    %336 = vector.load %arg15[%c0_306, %c0_307] : memref<16x1xbf16, #tpu.memory_space<vmem>>, vector<16x1xbf16>
    %cst_308 = arith.constant dense<0.000000e+00> : vector<1x1xf32>
    %337 = tpu.matmul %335, %336, %cst_308 {dimension_numbers = #tpu.dot_dimension_numbers<[1], [0], [0], [1], [0, 0, 1, 1], [], []>} : vector<1x16xbf16>, vector<16x1xbf16>, vector<1x1xf32> -> vector<1x1xf32>
    %c0_309 = arith.constant 0 : index
    %c0_310 = arith.constant 0 : index
    %338 = vector.load %arg16[%c0_309, %c0_310] : memref<1x1xf32, #tpu.memory_space<vmem>>, vector<1x1xf32>
    %339 = arith.addf %337, %338 : vector<1x1xf32>
    %c0_311 = arith.constant 0 : index
    %c0_312 = arith.constant 0 : index
    %340 = vector.load %arg17[%c0_311, %c0_312] : memref<16x1024xbf16, #tpu.memory_space<vmem>>, vector<16x1024xbf16>
    %cst_313 = arith.constant dense<0.000000e+00> : vector<1x1024xf32>
    %341 = tpu.matmul %3, %340, %cst_313 {dimension_numbers = #tpu.dot_dimension_numbers<[1], [0], [0], [1], [0, 0, 1, 1], [], []>} : vector<1x16xbf16>, vector<16x1024xbf16>, vector<1x1024xf32> -> vector<1x1024xf32>
    %c0_314 = arith.constant 0 : index
    %c0_315 = arith.constant 0 : index
    %342 = vector.load %arg18[%c0_314, %c0_315] : memref<1x1024xf32, #tpu.memory_space<vmem>>, vector<1x1024xf32>
    %343 = arith.addf %341, %342 : vector<1x1024xf32>
    %344 = arith.truncf %343 : vector<1x1024xf32> to vector<1x1024xbf16>
    %c0_316 = arith.constant 0 : index
    %c0_317 = arith.constant 0 : index
    %345 = vector.load %arg19[%c0_316, %c0_317] : memref<1024x16xbf16, #tpu.memory_space<vmem>>, vector<1024x16xbf16>
    %cst_318 = arith.constant dense<0.000000e+00> : vector<1x16xf32>
    %346 = tpu.matmul %344, %345, %cst_318 {dimension_numbers = #tpu.dot_dimension_numbers<[1], [0], [0], [1], [0, 0, 1, 1], [], []>} : vector<1x1024xbf16>, vector<1024x16xbf16>, vector<1x16xf32> -> vector<1x16xf32>
    %c0_319 = arith.constant 0 : index
    %c0_320 = arith.constant 0 : index
    %347 = vector.load %arg20[%c0_319, %c0_320] : memref<1x16xf32, #tpu.memory_space<vmem>>, vector<1x16xf32>
    %348 = arith.addf %346, %347 : vector<1x16xf32>
    %349 = arith.mulf %334, %348 : vector<1x16xf32>
    %cst_321 = arith.constant dense<0.000000e+00> : vector<1xf32>
    %350 = vector.multi_reduction <add>, %349, %cst_321 [1] : vector<1x16xf32> to vector<1xf32>
    %351 = vector.shape_cast %350 : vector<1xf32> to vector<1x1xf32>
    %352 = arith.addf %339, %351 : vector<1x1xf32>
    %353 = vector.shape_cast %352 : vector<1x1xf32> to vector<1x1xf32>
    %354 = vector.broadcast %353 : vector<1x1xf32> to vector<8x128xf32>
    %c0_322 = arith.constant 0 : index
    %c0_323 = arith.constant 0 : index
    %c0_324 = arith.constant 0 : index
    %355 = vector.load %arg21[%c0_322, %c0_323, %c0_324] : memref<1x8x128xf32, #tpu.memory_space<vmem>>, vector<1x8x128xf32>
    %356 = vector.shape_cast %355 : vector<1x8x128xf32> to vector<8x128xf32>
    %357 = vector.shape_cast %354 : vector<8x128xf32> to vector<1x8x128xf32>
    tpu.vector_store %arg21[%c0_322, %c0_323, %c0_324], %357 {strides = array<i32>} : memref<1x8x128xf32, #tpu.memory_space<vmem>>, vector<1x8x128xf32>,
    return
  }
  func.func @transform_0(%arg0: i32) -> (i32, i32, i32) {
    %c0_i32 = arith.constant 0 : i32
    %c0_i32_0 = arith.constant 0 : i32
    %c0_i32_1 = arith.constant 0 : i32
    return %arg0, %c0_i32, %c0_i32_0 : i32, i32, i32
  }
  func.func @transform_1(%arg0: i32) -> (i32, i32, i32) {
    %c0_i32 = arith.constant 0 : i32
    %c0_i32_0 = arith.constant 0 : i32
    %c0_i32_1 = arith.constant 0 : i32
    return %arg0, %c0_i32, %c0_i32_0 : i32, i32, i32
  }
  func.func @transform_2(%arg0: i32) -> (i32, i32, i32) {
    %c0_i32 = arith.constant 0 : i32
    %c0_i32_0 = arith.constant 0 : i32
    %c0_i32_1 = arith.constant 0 : i32
    %c0_i32_2 = arith.constant 0 : i32
    return %c0_i32, %c0_i32_0, %c0_i32_1 : i32, i32, i32
  }
  func.func @transform_3(%arg0: i32) -> (i32, i32, i32) {
    %c0_i32 = arith.constant 0 : i32
    %c0_i32_0 = arith.constant 0 : i32
    %c0_i32_1 = arith.constant 0 : i32
    %c0_i32_2 = arith.constant 0 : i32
    return %c0_i32, %c0_i32_0, %c0_i32_1 : i32, i32, i32
  }
  func.func @transform_4(%arg0: i32) -> (i32, i32) {
    %c0_i32 = arith.constant 0 : i32
    %c0_i32_0 = arith.constant 0 : i32
    %c0_i32_1 = arith.constant 0 : i32
    return %c0_i32, %c0_i32_0 : i32, i32
  }
  func.func @transform_5(%arg0: i32) -> (i32, i32, i32) {
    %c0_i32 = arith.constant 0 : i32
    %c0_i32_0 = arith.constant 0 : i32
    %c0_i32_1 = arith.constant 0 : i32
    %c0_i32_2 = arith.constant 0 : i32
    return %c0_i32, %c0_i32_0, %c0_i32_1 : i32, i32, i32
  }
  func.func @transform_6(%arg0: i32) -> (i32, i32, i32) {
    %c0_i32 = arith.constant 0 : i32
    %c0_i32_0 = arith.constant 0 : i32
    %c0_i32_1 = arith.constant 0 : i32
    %c0_i32_2 = arith.constant 0 : i32
    return %c0_i32, %c0_i32_0, %c0_i32_1 : i32, i32, i32
  }
  func.func @transform_7(%arg0: i32) -> (i32, i32) {
    %c0_i32 = arith.constant 0 : i32
    %c0_i32_0 = arith.constant 0 : i32
    %c0_i32_1 = arith.constant 0 : i32
    return %c0_i32, %c0_i32_0 : i32, i32
  }
  func.func @transform_8(%arg0: i32) -> (i32, i32, i32) {
    %c0_i32 = arith.constant 0 : i32
    %c0_i32_0 = arith.constant 0 : i32
    %c0_i32_1 = arith.constant 0 : i32
    %c0_i32_2 = arith.constant 0 : i32
    return %c0_i32, %c0_i32_0, %c0_i32_1 : i32, i32, i32
  }
  func.func @transform_9(%arg0: i32) -> (i32, i32, i32) {
    %c0_i32 = arith.constant 0 : i32
    %c0_i32_0 = arith.constant 0 : i32
    %c0_i32_1 = arith.constant 0 : i32
    %c0_i32_2 = arith.constant 0 : i32
    return %c0_i32, %c0_i32_0, %c0_i32_1 : i32, i32, i32
  }
  func.func @transform_10(%arg0: i32) -> (i32, i32) {
    %c0_i32 = arith.constant 0 : i32
    %c0_i32_0 = arith.constant 0 : i32
    %c0_i32_1 = arith.constant 0 : i32
    return %c0_i32, %c0_i32_0 : i32, i32
  }
  func.func @transform_11(%arg0: i32) -> (i32, i32, i32) {
    %c0_i32 = arith.constant 0 : i32
    %c0_i32_0 = arith.constant 0 : i32
    %c0_i32_1 = arith.constant 0 : i32
    %c0_i32_2 = arith.constant 0 : i32
    return %c0_i32, %c0_i32_0, %c0_i32_1 : i32, i32, i32
  }
  func.func @transform_12(%arg0: i32) -> (i32, i32, i32) {
    %c0_i32 = arith.constant 0 : i32
    %c0_i32_0 = arith.constant 0 : i32
    %c0_i32_1 = arith.constant 0 : i32
    %c0_i32_2 = arith.constant 0 : i32
    return %c0_i32, %c0_i32_0, %c0_i32_1 : i32, i32, i32
  }
  func.func @transform_13(%arg0: i32) -> (i32, i32) {
    %c0_i32 = arith.constant 0 : i32
    %c0_i32_0 = arith.constant 0 : i32
    %c0_i32_1 = arith.constant 0 : i32
    return %c0_i32, %c0_i32_0 : i32, i32
  }
  func.func @transform_14(%arg0: i32) -> (i32, i32) {
    %c0_i32 = arith.constant 0 : i32
    %c0_i32_0 = arith.constant 0 : i32
    %c0_i32_1 = arith.constant 0 : i32
    return %c0_i32, %c0_i32_0 : i32, i32
  }
  func.func @transform_15(%arg0: i32) -> (i32, i32) {
    %c0_i32 = arith.constant 0 : i32
    %c0_i32_0 = arith.constant 0 : i32
    %c0_i32_1 = arith.constant 0 : i32
    return %c0_i32, %c0_i32_0 : i32, i32
  }
  func.func @transform_16(%arg0: i32) -> (i32, i32) {
    %c0_i32 = arith.constant 0 : i32
    %c0_i32_0 = arith.constant 0 : i32
    %c0_i32_1 = arith.constant 0 : i32
    return %c0_i32, %c0_i32_0 : i32, i32
  }
  func.func @transform_17(%arg0: i32) -> (i32, i32) {
    %c0_i32 = arith.constant 0 : i32
    %c0_i32_0 = arith.constant 0 : i32
    %c0_i32_1 = arith.constant 0 : i32
    return %c0_i32, %c0_i32_0 : i32, i32
  }
  func.func @transform_18(%arg0: i32) -> (i32, i32) {
    %c0_i32 = arith.constant 0 : i32
    %c0_i32_0 = arith.constant 0 : i32
    %c0_i32_1 = arith.constant 0 : i32
    return %c0_i32, %c0_i32_0 : i32, i32
  }
  func.func @transform_19(%arg0: i32) -> (i32, i32) {
    %c0_i32 = arith.constant 0 : i32
    %c0_i32_0 = arith.constant 0 : i32
    %c0_i32_1 = arith.constant 0 : i32
    return %c0_i32, %c0_i32_0 : i32, i32
  }
  func.func @transform_20(%arg0: i32) -> (i32, i32, i32) {
    %c0_i32 = arith.constant 0 : i32
    %c0_i32_0 = arith.constant 0 : i32
    %c0_i32_1 = arith.constant 0 : i32
    return %arg0, %c0_i32, %c0_i32_0 : i32, i32, i32
  }
}

</mosaic_0001>

<bundles_post_ra>
// kernel: tpu_custom_call.1
= control target key start
LH: loop header
LB: loop body
LE: loop exit
PB: predicated region body
PF: predicated region fallthrough
CT: control target
= control target key end

     0   :  { %s8829_s0 = inlined_call_operand.vmem [shape: bf16[2,256,2], index: 0, kind: input, shape index: {}]   ;;  %s8830_s1 = inlined_call_operand.vmem [shape: bf16[2,1,16], index: 1, kind: input, shape index: {}]   ;;  %s8831_s2 = inlined_call_operand.vmem [shape: bf16[9,64,256], index: 2, kind: input, shape index: {}]   ;;  %s8832_s3 = inlined_call_operand.vmem [shape: bf16[9,2,8], index: 3, kind: input, shape index: {}]   ;;  %s8833_s4 = inlined_call_operand.vmem [shape: f32[1,8], index: 4, kind: input, shape index: {}]   ;;  %s8834_s5 = inlined_call_operand.hbm [shape: bf16[9,64,64], index: 5, kind: input, shape index: {}]   ;;  %s8835_s6 = inlined_call_operand.vmem [shape: bf16[9,8,8], index: 6, kind: input, shape index: {}]   ;;  %s8836_s7 = inlined_call_operand.vmem [shape: f32[1,8], index: 7, kind: input, shape index: {}]   ;;  %s8837_s8 = inlined_call_operand.vmem [shape: bf16[9,16,64], index: 8, kind: input, shape index: {}]   ;;  %s8838_s9 = inlined_call_operand.vmem [shape: bf16[9,8,16], index: 9, kind: input, shape index: {}]   ;;  %s8839_s10 = inlined_call_operand.vmem [shape: f32[1,16], index: 10, kind: input, shape index: {}]   ;;  %s8840_s11 = inlined_call_operand.vmem [shape: bf16[9,16,16], index: 11, kind: input, shape index: {}]   ;;  %s8841_s12 = inlined_call_operand.vmem [shape: bf16[9,16,16], index: 12, kind: input, shape index: {}]   ;;  %s8842_s13 = inlined_call_operand.vmem [shape: f32[1,16], index: 13, kind: input, shape index: {}]   ;;  %s8843_s14 = inlined_call_operand.vmem [shape: bf16[16,1], index: 14, kind: input, shape index: {}]   ;;  %s8844_s15 = inlined_call_operand.<no memory space> [shape: f32[1,1], index: 15, kind: input, shape index: {}]   ;;  %s8845_s16 = inlined_call_operand.hbm [shape: bf16[16,1024], index: 16, kind: input, shape index: {}]   ;;  %s8846_s17 = inlined_call_operand.vmem [shape: f32[1,1024], index: 17, kind: input, shape index: {}]   ;;  %s8847_s18 = inlined_call_operand.vmem [shape: bf16[1024,16], index: 18, kind: input, shape index: {}]   ;;  %s8848_s19 = inlined_call_operand.vmem [shape: f32[1,16], index: 19, kind: input, shape index: {}]   ;;  %s8849_s20 = inlined_call_operand.hbm [shape: f32[2,8,128], index: 20, kind: output, shape index: {}]  }
   0x1   :  { %8859 = sst [smem:[#allocation18_spill]] %s8829_s0  ;;  %v25_v0 = vstv %s8844_s15 }
   0x2   :  { %8860 = sst [smem:[#allocation19_spill]] %s8830_s1  ;;  %26 = vst [vmem:[#allocation2] sm:$0x1] %v25_v0 }
   0x3   :  { %8861 = sst [smem:[#allocation20_spill]] %s8831_s2 }
   0x4   :  { %8862 = sst [smem:[#allocation21_spill]] %s8832_s3 }
   0x5   :  { %8863 = sst [smem:[#allocation22_spill]] %s8833_s4 }
   0x6   :  { %8864 = sst [smem:[#allocation23_spill]] %s8834_s5 }
   0x7   :  { %8865 = sst [smem:[#allocation24_spill]] %s8845_s16 }
   0x8   :  { %27 = vsyncpa [#allocation4], 0 }
   0x9   :  { %28 = vsyncpa [#allocation7], 0 }
   0xa   :  { %29 = vsyncpa [#allocation5], 0 }
   0xb   :  { %31 = vsyncpa [#allocation5 + $0x1], 0  ;;  %s7163_s23 = smov 0   ;;  %s7165_s24 = smov 0  }
   0xc   :  { %s7167_s2 = smov 0   ;;  %s7169_s25 = smov 0  }
   0xd LB: > { %8866 = sst [smem:[#allocation12_spill]] %s7034_s23  ;;  %s7184_s15 = sadd.s32 4294967295, %s7046_s25   ;;  %s7046_s25 = sphi %s7169_s25, %s8885_s25   ;;  %s7042_s2 = sphi %s7167_s2, %s8887_s2   ;;  %s7038_s24 = sphi %s7165_s24, %s8889_s24   ;;  %s7034_s23 = sphi %s7163_s23, %s8888_s23  }
   0xe   : > { %8867 = sst [smem:[#allocation13_spill]] %s7042_s2  ;;  %s5402_s3 = sadd.s32 4294967294, %s7046_s25  }
   0xf   : > { %8868 = sst [smem:[#allocation14_spill]] %s7046_s25  ;;  %s7188_s26 = sadd.s32 1, %s7046_s25  }
  0x10   : > { %8869 = sst [smem:[#allocation15_spill]] %s7188_s26  ;;  %s474_s27 = sadd.s32 1, %s7042_s2 }
  0x11   : > { %s471_s28 = ssub.s32 %s7046_s25, %s7188_s26  ;;  %p484_p0 = scmp.ne.s32.totalorder %s7042_s2, %s7038_s24 }
  0x12   : > { %p472_p1 = scmp.eq.s32.totalorder %s471_s28, 0  ;;  %p485_p2 = scmp.eq.s32.totalorder %s7184_s15, 1 }
  0x13   : > { %p490_p3 = scmp.ne.s32.totalorder %s7038_s24, %s7034_s23  ;;  %p491_p4 = scmp.eq.s32.totalorder %s5402_s3, 1 }
  0x14   : > { %s7199_s4 = scalar_select %p472_p1, %s7042_s2, %s474_s27  }
  0x15   : > { %p7201_p5 = por %p485_p2, %p484_p0  ;;  %p7205_p6 = por %p491_p4, %p490_p3 }
  0x16   : > { %8870 = sst [smem:[#allocation16_spill]] %s7199_s4  ;;  %p5403_p7 = scmp.ge.s32.totalorder %s7046_s25, 1 }
  0x17   : > { %s8872_s30 = scalar_select %p7205_p6, 1, 0 }
  0x18   : > { %p498_p8 = scmp.lt.s32.totalorder %s7046_s25, 3  ;;  %p6850_p9 = scmp.eq.s32.totalorder %s7184_s15, 0 }
  0x19   : > { %8873 = sst [smem:[#allocation17_spill]] %s8872_s30  ;;  %s7048_s3 = smov [#allocation3]  }
  0x1a   : > { %p7212_p10 = pnand %p5403_p7, %p498_p8  ;;  %s8875_s5 = sld [smem:[#allocation23_spill]] }
  0x1b   : > { %s520_s27 = sshll.u32 %s7048_s3, 4  ;;  %s8876_s16 = sld [smem:[#allocation24_spill]]  ;;  %s521_s27 = int_to_ptr.vmem [resolvable:$true] %s520_s27 }
  0x1c   : > { %p6839_p11 = pneg %p7212_p10  ;;  %s7049_s26 = smov 64  }
  0x1d   : > { %s7050_s30 = smov 4   ;;  %s7051_s23 = smov [#allocation6]  }
  0x1e   : > { %p6840_p12 = pnand %p6850_p9, %p6839_p11  ;;  %s564_s21 = sshll.u32 %s7051_s23, 4  ;;  %s565_s21 = int_to_ptr.vmem [resolvable:$true] %s564_s21 }
  0x1f   : > { %s7052_s1 = smov 512   ;;  %603 = sbr.rel (%p7212_p10) target bundleno = 3360 (0xd20), region = 100 }
  0x20   : > { %s518_s22 = sshll.u32 %s8875_s5, 4  ;;  %s7053_s5 = smov 32   ;;  %s519_s22 = int_to_ptr.hbm [resolvable:$true] %s518_s22 }
  0x21   : > { %s562_s2 = sshll.u32 %s8876_s16, 4  ;;  %s563_s2 = int_to_ptr.hbm [resolvable:$true] %s562_s2 }
  0x22   : > { %6842 = dma.hbm_to_vmem [thread:$0]  (!%p6840_p12), %s519_s22, 4608, %s521_s27, [#allocation4], %s7049_s26, %s7049_s26, %s7050_s30  }
  0x23   : > { %6845 = dma.hbm_to_vmem [thread:$0]  (!%p6840_p12), %s563_s2, 1024, %s565_s21, [#allocation7], %s7052_s1, %s7052_s1, %s7053_s5  }
  0x24   : > { %7021 = dma.done.wait (%p6850_p9), [#allocation4], 4608  }
  0x25   : > { %7023 = vsyncadd (%p6850_p9), [#allocation4], 4294962688 }
  0x26   : > { %7025 = dma.done.wait (%p6850_p9), [#allocation7], 1024  }
  0x27   : > { %7027 = vsyncadd (%p6850_p9), [#allocation7], 4294966272  ;;  %p670_p13 = scmp.lt.s32.totalorder %s7184_s15, 1  ;;  %s8877_s4 = sld [smem:[#allocation18_spill]]  ;;  %vm1045_vm0 = vcmask 1040384   ;;  %vm1032_vm1 = vcmask 15360  }
  0x28   : > { %s8878_s3 = sld [smem:[#allocation20_spill]]  ;;  %vm2481_vm2 = vcmask 1043456   ;;  %vm2345_vm11 = vcmask 523264   ;;  %vm2468_vm12 = vcmask 64512   ;;  %s6599_s16 = sshll.u32 %s7184_s15, 3 }
  0x29   : > { %s7238_s23 = scalar_select %p670_p13, %s7184_s15, 1 }
  0x2a   : > { %s8879_s26 = sld [smem:[#allocation21_spill]] }
  0x2b   : > { %s6602_s5 = sshll.u32 %s7238_s23, 7  ;;  %s8880_s27 = sld [smem:[#allocation22_spill]] }
  0x2c   : > { %s8881_s22 = sld [smem:[#allocation19_spill]] }
  0x2d   : > { %s7244_s30 = scalar_lea.vmem %s8877_s4, %s6602_s5  ;;  %s667_s4 = sand.u32 1, %s7038_s24  }
  0x2e   : > { %v7247_v1 = vld [vmem:[%s7244_s30 + $0x38] sm:$0xff]  ;;  %v7255_v3 = vld [vmem:[%s7244_s30 + $0x30] sm:$0xff]  ;;  %v7265_v5 = vld [vmem:[%s7244_s30 + $0x28] sm:$0xff]  ;;  %s5297_s1 = scalar_lea.sflag [#allocation5], %s667_s4 }
  0x2f   : > { %v7250_v2 = vld [vmem:[%s7244_s30 + $0x78] sm:$0xff]  ;;  %856 = vmatpush.bf16.msra.mxu0 %v7247_v1  ;;  %v7258_v4 = vld [vmem:[%s7244_s30 + $0x70] sm:$0xff]  ;;  %968 = vmatpush.bf16.msra.mxu2 %v7247_v1  ;;  %v7268_v6 = vld [vmem:[%s7244_s30 + $0x68] sm:$0xff] }
  0x30   : > { %885 = vmatpush.bf16.msra.mxu1 %v7250_v2  ;;  %997 = vmatpush.bf16.msra.mxu3 %v7250_v2  ;;  %v7275_v7 = vld [vmem:[%s7244_s30 + $0x20] sm:$0xff]  ;;  %v7285_v9 = vld [vmem:[%s7244_s30 + $0x18] sm:$0xff]  ;;  %v7295_v11 = vld [vmem:[%s7244_s30 + $0x10] sm:$0xff] }
  0x31   : > { %v7278_v8 = vld [vmem:[%s7244_s30 + $0x60] sm:$0xff]  ;;  %v7288_v10 = vld [vmem:[%s7244_s30 + $0x58] sm:$0xff]  ;;  %v7298_v12 = vld [vmem:[%s7244_s30 + $0x50] sm:$0xff] }
  0x32   : > { %v7305_v13 = vld [vmem:[%s7244_s30 + $0x8] sm:$0xff]  ;;  %v7313_v15 = vld [vmem:[%s7244_s30] sm:$0xff]  ;;  %v5423_v29 = vld [vmem:[%s8878_s3 + $0x10] sm:$0xf] }
  0x33   : > { %857 = vmatpush.bf16.msra.mxu0 %v7255_v3  ;;  %969 = vmatpush.bf16.msra.mxu2 %v7255_v3  ;;  %v7308_v14 = vld [vmem:[%s7244_s30 + $0x48] sm:$0xff]  ;;  %v7316_v16 = vld [vmem:[%s7244_s30 + $0x40] sm:$0xff]  ;;  %v6622_v30 = vld [vmem:[%s8878_s3 + $0x14] sm:$0xf0] }
  0x34   : > { %886 = vmatpush.bf16.msra.mxu1 %v7258_v4  ;;  %998 = vmatpush.bf16.msra.mxu3 %v7258_v4  ;;  %v5415_v17 = vld [vmem:[%s8878_s3] sm:$0xf]  ;;  %v6620_v18 = vld [vmem:[%s8878_s3 + $0x4] sm:$0xf0]  ;;  %v6619_v19 = vld [vmem:[%s8878_s3 + $0x4] sm:$0xf]  ;;  %v5424_v37 = vor.u32 %v6622_v30, %v5423_v29 }
  0x35   : > { %v5417_v20 = vld [vmem:[%s8878_s3 + $0x8] sm:$0xf0]  ;;  %v5519_v21 = vld [vmem:[%s8878_s3 + $0x40] sm:$0xf]  ;;  %v6628_v22 = vld [vmem:[%s8878_s3 + $0x44] sm:$0xf0]  ;;  %v5416_v25 = vor.u32 %v6620_v18, %v5415_v17 }
  0x36   : > { %v6627_v23 = vld [vmem:[%s8878_s3 + $0x44] sm:$0xf]  ;;  %v5521_v24 = vld [vmem:[%s8878_s3 + $0x48] sm:$0xf0]  ;;  %v5420_v26 = vor.u32 %v6619_v19, %v5417_v20  ;;  %v5520_v27 = vor.u32 %v6628_v22, %v5519_v21  ;;  %v6621_v31 = vld [vmem:[%s8878_s3 + $0x14] sm:$0xf] }
  0x37   : > { %858 = vmatpush.bf16.msra.mxu0 %v7265_v5  ;;  %970 = vmatpush.bf16.msra.mxu2 %v7265_v5  ;;  %v5524_v28 = vor.u32 %v6627_v23, %v5521_v24  ;;  %v5425_v32 = vld [vmem:[%s8878_s3 + $0x18] sm:$0xf0]  ;;  %v5527_v33 = vld [vmem:[%s8878_s3 + $0x50] sm:$0xf]  ;;  %v6630_v34 = vld [vmem:[%s8878_s3 + $0x54] sm:$0xf0] }
  0x38   : > { %887 = vmatpush.bf16.msra.mxu1 %v7268_v6  ;;  %999 = vmatpush.bf16.msra.mxu3 %v7268_v6  ;;  %v6629_v35 = vld [vmem:[%s8878_s3 + $0x54] sm:$0xf]  ;;  %v5529_v36 = vld [vmem:[%s8878_s3 + $0x58] sm:$0xf0]  ;;  %v5428_v38 = vor.u32 %v6621_v31, %v5425_v32  ;;  %v5528_v39 = vor.u32 %v6630_v34, %v5527_v33  ;;  %v5431_v41 = vld [vmem:[%s8878_s3 + $0x20] sm:$0xf] }
  0x39   : > { %v5532_v40 = vor.u32 %v6629_v35, %v5529_v36  ;;  %v6624_v42 = vld [vmem:[%s8878_s3 + $0x24] sm:$0xf0]  ;;  %v6623_v43 = vld [vmem:[%s8878_s3 + $0x24] sm:$0xf]  ;;  %v5433_v44 = vld [vmem:[%s8878_s3 + $0x28] sm:$0xf0] }
  0x3a   : > { %v5535_v45 = vld [vmem:[%s8878_s3 + $0x60] sm:$0xf]  ;;  %v6632_v46 = vld [vmem:[%s8878_s3 + $0x64] sm:$0xf0]  ;;  %v6631_v47 = vld [vmem:[%s8878_s3 + $0x64] sm:$0xf]  ;;  %v5432_v49 = vor.u32 %v6624_v42, %v5431_v41  ;;  %v5436_v50 = vor.u32 %v6623_v43, %v5433_v44 }
  0x3b   : > { %859 = vmatpush.bf16.msra.mxu0 %v7275_v7  ;;  %971 = vmatpush.bf16.msra.mxu2 %v7275_v7  ;;  %v5537_v48 = vld [vmem:[%s8878_s3 + $0x68] sm:$0xf0]  ;;  %v5536_v51 = vor.u32 %v6632_v46, %v5535_v45  ;;  %v5439_v53 = vld [vmem:[%s8878_s3 + $0x30] sm:$0xf]  ;;  %v6626_v54 = vld [vmem:[%s8878_s3 + $0x34] sm:$0xf0] }
  0x3c   : > { %888 = vmatpush.bf16.msra.mxu1 %v7278_v8  ;;  %1000 = vmatpush.bf16.msra.mxu3 %v7278_v8  ;;  %v5540_v52 = vor.u32 %v6631_v47, %v5537_v48  ;;  %v6625_v55 = vld [vmem:[%s8878_s3 + $0x34] sm:$0xf]  ;;  %v5441_v56 = vld [vmem:[%s8878_s3 + $0x38] sm:$0xf0]  ;;  %v5543_v57 = vld [vmem:[%s8878_s3 + $0x70] sm:$0xf]  ;;  %v5440_v61 = vor.u32 %v6626_v54, %v5439_v53 }
  0x3d   : > { %v6634_v58 = vld [vmem:[%s8878_s3 + $0x74] sm:$0xf0]  ;;  %v6633_v59 = vld [vmem:[%s8878_s3 + $0x74] sm:$0xf]  ;;  %v5545_v60 = vld [vmem:[%s8878_s3 + $0x78] sm:$0xf0]  ;;  %v5444_v62 = vor.u32 %v6625_v55, %v5441_v56 }
  0x3e   : > { %v5544_v63 = vor.u32 %v6634_v58, %v5543_v57  ;;  %v5548_v0 = vor.u32 %v6633_v59, %v5545_v60  ;;  %v5568_v17 = vld [vmem:[%s8878_s3 + $0x80] sm:$0xf]  ;;  %v6636_v18 = vld [vmem:[%s8878_s3 + $0x84] sm:$0xf0]  ;;  %v6635_v19 = vld [vmem:[%s8878_s3 + $0x84] sm:$0xf] }
  0x3f   : > { %860 = vmatpush.bf16.msra.mxu0 %v7285_v9  ;;  %972 = vmatpush.bf16.msra.mxu2 %v7285_v9  ;;  %v5570_v20 = vld [vmem:[%s8878_s3 + $0x88] sm:$0xf0]  ;;  %v5569_v21 = vor.u32 %v6636_v18, %v5568_v17  ;;  %v5576_v23 = vld [vmem:[%s8878_s3 + $0x90] sm:$0xf]  ;;  %v6638_v24 = vld [vmem:[%s8878_s3 + $0x94] sm:$0xf0] }
  0x40   : > { %889 = vmatpush.bf16.msra.mxu1 %v7288_v10  ;;  %1001 = vmatpush.bf16.msra.mxu3 %v7288_v10  ;;  %v5573_v22 = vor.u32 %v6635_v19, %v5570_v20  ;;  %v5584_v29 = vld [vmem:[%s8878_s3 + $0xa0] sm:$0xf]  ;;  %v6640_v30 = vld [vmem:[%s8878_s3 + $0xa4] sm:$0xf0]  ;;  %v6639_v31 = vld [vmem:[%s8878_s3 + $0xa4] sm:$0xf] }
  0x41   : > { %v5586_v32 = vld [vmem:[%s8878_s3 + $0xa8] sm:$0xf0]  ;;  %v5585_v33 = vor.u32 %v6640_v30, %v5584_v29  ;;  %v5549_v35 = vld [vmem:[%s8879_s26 + $0x1] sm:$0x1]  ;;  %v918_v36 = vld [vmem:[%s8879_s26] sm:$0x1] }
  0x42   : > { %v5589_v34 = vor.u32 %v6639_v31, %v5586_v32  ;;  %v6641_v41 = vld [vmem:[%s8878_s3 + $0xb4] sm:$0xf]  ;;  %v5594_v42 = vld [vmem:[%s8878_s3 + $0xb8] sm:$0xf0]  ;;  %v5598_v29 = vld [vmem:[%s8879_s26 + $0x2] sm:$0x1] }
  0x43   : > { %861 = vmatpush.bf16.msra.mxu0 %v7295_v11  ;;  %973 = vmatpush.bf16.msra.mxu2 %v7295_v11  ;;  %v5597_v44 = vor.u32 %v6641_v41, %v5594_v42  ;;  %v1248_v31 = vsel %vm1045_vm0, %v5598_v29, 0  ;;  %v5621_v29 = vld [vmem:[%s8878_s3 + $0xd0] sm:$0xf] }
  0x44   : > { %890 = vmatpush.bf16.msra.mxu1 %v7298_v12  ;;  %1002 = vmatpush.bf16.msra.mxu3 %v7298_v12 }
  0x47   : > { %862 = vmatpush.bf16.msra.mxu0 %v7305_v13  ;;  %974 = vmatpush.bf16.msra.mxu2 %v7305_v13 }
  0x48   : > { %891 = vmatpush.bf16.msra.mxu1 %v7308_v14  ;;  %1003 = vmatpush.bf16.msra.mxu3 %v7308_v14 }
  0x4b   : > { %863 = vmatpush.bf16.msra.mxu0 %v7313_v15  ;;  %975 = vmatpush.bf16.msra.mxu2 %v7313_v15 }
  0x4c   : > { %892 = vmatpush.bf16.msra.mxu1 %v7316_v16  ;;  %1004 = vmatpush.bf16.msra.mxu3 %v7316_v16 }
  0x4e   : > { %864 = vmatmul.bf16.vlgmr.msra.gmra.mxu0 %v5416_v25  ;;  %976 = vmatmul.bf16.vlgmr.msra.gmra.mxu2 %v5520_v27  ;;  %v6637_v25 = vld [vmem:[%s8878_s3 + $0x94] sm:$0xf]  ;;  %v5577_v27 = vor.u32 %v6638_v24, %v5576_v23 }
  0x4f   : > { %1171 = vmatpush.bf16.msrb.mxu2 %v7247_v1  ;;  %893 = vmatmul.bf16.vlgmr.msra.gmra.mxu1 %v5420_v26  ;;  %v5578_v26 = vld [vmem:[%s8878_s3 + $0x98] sm:$0xf0] }
  0x50   : > { %1200 = vmatpush.bf16.msrb.mxu3 %v7250_v2 }
  0x51   : > { %1005 = vmatmul.bf16.vlgmr.msra.gmra.mxu3 %v5524_v28  ;;  %v5581_v28 = vor.u32 %v6637_v25, %v5578_v26 }
  0x53   : > { %1172 = vmatpush.bf16.msrb.mxu2 %v7255_v3 }
  0x54   : > { %1201 = vmatpush.bf16.msrb.mxu3 %v7258_v4 }
  0x57   : > { %1173 = vmatpush.bf16.msrb.mxu2 %v7265_v5 }
  0x58   : > { %1202 = vmatpush.bf16.msrb.mxu3 %v7268_v6 }
  0x5b   : > { %1174 = vmatpush.bf16.msrb.mxu2 %v7275_v7 }
  0x5c   : > { %1203 = vmatpush.bf16.msrb.mxu3 %v7278_v8 }
  0x5e   : > { %869 = vmatmul.bf16.gmra.mxu0 %v5424_v37  ;;  %981 = vmatmul.bf16.gmra.mxu2 %v5528_v39  ;;  %v1047_v37 = vsel %vm1045_vm0, %v5549_v35, 0  ;;  %v5592_v39 = vld [vmem:[%s8878_s3 + $0xb0] sm:$0xf] }
  0x5f   : > { %1175 = vmatpush.bf16.msrb.mxu2 %v7285_v9  ;;  %898 = vmatmul.bf16.gmra.mxu1 %v5428_v38  ;;  %v1091_v38 = vsel %vm1045_vm0, %v918_v36, 0 }
  0x60   : > { %1204 = vmatpush.bf16.msrb.mxu3 %v7288_v10  ;;  %1056 = vmatpush.bf16.msrb.mxu0 %v1047_v37 }
  0x61   : > { %1010 = vmatmul.bf16.gmra.mxu3 %v5532_v40  ;;  %1100 = vmatpush.bf16.msrb.mxu1 %v1091_v38  ;;  %v6642_v40 = vld [vmem:[%s8878_s3 + $0xb4] sm:$0xf0] }
  0x62   : > { %v5593_v43 = vor.u32 %v6642_v40, %v5592_v39 }
  0x63   : > { %1176 = vmatpush.bf16.msrb.mxu2 %v7295_v11 }
  0x64   : > { %1205 = vmatpush.bf16.msrb.mxu3 %v7298_v12  ;;  %1257 = vmatpush.bf16.msra.mxu0 %v1248_v31 }
  0x65   : > { %1336 = vmatpush.bf16.msra.mxu1 %v7247_v1 }
  0x67   : > { %1177 = vmatpush.bf16.msrb.mxu2 %v7305_v13 }
  0x68   : > { %1206 = vmatpush.bf16.msrb.mxu3 %v7308_v14 }
  0x69   : > { %1337 = vmatpush.bf16.msra.mxu1 %v7255_v3 }
  0x6b   : > { %1178 = vmatpush.bf16.msrb.mxu2 %v7313_v15 }
  0x6c   : > { %1207 = vmatpush.bf16.msrb.mxu3 %v7316_v16 }
  0x6d   : > { %1338 = vmatpush.bf16.msra.mxu1 %v7265_v5 }
  0x6e   : > { %874 = vmatmul.bf16.gmra.mxu0 %v5432_v49  ;;  %986 = vmatmul.bf16.gmra.mxu2 %v5536_v51 }
  0x6f   : > { %1365 = vmatpush.bf16.msra.mxu2 %v7250_v2  ;;  %903 = vmatmul.bf16.gmra.mxu1 %v5436_v50 }
  0x71   : > { %1015 = vmatmul.bf16.gmra.mxu3 %v5540_v52  ;;  %1339 = vmatpush.bf16.msra.mxu1 %v7275_v7 }
  0x73   : > { %1366 = vmatpush.bf16.msra.mxu2 %v7258_v4 }
  0x75   : > { %1340 = vmatpush.bf16.msra.mxu1 %v7285_v9 }
  0x77   : > { %1367 = vmatpush.bf16.msra.mxu2 %v7268_v6 }
  0x79   : > { %1341 = vmatpush.bf16.msra.mxu1 %v7295_v11 }
  0x7b   : > { %1368 = vmatpush.bf16.msra.mxu2 %v7278_v8 }
  0x7d   : > { %1342 = vmatpush.bf16.msra.mxu1 %v7305_v13 }
  0x7e   : > { %879 = vmatmul.bf16.gmra.mxu0 %v5440_v61  ;;  %991 = vmatmul.bf16.gmra.mxu2 %v5544_v63 }
  0x7f   : > { %1369 = vmatpush.bf16.msra.mxu2 %v7288_v10  ;;  %908 = vmatmul.bf16.gmra.mxu1 %v5444_v62 }
  0x81   : > { %1020 = vmatmul.bf16.gmra.mxu3 %v5548_v0  ;;  %1343 = vmatpush.bf16.msra.mxu1 %v7313_v15 }
  0x83   : > { %1370 = vmatpush.bf16.msra.mxu2 %v7298_v12 }
  0x87   : > { %1371 = vmatpush.bf16.msra.mxu2 %v7308_v14 }
  0x8b   : > { %1372 = vmatpush.bf16.msra.mxu2 %v7316_v16 }
  0x8e   : > { %1179 = vmatmul.bf16.vlgmr.msrb.gmra.mxu2 %v5569_v21 }
  0x91   : > { %1208 = vmatmul.bf16.vlgmr.msrb.gmra.mxu3 %v5573_v22 }
  0x9e   : > { %1184 = vmatmul.bf16.gmra.mxu2 %v5577_v27  ;;  %v6643_v27 = vld [vmem:[%s8878_s3 + $0xc4] sm:$0xf] }
  0xa1   : > { %1213 = vmatmul.bf16.gmra.mxu3 %v5581_v28  ;;  %v5615_v28 = vld [vmem:[%s8878_s3 + $0xc8] sm:$0xf0] }
  0xa2   : > { %v5618_v30 = vor.u32 %v6643_v27, %v5615_v28  ;;  %v5639_v27 = vld [vmem:[%s8878_s3 + $0xf8] sm:$0xf0] }
  0xae   : > { %1189 = vmatmul.bf16.gmra.mxu2 %v5585_v33 }
  0xb1   : > { %1218 = vmatmul.bf16.gmra.mxu3 %v5589_v34 }
  0xbe   : > { %1194 = vmatmul.bf16.gmra.mxu2 %v5593_v43 }
  0xc1   : > { %1223 = vmatmul.bf16.gmra.mxu3 %v5597_v44 }
  0xcb   : > { %v865_v45 = vpop.f32.mrf.mxu0 }
  0xcc   : > { %v894_v46 = vpop.f32.mrf.mxu1 }
  0xcd   : > { %v895_v51 = vadd.f32 %v894_v46, %v865_v45  ;;  %v6645_v46 = vld [vmem:[%s8878_s3 + $0xd4] sm:$0xf] }
  0xce   : > { %1373 = vmatmul.bf16.vlgmr.msra.gmra.mxu2 %v5618_v30  ;;  %v6646_v30 = vld [vmem:[%s8878_s3 + $0xd4] sm:$0xf0] }
  0xd1   : > { %v977_v47 = vpop.f32.mrf.mxu2 }
  0xd3   : > { %v867_v49 = vpop.f32.mrf.mxu0 }
  0xd4   : > { %v1006_v48 = vpop.f32.mrf.mxu3  ;;  %v896_v50 = vpop.f32.mrf.mxu1 }
  0xd5   : > { %v897_v52 = vadd.f32 %v896_v50, %v867_v49  ;;  %v1007_v56 = vadd.f32 %v1006_v48, %v977_v47  ;;  %v5623_v47 = vld [vmem:[%s8878_s3 + $0xd8] sm:$0xf0] }
  0xd6   : > { %v5626_v48 = vor.u32 %v6645_v46, %v5623_v47 }
  0xd7   : > { %v914_v53 = vpack.c.bf16 %v897_v52, %v895_v51 }
  0xd9   : > { %5554 = vmatmul.msk.bf16.vlgmr.msrb.gmra.mxu1 %vm1032_vm1, %v914_v53  ;;  %v979_v54 = vpop.f32.mrf.mxu2 }
  0xda   : > { %1530 = vmatpush.bf16.msrb.mxu1 %v7250_v2 }
  0xdb   : > { %v870_v58 = vpop.f32.mrf.mxu0 }
  0xdc   : > { %v1008_v55 = vpop.f32.mrf.mxu3  ;;  %v899_v59 = vpop.f32.mrf.mxu1 }
  0xdd   : > { %v1009_v57 = vadd.f32 %v1008_v55, %v979_v54  ;;  %v900_v17 = vadd.f32 %v899_v59, %v870_v58 }
  0xde   : > { %1531 = vmatpush.bf16.msrb.mxu1 %v7258_v4  ;;  %1378 = vmatmul.bf16.gmra.mxu2 %v5626_v48 }
  0xdf   : > { %v1026_v60 = vpack.c.bf16 %v1009_v57, %v1007_v56 }
  0xe1   : > { %5550 = vmatmul.msk.bf16.vlgmr.msrb.gmra.mxu0 %vm1032_vm1, %v1026_v60  ;;  %v982_v61 = vpop.f32.mrf.mxu2 }
  0xe2   : > { %1532 = vmatpush.bf16.msrb.mxu1 %v7268_v6  ;;  %1501 = vmatpush.bf16.msrb.mxu0 %v7247_v1 }
  0xe3   : > { %v872_v63 = vpop.f32.mrf.mxu0 }
  0xe4   : > { %v1011_v62 = vpop.f32.mrf.mxu3  ;;  %v901_v0 = vpop.f32.mrf.mxu1 }
  0xe5   : > { %v902_v18 = vadd.f32 %v901_v0, %v872_v63  ;;  %v1012_v22 = vadd.f32 %v1011_v62, %v982_v61  ;;  %v6647_v61 = vld [vmem:[%s8878_s3 + $0xe4] sm:$0xf]  ;;  %v5631_v62 = vld [vmem:[%s8878_s3 + $0xe8] sm:$0xf0]  ;;  %v5613_v0 = vld [vmem:[%s8878_s3 + $0xc0] sm:$0xf] }
  0xe6   : > { %1533 = vmatpush.bf16.msrb.mxu1 %v7278_v8  ;;  %1502 = vmatpush.bf16.msrb.mxu0 %v7255_v3  ;;  %v5634_v63 = vor.u32 %v6647_v61, %v5631_v62 }
  0xe7   : > { %v915_v19 = vpack.c.bf16 %v902_v18, %v900_v17  ;;  %v6644_v17 = vld [vmem:[%s8878_s3 + $0xc4] sm:$0xf0] }
  0xe9   : > { %5555 = vmatmul.msk.bf16.gmra.mxu1 %vm1032_vm1, %v915_v19  ;;  %v984_v20 = vpop.f32.mrf.mxu2 }
  0xea   : > { %1534 = vmatpush.bf16.msrb.mxu1 %v7288_v10  ;;  %1503 = vmatpush.bf16.msrb.mxu0 %v7265_v5 }
  0xeb   : > { %v875_v24 = vpop.f32.mrf.mxu0 }
  0xec   : > { %v1013_v21 = vpop.f32.mrf.mxu3  ;;  %v904_v25 = vpop.f32.mrf.mxu1 }
  0xed   : > { %v1014_v23 = vadd.f32 %v1013_v21, %v984_v20  ;;  %v905_v36 = vadd.f32 %v904_v25, %v875_v24  ;;  %v5614_v20 = vor.u32 %v6644_v17, %v5613_v0  ;;  %v6652_v0 = vld [vmem:[%s8878_s3 + $0x104] sm:$0xf0] }
  0xee   : > { %1535 = vmatpush.bf16.msrb.mxu1 %v7298_v12  ;;  %1504 = vmatpush.bf16.msrb.mxu0 %v7275_v7 }
  0xef   : > { %v1027_v26 = vpack.c.bf16 %v1014_v23, %v1012_v22  ;;  %1383 = vmatmul.bf16.gmra.mxu2 %v5634_v63  ;;  %v5658_v63 = vld [vmem:[%s8878_s3 + $0x100] sm:$0xf] }
  0xf0   : > { %v5659_v17 = vor.u32 %v6652_v0, %v5658_v63 }
  0xf1   : > { %5551 = vmatmul.msk.bf16.gmra.mxu0 %vm1032_vm1, %v1027_v26  ;;  %v987_v32 = vpop.f32.mrf.mxu2  ;;  %v6649_v26 = vld [vmem:[%s8878_s3 + $0xf4] sm:$0xf] }
  0xf2   : > { %1536 = vmatpush.bf16.msrb.mxu1 %v7308_v14  ;;  %1505 = vmatpush.bf16.msrb.mxu0 %v7285_v9  ;;  %v5642_v28 = vor.u32 %v6649_v26, %v5639_v27  ;;  %v5666_v26 = vld [vmem:[%s8878_s3 + $0x110] sm:$0xf]  ;;  %v6654_v27 = vld [vmem:[%s8878_s3 + $0x114] sm:$0xf0] }
  0xf3   : > { %v877_v34 = vpop.f32.mrf.mxu0 }
  0xf4   : > { %v1016_v33 = vpop.f32.mrf.mxu3  ;;  %v906_v35 = vpop.f32.mrf.mxu1 }
  0xf5   : > { %v907_v37 = vadd.f32 %v906_v35, %v877_v34  ;;  %v1017_v41 = vadd.f32 %v1016_v33, %v987_v32  ;;  %v5622_v33 = vor.u32 %v6646_v30, %v5621_v29 }
  0xf6   : > { %1537 = vmatpush.bf16.msrb.mxu1 %v7316_v16  ;;  %1506 = vmatpush.bf16.msrb.mxu0 %v7295_v11 }
  0xf7   : > { %v916_v38 = vpack.c.bf16 %v907_v37, %v905_v36 }
  0xf9   : > { %5556 = vmatmul.msk.bf16.gmra.mxu1 %vm1032_vm1, %v916_v38  ;;  %v989_v39 = vpop.f32.mrf.mxu2 }
  0xfa   : > { %1507 = vmatpush.bf16.msrb.mxu0 %v7305_v13 }
  0xfb   : > { %v880_v43 = vpop.f32.mrf.mxu0 }
  0xfc   : > { %v1018_v40 = vpop.f32.mrf.mxu3  ;;  %v909_v44 = vpop.f32.mrf.mxu1 }
  0xfd   : > { %v1019_v42 = vadd.f32 %v1018_v40, %v989_v39  ;;  %v910_v53 = vadd.f32 %v909_v44, %v880_v43  ;;  %v5629_v39 = vld [vmem:[%s8878_s3 + $0xe0] sm:$0xf]  ;;  %v6648_v40 = vld [vmem:[%s8878_s3 + $0xe4] sm:$0xf0] }
  0xfe   : > { %1508 = vmatpush.bf16.msrb.mxu0 %v7313_v15  ;;  %v5630_v43 = vor.u32 %v6648_v40, %v5629_v39  ;;  %v5674_v39 = vld [vmem:[%s8878_s3 + $0x120] sm:$0xf]  ;;  %v6656_v40 = vld [vmem:[%s8878_s3 + $0x124] sm:$0xf0] }
  0xff   : > { %v1028_v45 = vpack.c.bf16 %v1019_v42, %v1017_v41  ;;  %1388 = vmatmul.bf16.gmra.mxu2 %v5642_v28  ;;  %v5667_v28 = vor.u32 %v6654_v27, %v5666_v26 }
 0x101   : > { %5552 = vmatmul.msk.bf16.gmra.mxu0 %vm1032_vm1, %v1028_v45  ;;  %v992_v49 = vpop.f32.mrf.mxu2 }
 0x103   : > { %v882_v51 = vpop.f32.mrf.mxu0 }
 0x104   : > { %v1021_v50 = vpop.f32.mrf.mxu3  ;;  %v911_v52 = vpop.f32.mrf.mxu1 }
 0x105   : > { %v912_v54 = vadd.f32 %v911_v52, %v882_v51  ;;  %v1022_v58 = vadd.f32 %v1021_v50, %v992_v49  ;;  %v5637_v49 = vld [vmem:[%s8878_s3 + $0xf0] sm:$0xf]  ;;  %v6650_v50 = vld [vmem:[%s8878_s3 + $0xf4] sm:$0xf0] }
 0x107   : > { %v917_v55 = vpack.c.bf16 %v912_v54, %v910_v53  ;;  %v5638_v53 = vor.u32 %v6650_v50, %v5637_v49 }
 0x109   : > { %5557 = vmatmul.msk.bf16.gmra.mxu1 %vm1032_vm1, %v917_v55  ;;  %v994_v56 = vpop.f32.mrf.mxu2 }
 0x10c   : > { %v1023_v57 = vpop.f32.mrf.mxu3 }
 0x10d   : > { %v1024_v59 = vadd.f32 %v1023_v57, %v994_v56 }
 0x10f   : > { %v1029_v60 = vpack.c.bf16 %v1024_v59, %v1022_v58  ;;  %v6651_v59 = vld [vmem:[%s8878_s3 + $0x104] sm:$0xf] }
 0x111   : > { %5553 = vmatmul.msk.bf16.gmra.mxu0 %vm1032_vm1, %v1029_v60  ;;  %v1180_v18 = vpop.f32.mrf.mxu2  ;;  %v5660_v60 = vld [vmem:[%s8878_s3 + $0x108] sm:$0xf0] }
 0x112   : > { %v5663_v61 = vor.u32 %v6651_v59, %v5660_v60 }
 0x114   : > { %v1209_v19 = vpop.f32.mrf.mxu3 }
 0x115   : > { %v1210_v23 = vadd.f32 %v1209_v19, %v1180_v18 }
 0x119   : > { %1344 = vmatmul.bf16.vlgmr.msra.gmra.mxu1 %v5614_v20  ;;  %v1182_v21 = vpop.f32.mrf.mxu2 }
 0x11c   : > { %v1211_v22 = vpop.f32.mrf.mxu3 }
 0x11d   : > { %v1212_v24 = vadd.f32 %v1211_v22, %v1182_v21  ;;  %v6653_v21 = vld [vmem:[%s8878_s3 + $0x114] sm:$0xf]  ;;  %v5668_v22 = vld [vmem:[%s8878_s3 + $0x118] sm:$0xf0] }
 0x11f   : > { %v1229_v25 = vpack.c.bf16 %v1212_v24, %v1210_v23  ;;  %v5671_v24 = vor.u32 %v6653_v21, %v5668_v22 }
 0x121   : > { %5599 = vmatmul.msk.bf16.vlgmr.msra.gmra.mxu0 %vm1032_vm1, %v1229_v25  ;;  %v1185_v31 = vpop.f32.mrf.mxu2 }
 0x122   : > { %1695 = vmatpush.bf16.msra.mxu0 %v7250_v2 }
 0x124   : > { %v1214_v32 = vpop.f32.mrf.mxu3 }
 0x125   : > { %v1215_v36 = vadd.f32 %v1214_v32, %v1185_v31  ;;  %v6655_v32 = vld [vmem:[%s8878_s3 + $0x124] sm:$0xf] }
 0x126   : > { %1696 = vmatpush.bf16.msra.mxu0 %v7258_v4 }
 0x129   : > { %1349 = vmatmul.bf16.gmra.mxu1 %v5622_v33  ;;  %v1187_v34 = vpop.f32.mrf.mxu2  ;;  %v5676_v33 = vld [vmem:[%s8878_s3 + $0x128] sm:$0xf0] }
 0x12a   : > { %1697 = vmatpush.bf16.msra.mxu0 %v7268_v6 }
 0x12c   : > { %v1216_v35 = vpop.f32.mrf.mxu3 }
 0x12d   : > { %v1217_v37 = vadd.f32 %v1216_v35, %v1187_v34  ;;  %v5679_v35 = vor.u32 %v6655_v32, %v5676_v33 }
 0x12e   : > { %1698 = vmatpush.bf16.msra.mxu0 %v7278_v8 }
 0x12f   : > { %v1230_v38 = vpack.c.bf16 %v1217_v37, %v1215_v36  ;;  %v5643_v37 = vld [vmem:[%s8879_s26 + $0x3] sm:$0x1] }
 0x131   : > { %5600 = vmatmul.msk.bf16.gmra.mxu0 %vm1032_vm1, %v1230_v38  ;;  %v1190_v41 = vpop.f32.mrf.mxu2  ;;  %v1413_v38 = vsel %vm1045_vm0, %v5643_v37, 0 }
 0x132   : > { %1699 = vmatpush.bf16.msra.mxu0 %v7288_v10  ;;  %1422 = vmatpush.bf16.msra.mxu3 %v1413_v38 }
 0x134   : > { %v1219_v42 = vpop.f32.mrf.mxu3 }
 0x135   : > { %v1220_v46 = vadd.f32 %v1219_v42, %v1190_v41  ;;  %v5675_v41 = vor.u32 %v6656_v40, %v5674_v39 }
 0x136   : > { %1700 = vmatpush.bf16.msra.mxu0 %v7298_v12  ;;  %1666 = vmatpush.bf16.msrb.mxu3 %v7247_v1 }
 0x139   : > { %1354 = vmatmul.bf16.gmra.mxu1 %v5630_v43  ;;  %v1192_v44 = vpop.f32.mrf.mxu2 }
 0x13a   : > { %1701 = vmatpush.bf16.msra.mxu0 %v7308_v14  ;;  %1667 = vmatpush.bf16.msrb.mxu3 %v7255_v3 }
 0x13c   : > { %v1221_v45 = vpop.f32.mrf.mxu3 }
 0x13d   : > { %v1222_v47 = vadd.f32 %v1221_v45, %v1192_v44  ;;  %v6657_v45 = vld [vmem:[%s8878_s3 + $0x134] sm:$0xf] }
 0x13e   : > { %1702 = vmatpush.bf16.msra.mxu0 %v7316_v16  ;;  %1668 = vmatpush.bf16.msrb.mxu3 %v7265_v5 }
 0x13f   : > { %v1231_v48 = vpack.c.bf16 %v1222_v47, %v1220_v46  ;;  %v5684_v46 = vld [vmem:[%s8878_s3 + $0x138] sm:$0xf0] }
 0x141   : > { %5601 = vmatmul.msk.bf16.gmra.mxu0 %vm1032_vm1, %v1231_v48  ;;  %v1195_v51 = vpop.f32.mrf.mxu2  ;;  %v5687_v48 = vor.u32 %v6657_v45, %v5684_v46 }
 0x142   : > { %1669 = vmatpush.bf16.msrb.mxu3 %v7275_v7 }
 0x144   : > { %v1224_v52 = vpop.f32.mrf.mxu3 }
 0x145   : > { %v1225_v56 = vadd.f32 %v1224_v52, %v1195_v51  ;;  %v5682_v51 = vld [vmem:[%s8878_s3 + $0x130] sm:$0xf]  ;;  %v6658_v52 = vld [vmem:[%s8878_s3 + $0x134] sm:$0xf0] }
 0x146   : > { %1670 = vmatpush.bf16.msrb.mxu3 %v7285_v9 }
 0x149   : > { %1359 = vmatmul.bf16.gmra.mxu1 %v5638_v53  ;;  %v1197_v54 = vpop.f32.mrf.mxu2  ;;  %v5683_v53 = vor.u32 %v6658_v52, %v5682_v51 }
 0x14a   : > { %1671 = vmatpush.bf16.msrb.mxu3 %v7295_v11 }
 0x14c   : > { %v1226_v55 = vpop.f32.mrf.mxu3 }
 0x14d   : > { %v1227_v57 = vadd.f32 %v1226_v55, %v1197_v54 }
 0x14e   : > { %1672 = vmatpush.bf16.msrb.mxu3 %v7305_v13 }
 0x14f   : > { %v1232_v58 = vpack.c.bf16 %v1227_v57, %v1225_v56 }
 0x151   : > { %5602 = vmatmul.msk.bf16.gmra.mxu0 %vm1032_vm1, %v1232_v58  ;;  %v1374_v50 = vpop.f32.mrf.mxu2 }
 0x152   : > { %1673 = vmatpush.bf16.msrb.mxu3 %v7313_v15 }
 0x156   : > { %v1102_v62 = vpop.f32.mrf.mxu1 }
 0x159   : > { %1538 = vmatmul.bf16.vlgmr.msrb.gmra.mxu1 %v5663_v61  ;;  %v1376_v57 = vpop.f32.mrf.mxu2 }
 0x15e   : > { %v1058_v18 = vpop.f32.mrf.mxu0  ;;  %v7610_v20 = vpop.f32.mrf.mxu1 }
 0x15f   : > { %v1103_v19 = vadd.f32 %v1102_v62, %v1058_v18 }
 0x161   : > { %1509 = vmatmul.bf16.vlgmr.msrb.gmra.mxu0 %v5659_v17  ;;  %v1379_v60 = vpop.f32.mrf.mxu2 }
 0x166   : > { %v7618_v23 = vpop.f32.mrf.mxu0  ;;  %v1107_v25 = vpop.f32.mrf.mxu1 }
 0x169   : > { %1543 = vmatmul.bf16.gmra.mxu1 %v5671_v24  ;;  %v1381_v24 = vpop.f32.mrf.mxu2 }
 0x16e   : > { %v1063_v29 = vpop.f32.mrf.mxu0  ;;  %v7626_v31 = vpop.f32.mrf.mxu1 }
 0x16f   : > { %v1108_v30 = vadd.f32 %v1107_v25, %v1063_v29 }
 0x171   : > { %1514 = vmatmul.bf16.gmra.mxu0 %v5667_v28 }
 0x172   : > { %v1384_v29 = vpop.f32.mrf.mxu2 }
 0x176   : > { %v7634_v34 = vpop.f32.mrf.mxu0  ;;  %v1112_v36 = vpop.f32.mrf.mxu1 }
 0x179   : > { %1548 = vmatmul.bf16.gmra.mxu1 %v5679_v35 }
 0x17a   : > { %v1386_v37 = vpop.f32.mrf.mxu2 }
 0x17e   : > { %v1068_v42 = vpop.f32.mrf.mxu0  ;;  %v7647_v44 = vpop.f32.mrf.mxu1 }
 0x17f   : > { %v1113_v43 = vadd.f32 %v1112_v36, %v1068_v42  ;;  %v5688_v36 = vld [vmem:[%s8879_s26 + $0x4] sm:$0x1] }
 0x181   : > { %1519 = vmatmul.bf16.gmra.mxu0 %v5675_v41 }
 0x182   : > { %v1389_v46 = vpop.f32.mrf.mxu2 }
 0x186   : > { %v7657_v47 = vpop.f32.mrf.mxu0  ;;  %v1117_v49 = vpop.f32.mrf.mxu1 }
 0x189   : > { %1553 = vmatmul.bf16.gmra.mxu1 %v5687_v48  ;;  %v6659_v48 = vld [vmem:[%s8878_s3 + $0x144] sm:$0xf] }
 0x18a   : > { %v1391_v51 = vpop.f32.mrf.mxu2 }
 0x18e   : > { %v1073_v54 = vpop.f32.mrf.mxu0  ;;  %v7669_v56 = vpop.f32.mrf.mxu1 }
 0x18f   : > { %v7667_v55 = vadd.f32 %v1117_v49, %v1073_v54 }
 0x191   : > { %1524 = vmatmul.bf16.gmra.mxu0 %v5683_v53 }
 0x196   : > { %v7673_v58 = vpop.f32.mrf.mxu0  ;;  %v1345_v59 = vpop.f32.mrf.mxu1 }
 0x197   : > { %v1375_v0 = vadd.f32 %v1374_v50, %v1345_v59 }
 0x19e   : > { %v1259_v61 = vpop.f32.mrf.mxu0  ;;  %v1347_v63 = vpop.f32.mrf.mxu1 }
 0x19f   : > { %v7676_v62 = vadd.f32 %v1259_v61, %v1103_v19  ;;  %v1377_v17 = vadd.f32 %v1376_v57, %v1347_v63 }
 0x1a1   : > { %v1394_v18 = vpack.c.bf16 %v1377_v17, %v1375_v0 }
 0x1a3   : > { %5644 = vmatmul.msk.bf16.vlgmr.msra.gmra.mxu3 %vm1032_vm1, %v1394_v18  ;;  %v5721_v18 = vld [vmem:[%s8878_s3 + $0x168] sm:$0xf0] }
 0x1a4   : > { %1860 = vmatpush.bf16.msra.mxu3 %v7250_v2 }
 0x1a6   : > { %v7680_v21 = vpop.f32.mrf.mxu0  ;;  %v1350_v22 = vpop.f32.mrf.mxu1 }
 0x1a7   : > { %v1380_v27 = vadd.f32 %v1379_v60, %v1350_v22  ;;  %v6660_v60 = vld [vmem:[%s8878_s3 + $0x144] sm:$0xf0] }
 0x1a8   : > { %1861 = vmatpush.bf16.msra.mxu3 %v7258_v4 }
 0x1ac   : > { %1862 = vmatpush.bf16.msra.mxu3 %v7268_v6 }
 0x1ae   : > { %v1264_v25 = vpop.f32.mrf.mxu0  ;;  %v1352_v19 = vpop.f32.mrf.mxu1 }
 0x1af   : > { %v7684_v26 = vadd.f32 %v1264_v25, %v1108_v30  ;;  %v1382_v28 = vadd.f32 %v1381_v24, %v1352_v19  ;;  %v1578_v30 = vsel %vm1045_vm0, %v5688_v36, 0 }
 0x1b0   : > { %1863 = vmatpush.bf16.msra.mxu3 %v7278_v8  ;;  %1587 = vmatpush.bf16.msrb.mxu2 %v1578_v30 }
 0x1b1   : > { %v1395_v32 = vpack.c.bf16 %v1382_v28, %v1380_v27  ;;  %v5711_v28 = vld [vmem:[%s8878_s3 + $0x150] sm:$0xf] }
 0x1b3   : > { %5645 = vmatmul.msk.bf16.gmra.mxu3 %vm1032_vm1, %v1395_v32 }
 0x1b4   : > { %1864 = vmatpush.bf16.msra.mxu3 %v7288_v10  ;;  %1831 = vmatpush.bf16.msra.mxu2 %v7247_v1 }
 0x1b6   : > { %v7689_v33 = vpop.f32.mrf.mxu0  ;;  %v1355_v35 = vpop.f32.mrf.mxu1 }
 0x1b7   : > { %v1385_v41 = vadd.f32 %v1384_v29, %v1355_v35  ;;  %v6662_v29 = vld [vmem:[%s8878_s3 + $0x154] sm:$0xf0] }
 0x1b8   : > { %1865 = vmatpush.bf16.msra.mxu3 %v7298_v12  ;;  %1832 = vmatpush.bf16.msra.mxu2 %v7255_v3  ;;  %v5705_v3 = vld [vmem:[%s8878_s3 + $0x148] sm:$0xf0]  ;;  %v5712_v36 = vor.u32 %v6662_v29, %v5711_v28  ;;  %v6671_v28 = vld [vmem:[%s8878_s3 + $0x1a4] sm:$0xf] }
 0x1b9   : > { %v5708_v49 = vor.u32 %v6659_v48, %v5705_v3  ;;  %v5766_v29 = vld [vmem:[%s8878_s3 + $0x1a8] sm:$0xf0] }
 0x1bb   : > { %1703 = vmatmul.bf16.vlgmr.msra.gmra.mxu0 %v5708_v49 }
 0x1bc   : > { %1866 = vmatpush.bf16.msra.mxu3 %v7308_v14  ;;  %1833 = vmatpush.bf16.msra.mxu2 %v7265_v5 }
 0x1be   : > { %v1269_v38 = vpop.f32.mrf.mxu0  ;;  %v1357_v40 = vpop.f32.mrf.mxu1 }
 0x1bf   : > { %v7699_v39 = vadd.f32 %v1269_v38, %v1113_v43  ;;  %v1387_v42 = vadd.f32 %v1386_v37, %v1357_v40  ;;  %v5729_v37 = vld [vmem:[%s8878_s3 + $0x178] sm:$0xf0] }
 0x1c0   : > { %1867 = vmatpush.bf16.msra.mxu3 %v7316_v16  ;;  %1834 = vmatpush.bf16.msra.mxu2 %v7275_v7 }
 0x1c1   : > { %v1396_v45 = vpack.c.bf16 %v1387_v42, %v1385_v41 }
 0x1c3   : > { %5646 = vmatmul.msk.bf16.gmra.mxu3 %vm1032_vm1, %v1396_v45 }
 0x1c4   : > { %1835 = vmatpush.bf16.msra.mxu2 %v7285_v9  ;;  %v6661_v9 = vld [vmem:[%s8878_s3 + $0x154] sm:$0xf] }
 0x1c6   : > { %v7704_v1 = vpop.f32.mrf.mxu0  ;;  %v1360_v43 = vpop.f32.mrf.mxu1 }
 0x1c7   : > { %v1390_v53 = vadd.f32 %v1389_v46, %v1360_v43 }
 0x1c8   : > { %1836 = vmatpush.bf16.msra.mxu2 %v7295_v11  ;;  %v5713_v11 = vld [vmem:[%s8878_s3 + $0x158] sm:$0xf0] }
 0x1c9   : > { %v5716_v59 = vor.u32 %v6661_v9, %v5713_v11  ;;  %v6667_v11 = vld [vmem:[%s8878_s3 + $0x184] sm:$0xf] }
 0x1cb   : > { %1708 = vmatmul.bf16.gmra.mxu0 %v5716_v59 }
 0x1cc   : > { %1837 = vmatpush.bf16.msra.mxu2 %v7305_v13  ;;  %v5703_v13 = vld [vmem:[%s8878_s3 + $0x140] sm:$0xf] }
 0x1cd   : > { %v5704_v0 = vor.u32 %v6660_v60, %v5703_v13  ;;  %v5748_v13 = vld [vmem:[%s8878_s3 + $0x180] sm:$0xf]  ;;  %v6668_v60 = vld [vmem:[%s8878_s3 + $0x184] sm:$0xf0] }
 0x1ce   : > { %v1274_v5 = vpop.f32.mrf.mxu0  ;;  %v1362_v52 = vpop.f32.mrf.mxu1 }
 0x1cf   : > { %v7716_v50 = vadd.f32 %v1274_v5, %v7667_v55  ;;  %v1392_v54 = vadd.f32 %v1391_v51, %v1362_v52  ;;  %v5727_v51 = vld [vmem:[%s8878_s3 + $0x170] sm:$0xf] }
 0x1d0   : > { %1838 = vmatpush.bf16.msra.mxu2 %v7313_v15  ;;  %v6663_v15 = vld [vmem:[%s8878_s3 + $0x164] sm:$0xf] }
 0x1d1   : > { %v1397_v57 = vpack.c.bf16 %v1392_v54, %v1390_v53  ;;  %v5724_v19 = vor.u32 %v6663_v15, %v5721_v18  ;;  %v5758_v15 = vld [vmem:[%s8878_s3 + $0x198] sm:$0xf0] }
 0x1d3   : > { %5647 = vmatmul.msk.bf16.gmra.mxu3 %vm1032_vm1, %v1397_v57 }
 0x1d6   : > { %v7720_v7 = vpop.f32.mrf.mxu0  ;;  %v1539_v55 = vpop.f32.mrf.mxu1 }
 0x1db   : > { %1713 = vmatmul.bf16.gmra.mxu0 %v5724_v19 }
 0x1de   : > { %v1510_v61 = vpop.f32.mrf.mxu0  ;;  %v1541_v63 = vpop.f32.mrf.mxu1 }
 0x1df   : > { %v1540_v22 = vadd.f32 %v1539_v55, %v1510_v61  ;;  %v5750_v55 = vld [vmem:[%s8878_s3 + $0x188] sm:$0xf0] }
 0x1e0   : > { %v5753_v59 = vor.u32 %v6667_v11, %v5750_v55 }
 0x1e3   : > { %1674 = vmatmul.bf16.vlgmr.msrb.gmra.mxu3 %v5704_v0 }
 0x1e6   : > { %v1512_v17 = vpop.f32.mrf.mxu0  ;;  %v1544_v25 = vpop.f32.mrf.mxu1 }
 0x1e7   : > { %v1542_v24 = vadd.f32 %v1541_v63, %v1512_v17  ;;  %v5749_v63 = vor.u32 %v6668_v60, %v5748_v13  ;;  %v6669_v17 = vld [vmem:[%s8878_s3 + $0x194] sm:$0xf]  ;;  %v6908_v60 = vld [vmem:[%s7244_s30 + $0x78] sm:$0xff] }
 0x1e9   : > { %v1559_v27 = vpack.c.bf16 %v1542_v24, %v1540_v22  ;;  %v5761_v22 = vor.u32 %v6669_v17, %v5758_v15  ;;  %v5756_v24 = vld [vmem:[%s8878_s3 + $0x190] sm:$0xf] }
 0x1ea   : > { %v6909_v15 = vld [vmem:[%s7244_s30 + $0x70] sm:$0xff] }
 0x1eb   : > { %5689 = vmatmul.msk.bf16.vlgmr.msrb.gmra.mxu2 %vm1032_vm1, %v1559_v27 }
 0x1ec   : > { %2025 = vmatpush.bf16.msrb.mxu2 %v7250_v2  ;;  %v6665_v2 = vld [vmem:[%s8878_s3 + $0x174] sm:$0xf] }
 0x1ed   : > { %v5732_v41 = vor.u32 %v6665_v2, %v5729_v37 }
 0x1ee   : > { %v1515_v32 = vpop.f32.mrf.mxu0  ;;  %v1546_v35 = vpop.f32.mrf.mxu1 }
 0x1ef   : > { %v1545_v38 = vadd.f32 %v1544_v25, %v1515_v32  ;;  %1718 = vmatmul.bf16.gmra.mxu0 %v5732_v41  ;;  %v7829_v41 = vld [vmem:[%s7244_s30 + $0x38] sm:$0xff] }
 0x1f0   : > { %2026 = vmatpush.bf16.msrb.mxu2 %v7258_v4  ;;  %v5719_v4 = vld [vmem:[%s8878_s3 + $0x160] sm:$0xf] }
 0x1f3   : > { %1679 = vmatmul.bf16.gmra.mxu3 %v5712_v36  ;;  %v6672_v36 = vld [vmem:[%s8878_s3 + $0x1a4] sm:$0xf0] }
 0x1f4   : > { %2027 = vmatpush.bf16.msrb.mxu2 %v7268_v6  ;;  %v6664_v6 = vld [vmem:[%s8878_s3 + $0x164] sm:$0xf0] }
 0x1f5   : > { %v5720_v48 = vor.u32 %v6664_v6, %v5719_v4  ;;  %v7841_v4 = vld [vmem:[%s7244_s30 + $0x30] sm:$0xff] }
 0x1f6   : > { %v1517_v30 = vpop.f32.mrf.mxu0  ;;  %v1549_v42 = vpop.f32.mrf.mxu1 }
 0x1f7   : > { %v1547_v40 = vadd.f32 %v1546_v35, %v1517_v30  ;;  %v5769_v35 = vor.u32 %v6671_v28, %v5766_v29  ;;  %v6911_v29 = vld [vmem:[%s7244_s30 + $0x60] sm:$0xff] }
 0x1f8   : > { %2028 = vmatpush.bf16.msrb.mxu2 %v7278_v8 }
 0x1f9   : > { %v1560_v45 = vpack.c.bf16 %v1547_v40, %v1545_v38  ;;  %v5733_v38 = vld [vmem:[%s8879_s26 + $0x5] sm:$0x1] }
 0x1fa   : > { %v1743_v40 = vsel %vm1045_vm0, %v5733_v38, 0  ;;  %v6913_v38 = vld [vmem:[%s7244_s30 + $0x50] sm:$0xff] }
 0x1fb   : > { %5690 = vmatmul.msk.bf16.gmra.mxu2 %vm1032_vm1, %v1560_v45  ;;  %1752 = vmatpush.bf16.msra.mxu1 %v1743_v40 }
 0x1fc   : > { %2029 = vmatpush.bf16.msrb.mxu2 %v7288_v10 }
 0x1fe   : > { %v1520_v46 = vpop.f32.mrf.mxu0  ;;  %v1551_v3 = vpop.f32.mrf.mxu1 }
 0x1ff   : > { %v1550_v43 = vadd.f32 %v1549_v42, %v1520_v46  ;;  %1996 = vmatpush.bf16.msrb.mxu1 %v7829_v41  ;;  %v6673_v42 = vld [vmem:[%s8878_s3 + $0x1b4] sm:$0xf]  ;;  %v7845_v46 = vld [vmem:[%s7244_s30 + $0x28] sm:$0xff] }
 0x200   : > { %2030 = vmatpush.bf16.msrb.mxu2 %v7298_v12  ;;  %v6666_v12 = vld [vmem:[%s8878_s3 + $0x174] sm:$0xf0] }
 0x201   : > { %v5728_v53 = vor.u32 %v6666_v12, %v5727_v51  ;;  %v7862_v51 = vld [vmem:[%s7244_s30 + $0x18] sm:$0xff] }
 0x203   : > { %1684 = vmatmul.bf16.gmra.mxu3 %v5720_v48  ;;  %1997 = vmatpush.bf16.msrb.mxu1 %v7841_v4  ;;  %v5772_v48 = vld [vmem:[%s8878_s3 + $0x1b0] sm:$0xf] }
 0x204   : > { %2031 = vmatpush.bf16.msrb.mxu2 %v7308_v14 }
 0x206   : > { %v1522_v8 = vpop.f32.mrf.mxu0  ;;  %v1554_v5 = vpop.f32.mrf.mxu1 }
 0x207   : > { %v1552_v49 = vadd.f32 %v1551_v3, %v1522_v8  ;;  %1998 = vmatpush.bf16.msrb.mxu1 %v7845_v46  ;;  %v6674_v3 = vld [vmem:[%s8878_s3 + $0x1b4] sm:$0xf0] }
 0x208   : > { %2032 = vmatpush.bf16.msrb.mxu2 %v7316_v16 }
 0x209   : > { %v1561_v10 = vpack.c.bf16 %v1552_v49, %v1550_v43  ;;  %v5773_v43 = vor.u32 %v6674_v3, %v5772_v48  ;;  %v7855_v49 = vld [vmem:[%s7244_s30 + $0x20] sm:$0xff]  ;;  %v6914_v48 = vld [vmem:[%s7244_s30 + $0x48] sm:$0xff] }
 0x20b   : > { %5691 = vmatmul.msk.bf16.gmra.mxu2 %vm1032_vm1, %v1561_v10  ;;  %1999 = vmatpush.bf16.msrb.mxu1 %v7855_v49 }
 0x20e   : > { %v1525_v52 = vpop.f32.mrf.mxu0  ;;  %v1556_v14 = vpop.f32.mrf.mxu1 }
 0x20f   : > { %v1555_v57 = vadd.f32 %v1554_v5, %v1525_v52  ;;  %2000 = vmatpush.bf16.msrb.mxu1 %v7862_v51  ;;  %v7868_v52 = vld [vmem:[%s7244_s30 + $0x10] sm:$0xff] }
 0x213   : > { %1689 = vmatmul.bf16.gmra.mxu3 %v5728_v53  ;;  %2001 = vmatpush.bf16.msrb.mxu1 %v7868_v52 }
 0x216   : > { %v1527_v54 = vpop.f32.mrf.mxu0 }
 0x217   : > { %v1557_v9 = vadd.f32 %v1556_v14, %v1527_v54  ;;  %v7872_v14 = vld [vmem:[%s7244_s30 + $0x8] sm:$0xff]  ;;  %v7876_v54 = vld [vmem:[%s7244_s30] sm:$0xff] }
 0x218   : > { %2002 = vmatpush.bf16.msrb.mxu1 %v7872_v14 }
 0x219   : > { %v1562_v16 = vpack.c.bf16 %v1557_v9, %v1555_v57 }
 0x21b   : > { %5692 = vmatmul.msk.bf16.gmra.mxu2 %vm1032_vm1, %v1562_v16 }
 0x21c   : > { %2003 = vmatpush.bf16.msrb.mxu1 %v7876_v54 }
 0x223   : > { %1868 = vmatmul.bf16.vlgmr.msra.gmra.mxu3 %v5753_v59 }
 0x226   : > { %v1424_v61 = vpop.f32.mrf.mxu3 }
 0x227   : > { %v1444_v0 = vadd.f32 %v1424_v61, %v7676_v62  ;;  %v6670_v62 = vld [vmem:[%s8878_s3 + $0x194] sm:$0xf0] }
 0x228   : > { %v5757_v19 = vor.u32 %v6670_v62, %v5756_v24 }
 0x22b   : > { %1839 = vmatmul.bf16.vlgmr.msra.gmra.mxu2 %v5749_v63 }
 0x22e   : > { %v7796_v18 = vpop.f32.mrf.mxu3 }
 0x233   : > { %1873 = vmatmul.bf16.gmra.mxu3 %v5761_v22  ;;  %v6910_v22 = vld [vmem:[%s7244_s30 + $0x68] sm:$0xff] }
 0x236   : > { %v1429_v25 = vpop.f32.mrf.mxu3 }
 0x237   : > { %v7805_v27 = vadd.f32 %v1429_v25, %v7684_v26  ;;  %v5764_v26 = vld [vmem:[%s8878_s3 + $0x1a0] sm:$0xf] }
 0x238   : > { %v5765_v2 = vor.u32 %v6672_v36, %v5764_v26  ;;  %v1704_v5 = vpop.f32.mrf.mxu0  ;;  %v6912_v26 = vld [vmem:[%s7244_s30 + $0x58] sm:$0xff] }
 0x23b   : > { %1844 = vmatmul.bf16.gmra.mxu2 %v5757_v19 }
 0x23e   : > { %v7813_v32 = vpop.f32.mrf.mxu3 }
 0x240   : > { %v1706_v53 = vpop.f32.mrf.mxu0 }
 0x243   : > { %1878 = vmatmul.bf16.gmra.mxu3 %v5769_v35 }
 0x246   : > { %v1434_v30 = vpop.f32.mrf.mxu3 }
 0x247   : > { %v7822_v37 = vadd.f32 %v1434_v30, %v7699_v39  ;;  %v5774_v39 = vld [vmem:[%s8878_s3 + $0x1b8] sm:$0xf0] }
 0x248   : > { %v5777_v6 = vor.u32 %v6673_v42, %v5774_v39  ;;  %v1709_v57 = vpop.f32.mrf.mxu0  ;;  %v6675_v42 = vld [vmem:[%s8878_s3 + $0x1c4] sm:$0xf]  ;;  %v5795_v39 = vld [vmem:[%s8878_s3 + $0x1c8] sm:$0xf0] }
 0x24b   : > { %1849 = vmatmul.bf16.gmra.mxu2 %v5765_v2 }
 0x24e   : > { %v7838_v45 = vpop.f32.mrf.mxu3 }
 0x250   : > { %v1711_v17 = vpop.f32.mrf.mxu0 }
 0x253   : > { %1883 = vmatmul.bf16.gmra.mxu3 %v5777_v6  ;;  %v5798_v6 = vor.u32 %v6675_v42, %v5795_v39 }
 0x256   : > { %v1439_v8 = vpop.f32.mrf.mxu3 }
 0x257   : > { %v7859_v10 = vadd.f32 %v1439_v8, %v7716_v50 }
 0x258   : > { %v1714_v28 = vpop.f32.mrf.mxu0 }
 0x25b   : > { %1854 = vmatmul.bf16.gmra.mxu2 %v5773_v43 }
 0x25e   : > { %v7865_v12 = vpop.f32.mrf.mxu3 }
 0x260   : > { %v1716_v40 = vpop.f32.mrf.mxu0 }
 0x266   : > { %v1675_v50 = vpop.f32.mrf.mxu3 }
 0x267   : > { %v1705_v55 = vadd.f32 %v1704_v5, %v1675_v50 }
 0x26b   : > { %2033 = vmatmul.bf16.vlgmr.msrb.gmra.mxu2 %v5798_v6 }
 0x26e   : > { %v1589_v9 = vpop.f32.mrf.mxu2  ;;  %v1677_v11 = vpop.f32.mrf.mxu3 }
 0x26f   : > { %v7879_v16 = vadd.f32 %v1589_v9, %v1444_v0  ;;  %v1707_v59 = vadd.f32 %v1706_v53, %v1677_v11  ;;  %v6915_v53 = vld [vmem:[%s7244_s30 + $0x40] sm:$0xff]  ;;  %v5803_v11 = vld [vmem:[%s8878_s3 + $0x1d8] sm:$0xf0]  ;;  %s5410_s30 = sshll.u32 %s667_s4, 3 }
 0x271   : > { %v1724_v13 = vpack.c.bf16 %v1707_v59, %v1705_v55 }
 0x273   : > { %5734 = vmatmul.msk.bf16.vlgmr.msra.gmra.mxu1 %vm1032_vm1, %v1724_v13 }
 0x274   : > { %2190 = vmatpush.bf16.msra.mxu1 %v6908_v60 }
 0x276   : > { %v7883_v61 = vpop.f32.mrf.mxu2  ;;  %v1680_v63 = vpop.f32.mrf.mxu3 }
 0x277   : > { %v1710_v25 = vadd.f32 %v1709_v57, %v1680_v63  ;;  %v1719_v57 = vpop.f32.mrf.mxu0 }
 0x278   : > { %2191 = vmatpush.bf16.msra.mxu1 %v6909_v15 }
 0x27c   : > { %2192 = vmatpush.bf16.msra.mxu1 %v6910_v22  ;;  %v5793_v22 = vld [vmem:[%s8878_s3 + $0x1c0] sm:$0xf] }
 0x27e   : > { %v1594_v0 = vpop.f32.mrf.mxu2  ;;  %v1682_v62 = vpop.f32.mrf.mxu3 }
 0x27f   : > { %v7888_v24 = vadd.f32 %v1594_v0, %v7805_v27  ;;  %v1712_v19 = vadd.f32 %v1711_v17, %v1682_v62  ;;  %v5778_v27 = vld [vmem:[%s8879_s26 + $0x6] sm:$0x1]  ;;  %v1721_v13 = vpop.f32.mrf.mxu0 }
 0x280   : > { %2193 = vmatpush.bf16.msra.mxu1 %v6911_v29  ;;  %v1908_v2 = vsel %vm1045_vm0, %v5778_v27, 0  ;;  %v5819_v27 = vld [vmem:[%s8878_s3 + $0x1f8] sm:$0xf0] }
 0x281   : > { %v1725_v35 = vpack.c.bf16 %v1712_v19, %v1710_v25  ;;  %1917 = vmatpush.bf16.msrb.mxu0 %v1908_v2  ;;  %v5801_v2 = vld [vmem:[%s8878_s3 + $0x1d0] sm:$0xf] }
 0x283   : > { %5735 = vmatmul.msk.bf16.gmra.mxu1 %vm1032_vm1, %v1725_v35 }
 0x284   : > { %2194 = vmatpush.bf16.msra.mxu1 %v6912_v26 }
 0x285   : > { %2161 = vmatpush.bf16.msra.mxu0 %v7829_v41 }
 0x286   : > { %v7893_v36 = vpop.f32.mrf.mxu2  ;;  %v1685_v30 = vpop.f32.mrf.mxu3 }
 0x287   : > { %v1715_v41 = vadd.f32 %v1714_v28, %v1685_v30  ;;  %v6681_v30 = vld [vmem:[%s8878_s3 + $0x1f4] sm:$0xf] }
 0x288   : > { %2195 = vmatpush.bf16.msra.mxu1 %v6913_v38  ;;  %v6678_v38 = vld [vmem:[%s8878_s3 + $0x1d4] sm:$0xf0] }
 0x289   : > { %2162 = vmatpush.bf16.msra.mxu0 %v7841_v4  ;;  %v5802_v6 = vor.u32 %v6678_v38, %v5801_v2 }
 0x28c   : > { %2196 = vmatpush.bf16.msra.mxu1 %v6914_v48 }
 0x28d   : > { %2163 = vmatpush.bf16.msra.mxu0 %v7845_v46 }
 0x28e   : > { %v1599_v3 = vpop.f32.mrf.mxu2  ;;  %v1687_v43 = vpop.f32.mrf.mxu3 }
 0x28f   : > { %v7910_v8 = vadd.f32 %v1599_v3, %v7822_v37  ;;  %v1717_v5 = vadd.f32 %v1716_v40, %v1687_v43  ;;  %v6677_v37 = vld [vmem:[%s8878_s3 + $0x1d4] sm:$0xf]  ;;  %v5822_v40 = vor.u32 %v6681_v30, %v5819_v27 }
 0x290   : > { %2197 = vmatpush.bf16.msra.mxu1 %v6915_v53  ;;  %v5806_v55 = vor.u32 %v6677_v37, %v5803_v11  ;;  %v5809_v53 = vld [vmem:[%s8878_s3 + $0x1e0] sm:$0xf]  ;;  %v6685_v27 = vld [vmem:[%s8878_s3 + $0x214] sm:$0xf] }
 0x291   : > { %v1726_v50 = vpack.c.bf16 %v1717_v5, %v1715_v41  ;;  %2164 = vmatpush.bf16.msra.mxu0 %v7855_v49 }
 0x292   : > { %2038 = vmatmul.bf16.gmra.mxu2 %v5806_v55 }
 0x293   : > { %5736 = vmatmul.msk.bf16.gmra.mxu1 %vm1032_vm1, %v1726_v50  ;;  %v6680_v50 = vld [vmem:[%s8878_s3 + $0x1e4] sm:$0xf0] }
 0x295   : > { %2165 = vmatpush.bf16.msra.mxu0 %v7862_v51 }
 0x296   : > { %v7915_v9 = vpop.f32.mrf.mxu2  ;;  %v1690_v4 = vpop.f32.mrf.mxu3 }
 0x297   : > { %v1720_v60 = vadd.f32 %v1719_v57, %v1690_v4  ;;  %v5810_v4 = vor.u32 %v6680_v50, %v5809_v53  ;;  %v5854_v53 = vld [vmem:[%s8878_s3 + $0x220] sm:$0xf]  ;;  %v6688_v50 = vld [vmem:[%s8878_s3 + $0x224] sm:$0xf0] }
 0x299   : > { %2166 = vmatpush.bf16.msra.mxu0 %v7868_v52  ;;  %v5811_v52 = vld [vmem:[%s8878_s3 + $0x1e8] sm:$0xf0] }
 0x29d   : > { %2167 = vmatpush.bf16.msra.mxu0 %v7872_v14  ;;  %v6676_v14 = vld [vmem:[%s8878_s3 + $0x1c4] sm:$0xf0] }
 0x29e   : > { %v1604_v46 = vpop.f32.mrf.mxu2  ;;  %v1692_v49 = vpop.f32.mrf.mxu3  ;;  %v5794_v25 = vor.u32 %v6676_v14, %v5793_v22 }
 0x29f   : > { %v7927_v59 = vadd.f32 %v1604_v46, %v7859_v10  ;;  %v1722_v51 = vadd.f32 %v1721_v13, %v1692_v49  ;;  %v6679_v10 = vld [vmem:[%s8878_s3 + $0x1e4] sm:$0xf] }
 0x2a0   : > { %v5814_v0 = vor.u32 %v6679_v10, %v5811_v52 }
 0x2a1   : > { %v1727_v63 = vpack.c.bf16 %v1722_v51, %v1720_v60  ;;  %2168 = vmatpush.bf16.msra.mxu0 %v7876_v54  ;;  %v5817_v60 = vld [vmem:[%s8878_s3 + $0x1f0] sm:$0xf]  ;;  %v6682_v51 = vld [vmem:[%s8878_s3 + $0x1f4] sm:$0xf0] }
 0x2a2   : > { %2043 = vmatmul.bf16.gmra.mxu2 %v5814_v0 }
 0x2a3   : > { %5737 = vmatmul.msk.bf16.gmra.mxu1 %vm1032_vm1, %v1727_v63 }
 0x2a6   : > { %v7931_v17 = vpop.f32.mrf.mxu2  ;;  %v1869_v15 = vpop.f32.mrf.mxu3 }
 0x2ae   : > { %v1840_v62 = vpop.f32.mrf.mxu2  ;;  %v1871_v54 = vpop.f32.mrf.mxu3 }
 0x2af   : > { %v1870_v28 = vadd.f32 %v1869_v15, %v1840_v62  ;;  %v5818_v15 = vor.u32 %v6682_v51, %v5817_v60  ;;  %v6683_v62 = vld [vmem:[%s8878_s3 + $0x204] sm:$0xf]  ;;  %v5862_v51 = vld [vmem:[%s8878_s3 + $0x230] sm:$0xf] }
 0x2b2   : > { %2048 = vmatmul.bf16.gmra.mxu2 %v5822_v40 }
 0x2b3   : > { %2004 = vmatmul.bf16.vlgmr.msrb.gmra.mxu1 %v5794_v25 }
 0x2b6   : > { %v1842_v19 = vpop.f32.mrf.mxu2  ;;  %v1874_v35 = vpop.f32.mrf.mxu3 }
 0x2b7   : > { %v1872_v29 = vadd.f32 %v1871_v54, %v1842_v19  ;;  %v5840_v54 = vld [vmem:[%s8878_s3 + $0x208] sm:$0xf0] }
 0x2b8   : > { %v5843_v25 = vor.u32 %v6683_v62, %v5840_v54 }
 0x2b9   : > { %v1889_v26 = vpack.c.bf16 %v1872_v29, %v1870_v28  ;;  %v5838_v29 = vld [vmem:[%s8878_s3 + $0x200] sm:$0xf] }
 0x2bb   : > { %5779 = vmatmul.msk.bf16.vlgmr.msrb.gmra.mxu0 %vm1032_vm1, %v1889_v26 }
 0x2be   : > { %v1845_v42 = vpop.f32.mrf.mxu2  ;;  %v1876_v39 = vpop.f32.mrf.mxu3 }
 0x2bf   : > { %v1875_v3 = vadd.f32 %v1874_v35, %v1845_v42  ;;  %v6684_v35 = vld [vmem:[%s8878_s3 + $0x204] sm:$0xf0]  ;;  %v5846_v42 = vld [vmem:[%s8878_s3 + $0x210] sm:$0xf] }
 0x2c0   : > { %v5839_v26 = vor.u32 %v6684_v35, %v5838_v29 }
 0x2c3   : > { %2009 = vmatmul.bf16.gmra.mxu1 %v5802_v6 }
 0x2c6   : > { %v1847_v48 = vpop.f32.mrf.mxu2  ;;  %v1879_v41 = vpop.f32.mrf.mxu3 }
 0x2c7   : > { %v1877_v43 = vadd.f32 %v1876_v39, %v1847_v48  ;;  %v6686_v39 = vld [vmem:[%s8878_s3 + $0x214] sm:$0xf0] }
 0x2c8   : > { %v5847_v6 = vor.u32 %v6686_v39, %v5846_v42 }
 0x2c9   : > { %v1890_v5 = vpack.c.bf16 %v1877_v43, %v1875_v3  ;;  %v6687_v3 = vld [vmem:[%s8878_s3 + $0x224] sm:$0xf] }
 0x2cb   : > { %5780 = vmatmul.msk.bf16.gmra.mxu0 %vm1032_vm1, %v1890_v5 }
 0x2ce   : > { %v1850_v57 = vpop.f32.mrf.mxu2  ;;  %v1881_v37 = vpop.f32.mrf.mxu3 }
 0x2cf   : > { %v1880_v55 = vadd.f32 %v1879_v41, %v1850_v57  ;;  %v5855_v57 = vor.u32 %v6688_v50, %v5854_v53 }
 0x2d3   : > { %2014 = vmatmul.bf16.gmra.mxu1 %v5810_v4 }
 0x2d6   : > { %v1852_v11 = vpop.f32.mrf.mxu2  ;;  %v1884_v49 = vpop.f32.mrf.mxu3 }
 0x2d7   : > { %v1882_v46 = vadd.f32 %v1881_v37, %v1852_v11  ;;  %v5823_v37 = vld [vmem:[%s8879_s26 + $0x7] sm:$0x1] }
 0x2d8   : > { %v2073_v11 = vsel %vm1045_vm0, %v5823_v37, 0 }
 0x2d9   : > { %v1891_v13 = vpack.c.bf16 %v1882_v46, %v1880_v55  ;;  %2082 = vmatpush.bf16.msrb.mxu3 %v2073_v11  ;;  %v5864_v55 = vld [vmem:[%s8878_s3 + $0x238] sm:$0xf0] }
 0x2db   : > { %5781 = vmatmul.msk.bf16.gmra.mxu0 %vm1032_vm1, %v1891_v13 }
 0x2de   : > { %v1855_v63 = vpop.f32.mrf.mxu2  ;;  %v1886_v10 = vpop.f32.mrf.mxu3 }
 0x2df   : > { %v1885_v22 = vadd.f32 %v1884_v49, %v1855_v63  ;;  %v6690_v63 = vld [vmem:[%s8878_s3 + $0x234] sm:$0xf0] }
 0x2e3   : > { %2019 = vmatmul.bf16.gmra.mxu1 %v5818_v15  ;;  %v5863_v15 = vor.u32 %v6690_v63, %v5862_v51 }
 0x2e6   : > { %v1857_v52 = vpop.f32.mrf.mxu2 }
 0x2e7   : > { %v1887_v14 = vadd.f32 %v1886_v10, %v1857_v52 }
 0x2e9   : > { %v1892_v0 = vpack.c.bf16 %v1887_v14, %v1885_v22 }
 0x2eb   : > { %5782 = vmatmul.msk.bf16.gmra.mxu0 %vm1032_vm1, %v1892_v0 }
 0x2ee   : > { %v2034_v49 = vpop.f32.mrf.mxu2 }
 0x2f0   : > { %v1754_v19 = vpop.f32.mrf.mxu1 }
 0x2f1   : > { %v1774_v28 = vadd.f32 %v1754_v19, %v7879_v16  ;;  %v5848_v16 = vld [vmem:[%s8878_s3 + $0x218] sm:$0xf0] }
 0x2f2   : > { %v5851_v2 = vor.u32 %v6685_v27, %v5848_v16 }
 0x2f3   : > { %2198 = vmatmul.bf16.vlgmr.msra.gmra.mxu1 %v5843_v25 }
 0x2f6   : > { %v2036_v52 = vpop.f32.mrf.mxu2 }
 0x2f8   : > { %v7987_v30 = vpop.f32.mrf.mxu1 }
 0x2fb   : > { %2169 = vmatmul.bf16.vlgmr.msra.gmra.mxu0 %v5839_v26 }
 0x300   : > { %v1759_v38 = vpop.f32.mrf.mxu1 }
 0x301   : > { %v1776_v40 = vadd.f32 %v1759_v38, %v7888_v24  ;;  %v5856_v24 = vld [vmem:[%s8878_s3 + $0x228] sm:$0xf0] }
 0x302   : > { %v5859_v43 = vor.u32 %v6687_v3, %v5856_v24  ;;  %v5868_v24 = vld [vmem:[%s8879_s26 + $0x8] sm:$0x1] }
 0x303   : > { %2203 = vmatmul.bf16.gmra.mxu1 %v5851_v2 }
 0x308   : > { %v8002_v48 = vpop.f32.mrf.mxu1 }
 0x30b   : > { %2174 = vmatmul.bf16.gmra.mxu0 %v5847_v6 }
 0x310   : > { %v1764_v41 = vpop.f32.mrf.mxu1 }
 0x311   : > { %v1778_v5 = vadd.f32 %v1764_v41, %v7910_v8  ;;  %v6689_v8 = vld [vmem:[%s8878_s3 + $0x234] sm:$0xf] }
 0x312   : > { %v5867_v46 = vor.u32 %v6689_v8, %v5864_v55 }
 0x313   : > { %2208 = vmatmul.bf16.gmra.mxu1 %v5859_v43  ;;  %v2238_v43 = vsel %vm1045_vm0, %v5868_v24, 0 }
 0x314   : > { %2247 = vmatpush.bf16.msra.mxu2 %v2238_v43 }
 0x315   : > { %v2039_v14 = vpop.f32.mrf.mxu2 }
 0x318   : > { %v8017_v4 = vpop.f32.mrf.mxu1 }
 0x31b   : > { %2179 = vmatmul.bf16.gmra.mxu0 %v5855_v57 }
 0x31d   : > { %v2041_v29 = vpop.f32.mrf.mxu2 }
 0x320   : > { %v1769_v13 = vpop.f32.mrf.mxu1 }
 0x321   : > { %v1780_v60 = vadd.f32 %v1769_v13, %v7927_v59 }
 0x323   : > { %2213 = vmatmul.bf16.gmra.mxu1 %v5867_v46 }
 0x325   : > { %v2044_v38 = vpop.f32.mrf.mxu2 }
 0x328   : > { %v8036_v10 = vpop.f32.mrf.mxu1 }
 0x32b   : > { %2184 = vmatmul.bf16.gmra.mxu0 %v5863_v15 }
 0x32d   : > { %v2046_v41 = vpop.f32.mrf.mxu2 }
 0x330   : > { %v2005_v22 = vpop.f32.mrf.mxu1 }
 0x331   : > { %v2035_v54 = vadd.f32 %v2034_v49, %v2005_v22 }
 0x335   : > { %v2049_v8 = vpop.f32.mrf.mxu2 }
 0x338   : > { %v1919_v0 = vpop.f32.mrf.mxu0  ;;  %v2007_v59 = vpop.f32.mrf.mxu1 }
 0x339   : > { %v8038_v62 = vadd.f32 %v1919_v0, %v1774_v28  ;;  %v2037_v25 = vadd.f32 %v2036_v52, %v2007_v59 }
 0x33b   : > { %v2054_v19 = vpack.c.bf16 %v2037_v25, %v2035_v54 }
 0x33d   : > { %5824 = vmatmul.msk.bf16.vlgmr.msrb.gmra.mxu3 %vm1032_vm1, %v2054_v19  ;;  %v2051_v13 = vpop.f32.mrf.mxu2 }
 0x340   : > { %v8041_v35 = vpop.f32.mrf.mxu0  ;;  %v2010_v26 = vpop.f32.mrf.mxu1 }
 0x341   : > { %v2040_v42 = vadd.f32 %v2039_v14, %v2010_v26 }
 0x348   : > { %v1924_v27 = vpop.f32.mrf.mxu0  ;;  %v2012_v2 = vpop.f32.mrf.mxu1 }
 0x349   : > { %v8043_v16 = vadd.f32 %v1924_v27, %v1776_v40  ;;  %v2042_v39 = vadd.f32 %v2041_v29, %v2012_v2 }
 0x34b   : > { %v2055_v6 = vpack.c.bf16 %v2042_v39, %v2040_v42 }
 0x34d   : > { %5825 = vmatmul.msk.bf16.gmra.mxu3 %vm1032_vm1, %v2055_v6 }
 0x350   : > { %v8046_v28 = vpop.f32.mrf.mxu0  ;;  %v2015_v3 = vpop.f32.mrf.mxu1 }
 0x351   : > { %v2045_v57 = vadd.f32 %v2044_v38, %v2015_v3 }
 0x358   : > { %v1929_v40 = vpop.f32.mrf.mxu0  ;;  %v2017_v50 = vpop.f32.mrf.mxu1 }
 0x359   : > { %v8052_v53 = vadd.f32 %v1929_v40, %v1778_v5  ;;  %v2047_v37 = vadd.f32 %v2046_v41, %v2017_v50 }
 0x35b   : > { %v2056_v11 = vpack.c.bf16 %v2047_v37, %v2045_v57 }
 0x35d   : > { %5826 = vmatmul.msk.bf16.gmra.mxu3 %vm1032_vm1, %v2056_v11 }
 0x360   : > { %v8055_v55 = vpop.f32.mrf.mxu0  ;;  %v2020_v46 = vpop.f32.mrf.mxu1 }
 0x361   : > { %v2050_v15 = vadd.f32 %v2049_v8, %v2020_v46 }
 0x368   : > { %v1934_v49 = vpop.f32.mrf.mxu0  ;;  %v2022_v63 = vpop.f32.mrf.mxu1 }
 0x369   : > { %v8057_v51 = vadd.f32 %v1934_v49, %v1780_v60  ;;  %v2052_v52 = vadd.f32 %v2051_v13, %v2022_v63 }
 0x36b   : > { %v2057_v22 = vpack.c.bf16 %v2052_v52, %v2050_v15 }
 0x36d   : > { %5827 = vmatmul.msk.bf16.gmra.mxu3 %vm1032_vm1, %v2057_v22 }
 0x370   : > { %v8060_v5 = vpop.f32.mrf.mxu0  ;;  %v2199_v14 = vpop.f32.mrf.mxu1 }
 0x378   : > { %v2170_v0 = vpop.f32.mrf.mxu0  ;;  %v2201_v59 = vpop.f32.mrf.mxu1 }
 0x379   : > { %v2200_v25 = vadd.f32 %v2199_v14, %v2170_v0 }
 0x380   : > { %v2172_v54 = vpop.f32.mrf.mxu0  ;;  %v2204_v29 = vpop.f32.mrf.mxu1 }
 0x381   : > { %v2202_v19 = vadd.f32 %v2201_v59, %v2172_v54 }
 0x383   : > { %v2219_v26 = vpack.c.bf16 %v2202_v19, %v2200_v25 }
 0x385   : > { %5869 = vmatmul.msk.bf16.vlgmr.msra.gmra.mxu2 %vm1032_vm1, %v2219_v26  ;;  %v5913_v26 = vld [vmem:[%s8835_s6 + $0x4] sm:$0xf] }
 0x388   : > { %v2175_v60 = vpop.f32.mrf.mxu0  ;;  %v2206_v27 = vpop.f32.mrf.mxu1 }
 0x389   : > { %v2205_v38 = vadd.f32 %v2204_v29, %v2175_v60 }
 0x390   : > { %v2177_v2 = vpop.f32.mrf.mxu0  ;;  %v2209_v39 = vpop.f32.mrf.mxu1 }
 0x391   : > { %v2207_v42 = vadd.f32 %v2206_v27, %v2177_v2  ;;  %v2483_v2 = vsel %vm2481_vm2, %v5913_v26, 0 }
 0x392   : > { %2492 = vmatpush.bf16.msrb.mxu1 %v2483_v2 }
 0x393   : > { %v2220_v6 = vpack.c.bf16 %v2207_v42, %v2205_v38 }
 0x395   : > { %5870 = vmatmul.msk.bf16.gmra.mxu2 %vm1032_vm1, %v2220_v6  ;;  %v1110_v6 = vadd.f32 %v7626_v31, %v7634_v34 }
 0x398   : > { %v2180_v3 = vpop.f32.mrf.mxu0  ;;  %v2211_v24 = vpop.f32.mrf.mxu1 }
 0x399   : > { %v2210_v41 = vadd.f32 %v2209_v39, %v2180_v3  ;;  %v1120_v3 = vadd.f32 %v7669_v56, %v7673_v58 }
 0x3a0   : > { %v2182_v43 = vpop.f32.mrf.mxu0  ;;  %v2214_v57 = vpop.f32.mrf.mxu1 }
 0x3a1   : > { %v2212_v40 = vadd.f32 %v2211_v24, %v2182_v43  ;;  %v1282_v43 = vadd.f32 %v7689_v33, %v1110_v6 }
 0x3a3   : > { %v2221_v50 = vpack.c.bf16 %v2212_v40, %v2210_v41  ;;  %v1286_v41 = vadd.f32 %v7720_v7, %v1120_v3 }
 0x3a5   : > { %5871 = vmatmul.msk.bf16.gmra.mxu2 %vm1032_vm1, %v2221_v50 }
 0x3a8   : > { %v2185_v37 = vpop.f32.mrf.mxu0  ;;  %v2216_v11 = vpop.f32.mrf.mxu1 }
 0x3a9   : > { %v2215_v46 = vadd.f32 %v2214_v57, %v2185_v37 }
 0x3b0   : > { %v2187_v8 = vpop.f32.mrf.mxu0 }
 0x3b1   : > { %v2217_v13 = vadd.f32 %v2216_v11, %v2187_v8 }
 0x3b3   : > { %v2222_v49 = vpack.c.bf16 %v2217_v13, %v2215_v46 }
 0x3b5   : > { %5872 = vmatmul.msk.bf16.gmra.mxu2 %vm1032_vm1, %v2222_v49 }
 0x3c0   : > { %v2084_v63 = vpop.f32.mrf.mxu3 }
 0x3c1   : > { %v2104_v15 = vadd.f32 %v2084_v63, %v8038_v62  ;;  %v1115_v62 = vadd.f32 %v7647_v44, %v7657_v47  ;;  %v1105_v44 = vadd.f32 %v7610_v20, %v7618_v23  ;;  %v1447_v47 = vadd.f32 %v7813_v32, %v1282_v43 }
 0x3c3   : > { %v1284_v42 = vadd.f32 %v7704_v1, %v1115_v62  ;;  %v1451_v1 = vadd.f32 %v7865_v12, %v1286_v41  ;;  %v1280_v34 = vadd.f32 %v7680_v21, %v1105_v44  ;;  %v1612_v58 = vadd.f32 %v7893_v36, %v1447_v47  ;;  %v6691_v41 = vld [vmem:[#allocation3] sm:$0xff]  ;;  %v6692_v44 = vld [vmem:[#allocation3 + $0x8] sm:$0xff] }
 0x3c4   : > { %v6696_v47 = vld [vmem:[#allocation3 + $0x28] sm:$0xff] }
 0x3c5   : > { %v1449_v24 = vadd.f32 %v7838_v45, %v1284_v42  ;;  %v1616_v33 = vadd.f32 %v7931_v17, %v1451_v1  ;;  %v1777_v20 = vadd.f32 %v8002_v48, %v1612_v58  ;;  %v6693_v1 = vld [vmem:[#allocation3 + $0x10] sm:$0xff]  ;;  %v6699_v58 = vld [vmem:[#allocation3 + $0x40] sm:$0xff] }
 0x3c7   : > { %v1614_v40 = vadd.f32 %v7915_v9, %v1449_v24  ;;  %v1445_v9 = vadd.f32 %v7796_v18, %v1280_v34  ;;  %v1781_v23 = vadd.f32 %v8036_v10, %v1616_v33  ;;  %v1942_v50 = vadd.f32 %v8046_v28, %v1777_v20  ;;  %v6694_v34 = vld [vmem:[#allocation3 + $0x18] sm:$0xff]  ;;  %v6700_v33 = vld [vmem:[#allocation3 + $0x48] sm:$0xff] }
 0x3c8   : > { %v2086_v52 = vpop.f32.mrf.mxu3  ;;  %v6702_v20 = vld [vmem:[#allocation3 + $0x58] sm:$0xff] }
 0x3c9   : > { %v1779_v31 = vadd.f32 %v8017_v4, %v1614_v40  ;;  %v1610_v4 = vadd.f32 %v7883_v61, %v1445_v9  ;;  %v1946_v36 = vadd.f32 %v8060_v5, %v1781_v23  ;;  %v6695_v40 = vld [vmem:[#allocation3 + $0x20] sm:$0xff] }
 0x3ca   : > { %v6707_v23 = vld [vmem:[#allocation3 + $0x80] sm:$0xff] }
 0x3cb   : > { %v1944_v7 = vadd.f32 %v8055_v55, %v1779_v31  ;;  %v6894_v55 = vld [vmem:[%s8880_s27] ss:$0 sm:$0xff]  ;;  %v1775_v48 = vadd.f32 %v7987_v30, %v1610_v4  ;;  %v6697_v31 = vld [vmem:[#allocation3 + $0x30] sm:$0xff]  ;;  %s677_s27 = scalar_lea.vmem %s8881_s22, %s7238_s23  ;;  %s5307_s22 = scalar_lea.hbm %s8849_s20, %s6599_s16 }
 0x3cc   : > { %s5311_s28 = sshll.u32 %s5307_s22, 4  ;;  %s6996_s16 = scalar_lea.hbm %s8849_s20, 16  ;;  %s5312_s28 = int_to_ptr.hbm [resolvable:$true] %s5311_s28 }
 0x3cd   : > { %v1940_v61 = vadd.f32 %v8041_v35, %v1775_v48  ;;  %s6990_s5 = sshra.s32 %s5312_s28, 4  ;;  %s6991_s5 = int_to_ptr.hbm [resolvable:$true] %s6990_s5 }
 0x3ce   : > { %s6992_s2 = scalar_lea.hbm %s6991_s5, 8  ;;  %p6997_p3 = scmp.lt.s32.totalorder %s6991_s5, %s8849_s20 }
 0x3cf   : > { %p6993_p0 = scmp.ne.s32.totalorder %s6991_s5, %s6992_s2  ;;  %p6998_p4 = scmp.lt.s32.totalorder %s6996_s16, %s6992_s2 }
 0x3d0   : > { %v2089_v0 = vpop.f32.mrf.mxu3 }
 0x3d1   : > { %v2106_v28 = vadd.f32 %v2089_v0, %v8043_v16  ;;  %p6994_p1 = pnand %p6993_p0, %p7201_p5  ;;  %p6999_p7 = por %p6998_p4, %p6997_p3 }
 0x3d3   : > { %p6995_p2 = pneg %p6994_p1 }
 0x3d5   : > { %p7000_p8 = pnand %p6999_p7, %p6995_p2 }
 0x3d8   : > { %v2091_v54 = vpop.f32.mrf.mxu3 }
 0x3e0   : > { %v2094_v19 = vpop.f32.mrf.mxu3 }
 0x3e1   : > { %v2108_v17 = vadd.f32 %v2094_v19, %v8052_v53  ;;  %v2105_v53 = vadd.f32 %v2086_v52, %v1940_v61 }
 0x3e8   : > { %v2096_v60 = vpop.f32.mrf.mxu3 }
 0x3e9   : > { %v2109_v32 = vadd.f32 %v2096_v60, %v1944_v7  ;;  %v6701_v7 = vld [vmem:[#allocation3 + $0x50] sm:$0xff] }
 0x3f0   : > { %v2099_v39 = vpop.f32.mrf.mxu3 }
 0x3f1   : > { %v2110_v45 = vadd.f32 %v2099_v39, %v8057_v51  ;;  %v2107_v51 = vadd.f32 %v2091_v54, %v1942_v50 }
 0x3f8   : > { %v2101_v21 = vpop.f32.mrf.mxu3 }
 0x3f9   : > { %v2111_v10 = vadd.f32 %v2101_v21, %v1946_v36 }
 0x408   : > { %v2249_v22 = vpop.f32.mrf.mxu2 }
 0x409   : > { %v8067_v14 = vadd.f32 %v2249_v22, %v2104_v15 }
 0x410   : > { %v2251_v59 = vpop.f32.mrf.mxu2 }
 0x411   : > { %v2270_v22 = vadd.f32 %v2251_v59, %v2105_v53  ;;  %v2281_v59 = vadd.f32 %v6894_v55, %v8067_v14 }
 0x413   : > { %v2282_v0 = vadd.f32 %v6894_v55, %v2270_v22  ;;  %v2297_v39 = vmul.f32 0.2, %v2281_v59  ;;  %vm2289_vm10 = vcmp.gt.f32.partialorder %v2281_v59, 0.0  ;;  %v6709_v22 = vld [vmem:[#allocation3 + $0x90] sm:$0xff] }
 0x415   : > { %vm2290_vm9 = vcmp.gt.f32.partialorder %v2282_v0, 0.0  ;;  %v2305_v24 = vsel %vm2289_vm10, %v2281_v59, %v2297_v39 }
 0x418   : > { %v2254_v25 = vpop.f32.mrf.mxu2 }
 0x419   : > { %v2271_v13 = vadd.f32 %v2254_v25, %v2106_v28  ;;  %v6708_v28 = vld [vmem:[#allocation3 + $0x88] sm:$0xff] }
 0x41b   : > { %v2283_v26 = vadd.f32 %v6894_v55, %v2271_v13 }
 0x41d   : > { %vm2291_vm8 = vcmp.gt.f32.partialorder %v2283_v26, 0.0 }
 0x420   : > { %v2256_v29 = vpop.f32.mrf.mxu2 }
 0x421   : > { %v2272_v8 = vadd.f32 %v2256_v29, %v2107_v51  ;;  %v2299_v29 = vmul.f32 0.2, %v2283_v26 }
 0x423   : > { %v2284_v30 = vadd.f32 %v6894_v55, %v2272_v8  ;;  %v2307_v6 = vsel %vm2291_vm8, %v2283_v26, %v2299_v29  ;;  %v5942_v8 = vld [vmem:[%s8835_s6 + $0x8] sm:$0xf] }
 0x424   : > { %v6703_v26 = vld [vmem:[#allocation3 + $0x60] sm:$0xff] }
 0x425   : > { %v2300_v52 = vmul.f32 0.2, %v2284_v30  ;;  %vm2292_vm7 = vcmp.gt.f32.partialorder %v2284_v30, 0.0 }
 0x427   : > { %v2308_v42 = vsel %vm2292_vm7, %v2284_v30, %v2300_v52  ;;  %v6704_v52 = vld [vmem:[#allocation3 + $0x68] sm:$0xff]  ;;  %vm3958_vm7 = vcmask 130048  }
 0x428   : > { %v2259_v27 = vpop.f32.mrf.mxu2  ;;  %v8118_v14 = vpack.c.bf16 %v2308_v42, %v2307_v6  ;;  %v6706_v6 = vld [vmem:[#allocation3 + $0x78] sm:$0xff] }
 0x429   : > { %v2273_v57 = vadd.f32 %v2259_v27, %v2108_v17 }
 0x42b   : > { %v2285_v49 = vadd.f32 %v6894_v55, %v2273_v57 }
 0x42d   : > { %v2301_v35 = vmul.f32 0.2, %v2285_v49  ;;  %vm2293_vm6 = vcmp.gt.f32.partialorder %v2285_v49, 0.0 }
 0x42f   : > { %v2309_v2 = vsel %vm2293_vm6, %v2285_v49, %v2301_v35  ;;  %v6710_v35 = vld [vmem:[#allocation3 + $0x98] sm:$0xff] }
 0x430   : > { %v2261_v38 = vpop.f32.mrf.mxu2 }
 0x431   : > { %v2274_v18 = vadd.f32 %v2261_v38, %v2109_v32  ;;  %v2298_v38 = vmul.f32 0.2, %v2282_v0 }
 0x433   : > { %v2286_v5 = vadd.f32 %v6894_v55, %v2274_v18  ;;  %v2306_v3 = vsel %vm2290_vm9, %v2282_v0, %v2298_v38 }
 0x434   : > { %v8123_v43 = vpack.c.bf16 %v2306_v3, %v2305_v24 }
 0x435   : > { %v2302_v54 = vmul.f32 0.2, %v2286_v5  ;;  %vm2294_vm5 = vcmp.gt.f32.partialorder %v2286_v5, 0.0 }
 0x437   : > { %v2310_v25 = vsel %vm2294_vm5, %v2286_v5, %v2302_v54 }
 0x438   : > { %v2264_v56 = vpop.f32.mrf.mxu2  ;;  %v8113_v62 = vpack.c.bf16 %v2310_v25, %v2309_v2  ;;  %v6715_v25 = vld [vmem:[#allocation3 + $0xc0] sm:$0xff]  ;;  %v6705_v2 = vld [vmem:[#allocation3 + $0x70] sm:$0xff] }
 0x439   : > { %v2275_v12 = vadd.f32 %v2264_v56, %v2110_v45  ;;  %v6698_v56 = vld [vmem:[#allocation3 + $0x38] sm:$0xff] }
 0x43a   : > { %v2391_v45 = vld [vmem:[%s8835_s6] sm:$0xf] }
 0x43b   : > { %v2287_v37 = vadd.f32 %v6894_v55, %v2275_v12  ;;  %v2527_v9 = vsel %vm2481_vm2, %v2391_v45, 0 }
 0x43c   : > { %2536 = vmatpush.bf16.msrb.mxu2 %v2527_v9 }
 0x43d   : > { %v2303_v63 = vmul.f32 0.2, %v2287_v37  ;;  %vm2295_vm3 = vcmp.gt.f32.partialorder %v2287_v37, 0.0 }
 0x43f   : > { %v2311_v60 = vsel %vm2295_vm3, %v2287_v37, %v2303_v63 }
 0x440   : > { %v2266_v11 = vpop.f32.mrf.mxu2 }
 0x441   : > { %v2276_v46 = vadd.f32 %v2266_v11, %v2111_v10 }
 0x443   : > { %v2288_v15 = vadd.f32 %v6894_v55, %v2276_v46  ;;  %v2647_v46 = vsel %vm2481_vm2, %v5942_v8, 0 }
 0x445   : > { %vm2296_vm4 = vcmp.gt.f32.partialorder %v2288_v15, 0.0  ;;  %v2304_v19 = vmul.f32 0.2, %v2288_v15 }
 0x447   : > { %v2312_v27 = vsel %vm2296_vm4, %v2288_v15, %v2304_v19 }
 0x448   : > { %v8107_v16 = vpack.c.bf16 %v2312_v27, %v2311_v60 }
 0x44a   : > { %2362 = vmatpush.bf16.msra.mxu3 %v8107_v16  ;;  %2437 = vmatpush.bf16.msrb.mxu0 %v8107_v16 }
 0x44b   : > { %2731 = vmatpush.bf16.msra.mxu1 %v8107_v16 }
 0x44e   : > { %2363 = vmatpush.bf16.msra.mxu3 %v8113_v62  ;;  %2438 = vmatpush.bf16.msrb.mxu0 %v8113_v62 }
 0x44f   : > { %2732 = vmatpush.bf16.msra.mxu1 %v8113_v62 }
 0x452   : > { %2364 = vmatpush.bf16.msra.mxu3 %v8118_v14  ;;  %2439 = vmatpush.bf16.msrb.mxu0 %v8118_v14 }
 0x453   : > { %2733 = vmatpush.bf16.msra.mxu1 %v8118_v14 }
 0x456   : > { %2365 = vmatpush.bf16.msra.mxu3 %v8123_v43  ;;  %2440 = vmatpush.bf16.msrb.mxu0 %v8123_v43 }
 0x457   : > { %2734 = vmatpush.bf16.msra.mxu1 %v8123_v43 }
 0x459   : > { %5889 = vmatmul.msk.bf16.vlgmr.msra.gmra.mxu3 %vm2345_vm11, %v6691_v41  ;;  %5909 = vmatmul.msk.bf16.vlgmr.msrb.gmra.mxu0 %vm2345_vm11, %v6695_v40  ;;  %v6718_v40 = vld [vmem:[#allocation3 + $0xd8] sm:$0xff] }
 0x45a   : > { %2603 = vmatpush.bf16.msrb.mxu3 %v8107_v16  ;;  %2656 = vmatpush.bf16.msra.mxu0 %v2647_v46 }
 0x45e   : > { %2604 = vmatpush.bf16.msrb.mxu3 %v8113_v62 }
 0x462   : > { %2605 = vmatpush.bf16.msrb.mxu3 %v8118_v14 }
 0x466   : > { %2606 = vmatpush.bf16.msrb.mxu3 %v8123_v43 }
 0x469   : > { %5890 = vmatmul.msk.bf16.gmra.mxu3 %vm2345_vm11, %v6692_v44  ;;  %5910 = vmatmul.msk.bf16.gmra.mxu0 %vm2345_vm11, %v6696_v47 }
 0x46a   : > { %2859 = vmatpush.bf16.msra.mxu3 %v8107_v16 }
 0x46e   : > { %2860 = vmatpush.bf16.msra.mxu3 %v8113_v62 }
 0x472   : > { %2861 = vmatpush.bf16.msra.mxu3 %v8118_v14 }
 0x476   : > { %2862 = vmatpush.bf16.msra.mxu3 %v8123_v43 }
 0x479   : > { %5891 = vmatmul.msk.bf16.gmra.mxu3 %vm2345_vm11, %v6693_v1  ;;  %5911 = vmatmul.msk.bf16.gmra.mxu0 %vm2345_vm11, %v6697_v31  ;;  %v6712_v31 = vld [vmem:[#allocation3 + $0xa8] sm:$0xff] }
 0x489   : > { %5892 = vmatmul.msk.bf16.gmra.mxu3 %vm2345_vm11, %v6694_v34  ;;  %5912 = vmatmul.msk.bf16.gmra.mxu0 %vm2345_vm11, %v6698_v56 }
 0x499   : > { %5938 = vmatmul.msk.bf16.vlgmr.msrb.gmra.mxu3 %vm2345_vm11, %v6699_v58  ;;  %v6723_v58 = vld [vmem:[#allocation3 + $0x100] sm:$0xff] }
 0x49a   : > { %3115 = vmatpush.bf16.msrb.mxu3 %v8107_v16 }
 0x49e   : > { %3116 = vmatpush.bf16.msrb.mxu3 %v8113_v62 }
 0x4a2   : > { %3117 = vmatpush.bf16.msrb.mxu3 %v8118_v14 }
 0x4a6   : > { %3118 = vmatpush.bf16.msrb.mxu3 %v8123_v43 }
 0x4a9   : > { %5939 = vmatmul.msk.bf16.gmra.mxu3 %vm2345_vm11, %v6700_v33 }
 0x4b9   : > { %5940 = vmatmul.msk.bf16.gmra.mxu3 %vm2345_vm11, %v6701_v7 }
 0x4c9   : > { %5941 = vmatmul.msk.bf16.gmra.mxu3 %vm2345_vm11, %v6702_v20  ;;  %v5967_v20 = vld [vmem:[%s8835_s6 + $0xc] sm:$0xf] }
 0x4d6   : > { %v2442_v32 = vpop.f32.mrf.mxu0 }
 0x4d9   : > { %5988 = vmatmul.msk.bf16.vlgmr.msra.gmra.mxu3 %vm2345_vm11, %v6707_v23  ;;  %v2775_v23 = vsel %vm2481_vm2, %v5967_v20, 0 }
 0x4da   : > { %3371 = vmatpush.bf16.msra.mxu3 %v8107_v16  ;;  %2784 = vmatpush.bf16.msra.mxu2 %v2775_v23 }
 0x4dc   : > { %v2367_v12 = vpop.f32.mrf.mxu3 }
 0x4de   : > { %3372 = vmatpush.bf16.msra.mxu3 %v8113_v62  ;;  %v2444_v4 = vpop.f32.mrf.mxu0 }
 0x4df   : > { %v2462_v21 = vpack.c.bf16 %v2444_v4, %v2442_v32  ;;  %v6713_v32 = vld [vmem:[#allocation3 + $0xb0] sm:$0xff] }
 0x4e1   : > { %5914 = vmatmul.msk.bf16.vlgmr.msrb.gmra.mxu1 %vm2468_vm12, %v2462_v21 }
 0x4e2   : > { %2987 = vmatpush.bf16.msrb.mxu1 %v8107_v16  ;;  %3373 = vmatpush.bf16.msra.mxu3 %v8118_v14 }
 0x4e4   : > { %v2369_v50 = vpop.f32.mrf.mxu3 }
 0x4e5   : > { %v2387_v36 = vpack.c.bf16 %v2369_v50, %v2367_v12  ;;  %v5992_v12 = vld [vmem:[%s8835_s6 + $0x10] sm:$0xf] }
 0x4e6   : > { %2988 = vmatpush.bf16.msrb.mxu1 %v8113_v62  ;;  %3374 = vmatpush.bf16.msra.mxu3 %v8123_v43  ;;  %v2447_v17 = vpop.f32.mrf.mxu0  ;;  %v2903_v50 = vsel %vm2481_vm2, %v5992_v12, 0 }
 0x4e7   : > { %5918 = vmatmul.msk.bf16.vlgmr.msrb.gmra.mxu2 %vm2468_vm12, %v2387_v36  ;;  %2912 = vmatpush.bf16.msrb.mxu0 %v2903_v50 }
 0x4e9   : > { %5989 = vmatmul.msk.bf16.gmra.mxu3 %vm2345_vm11, %v6708_v28  ;;  %v6725_v28 = vld [vmem:[#allocation3 + $0x110] sm:$0xff] }
 0x4ea   : > { %2989 = vmatpush.bf16.msrb.mxu1 %v8118_v14 }
 0x4ec   : > { %v2372_v55 = vpop.f32.mrf.mxu3 }
 0x4ee   : > { %2990 = vmatpush.bf16.msrb.mxu1 %v8123_v43  ;;  %v2449_v18 = vpop.f32.mrf.mxu0 }
 0x4ef   : > { %v2463_v48 = vpack.c.bf16 %v2449_v18, %v2447_v17 }
 0x4f1   : > { %5915 = vmatmul.msk.bf16.gmra.mxu1 %vm2468_vm12, %v2463_v48 }
 0x4f4   : > { %v2374_v51 = vpop.f32.mrf.mxu3 }
 0x4f5   : > { %v2388_v10 = vpack.c.bf16 %v2374_v51, %v2372_v55  ;;  %v6724_v55 = vld [vmem:[#allocation3 + $0x108] sm:$0xff] }
 0x4f6   : > { %v2452_v57 = vpop.f32.mrf.mxu0 }
 0x4f7   : > { %5919 = vmatmul.msk.bf16.gmra.mxu2 %vm2468_vm12, %v2388_v10 }
 0x4f9   : > { %5990 = vmatmul.msk.bf16.gmra.mxu3 %vm2345_vm11, %v6709_v22 }
 0x4fc   : > { %v2377_v37 = vpop.f32.mrf.mxu3 }
 0x4fe   : > { %v2454_v61 = vpop.f32.mrf.mxu0 }
 0x4ff   : > { %v2464_v11 = vpack.c.bf16 %v2454_v61, %v2452_v57  ;;  %v6714_v57 = vld [vmem:[#allocation3 + $0xb8] sm:$0xff] }
 0x501   : > { %5916 = vmatmul.msk.bf16.gmra.mxu1 %vm2468_vm12, %v2464_v11 }
 0x504   : > { %v2379_v5 = vpop.f32.mrf.mxu3 }
 0x505   : > { %v2389_v53 = vpack.c.bf16 %v2379_v5, %v2377_v37 }
 0x506   : > { %v2457_v13 = vpop.f32.mrf.mxu0 }
 0x507   : > { %5920 = vmatmul.msk.bf16.gmra.mxu2 %vm2468_vm12, %v2389_v53 }
 0x509   : > { %5991 = vmatmul.msk.bf16.gmra.mxu3 %vm2345_vm11, %v6710_v35 }
 0x50c   : > { %v2382_v49 = vpop.f32.mrf.mxu3 }
 0x50e   : > { %v2459_v63 = vpop.f32.mrf.mxu0 }
 0x50f   : > { %v2465_v15 = vpack.c.bf16 %v2459_v63, %v2457_v13 }
 0x511   : > { %5917 = vmatmul.msk.bf16.gmra.mxu1 %vm2468_vm12, %v2465_v15 }
 0x514   : > { %v2384_v30 = vpop.f32.mrf.mxu3 }
 0x515   : > { %v2390_v54 = vpack.c.bf16 %v2384_v30, %v2382_v49  ;;  %v6719_v49 = vld [vmem:[#allocation3 + $0xe0] sm:$0xff]  ;;  %v6726_v30 = vld [vmem:[#allocation3 + $0x118] sm:$0xff] }
 0x517   : > { %5921 = vmatmul.msk.bf16.gmra.mxu2 %vm2468_vm12, %v2390_v54 }
 0x519   : > { %6038 = vmatmul.msk.bf16.vlgmr.msrb.gmra.mxu3 %vm2345_vm11, %v6715_v25 }
 0x51c   : > { %v2608_v19 = vpop.f32.mrf.mxu3 }
 0x521   : > { %5963 = vmatmul.msk.bf16.vlgmr.msra.gmra.mxu1 %vm2345_vm11, %v6703_v26 }
 0x522   : > { %3243 = vmatpush.bf16.msra.mxu1 %v8107_v16 }
 0x524   : > { %v2610_v60 = vpop.f32.mrf.mxu3 }
 0x525   : > { %v2628_v27 = vpack.c.bf16 %v2610_v60, %v2608_v19 }
 0x526   : > { %3244 = vmatpush.bf16.msra.mxu1 %v8113_v62  ;;  %v6716_v62 = vld [vmem:[#allocation3 + $0xc8] sm:$0xff] }
 0x527   : > { %5943 = vmatmul.msk.bf16.vlgmr.msra.gmra.mxu0 %vm2468_vm12, %v2628_v27 }
 0x529   : > { %6039 = vmatmul.msk.bf16.gmra.mxu3 %vm2345_vm11, %v6716_v62 }
 0x52a   : > { %3245 = vmatpush.bf16.msra.mxu1 %v8118_v14  ;;  %v6717_v14 = vld [vmem:[#allocation3 + $0xd0] sm:$0xff] }
 0x52c   : > { %v2613_v0 = vpop.f32.mrf.mxu3 }
 0x52e   : > { %3246 = vmatpush.bf16.msra.mxu1 %v8123_v43  ;;  %v6711_v43 = vld [vmem:[#allocation3 + $0xa0] sm:$0xff] }
 0x531   : > { %5964 = vmatmul.msk.bf16.gmra.mxu1 %vm2345_vm11, %v6704_v52 }
 0x534   : > { %v2615_v59 = vpop.f32.mrf.mxu3 }
 0x535   : > { %v2629_v16 = vpack.c.bf16 %v2615_v59, %v2613_v0  ;;  %v6720_v0 = vld [vmem:[#allocation3 + $0xe8] sm:$0xff] }
 0x537   : > { %5944 = vmatmul.msk.bf16.gmra.mxu0 %vm2468_vm12, %v2629_v16 }
 0x539   : > { %6040 = vmatmul.msk.bf16.gmra.mxu3 %vm2345_vm11, %v6717_v14  ;;  %v6721_v14 = vld [vmem:[#allocation3 + $0xf0] sm:$0xff] }
 0x53c   : > { %v2618_v29 = vpop.f32.mrf.mxu3 }
 0x541   : > { %5965 = vmatmul.msk.bf16.gmra.mxu1 %vm2345_vm11, %v6705_v2 }
 0x544   : > { %v2620_v38 = vpop.f32.mrf.mxu3 }
 0x545   : > { %v2630_v42 = vpack.c.bf16 %v2620_v38, %v2618_v29 }
 0x547   : > { %5945 = vmatmul.msk.bf16.gmra.mxu0 %vm2468_vm12, %v2630_v42  ;;  %v6017_v42 = vld [vmem:[%s8835_s6 + $0x14] sm:$0xf] }
 0x549   : > { %6041 = vmatmul.msk.bf16.gmra.mxu3 %vm2345_vm11, %v6718_v40 }
 0x54c   : > { %v2623_v39 = vpop.f32.mrf.mxu3 }
 0x551   : > { %5966 = vmatmul.msk.bf16.gmra.mxu1 %vm2345_vm11, %v6706_v6 }
 0x554   : > { %v2625_v3 = vpop.f32.mrf.mxu3 }
 0x555   : > { %v2631_v24 = vpack.c.bf16 %v2625_v3, %v2623_v39  ;;  %v3031_v39 = vsel %vm2481_vm2, %v6017_v42, 0  ;;  %v6042_v3 = vld [vmem:[%s8835_s6 + $0x18] sm:$0xf] }
 0x556   : > { %3040 = vmatpush.bf16.msrb.mxu2 %v3031_v39 }
 0x557   : > { %5946 = vmatmul.msk.bf16.gmra.mxu0 %vm2468_vm12, %v2631_v24 }
 0x559   : > { %6088 = vmatmul.msk.bf16.vlgmr.msra.gmra.mxu3 %vm2345_vm11, %v6723_v58 }
 0x55c   : > { %v2864_v7 = vpop.f32.mrf.mxu3 }
 0x55e   : > { %v2494_v41 = vpop.f32.mrf.mxu1 }
 0x561   : > { %6013 = vmatmul.msk.bf16.vlgmr.msrb.gmra.mxu1 %vm2345_vm11, %v6711_v43  ;;  %v3159_v43 = vsel %vm2481_vm2, %v6042_v3, 0 }
 0x562   : > { %3168 = vmatpush.bf16.msra.mxu0 %v3159_v43 }
 0x564   : > { %v2866_v21 = vpop.f32.mrf.mxu3 }
 0x565   : > { %v2884_v36 = vpack.c.bf16 %v2866_v21, %v2864_v7 }
 0x566   : > { %v8197_v44 = vpop.f32.mrf.mxu1 }
 0x567   : > { %5993 = vmatmul.msk.bf16.vlgmr.msrb.gmra.mxu0 %vm2468_vm12, %v2884_v36 }
 0x569   : > { %6089 = vmatmul.msk.bf16.gmra.mxu3 %vm2345_vm11, %v6724_v55 }
 0x56a   : > { %v2538_v47 = vpop.f32.mrf.mxu2 }
 0x56b   : > { %v2539_v1 = vadd.f32 %v2538_v47, %v2494_v41 }
 0x56c   : > { %v2869_v48 = vpop.f32.mrf.mxu3 }
 0x56e   : > { %v2499_v34 = vpop.f32.mrf.mxu1 }
 0x571   : > { %6014 = vmatmul.msk.bf16.gmra.mxu1 %vm2345_vm11, %v6712_v31 }
 0x572   : > { %v8200_v56 = vpop.f32.mrf.mxu2 }
 0x574   : > { %v2871_v61 = vpop.f32.mrf.mxu3 }
 0x575   : > { %v2885_v11 = vpack.c.bf16 %v2871_v61, %v2869_v48 }
 0x576   : > { %v8203_v33 = vpop.f32.mrf.mxu1 }
 0x577   : > { %5994 = vmatmul.msk.bf16.gmra.mxu0 %vm2468_vm12, %v2885_v11 }
 0x579   : > { %6090 = vmatmul.msk.bf16.gmra.mxu3 %vm2345_vm11, %v6725_v28 }
 0x57a   : > { %v2543_v45 = vpop.f32.mrf.mxu2 }
 0x57b   : > { %v2544_v9 = vadd.f32 %v2543_v45, %v2499_v34  ;;  %v6722_v45 = vld [vmem:[#allocation3 + $0xf8] sm:$0xff] }
 0x57c   : > { %v2874_v46 = vpop.f32.mrf.mxu3 }
 0x57e   : > { %v2504_v4 = vpop.f32.mrf.mxu1 }
 0x581   : > { %6015 = vmatmul.msk.bf16.gmra.mxu1 %vm2345_vm11, %v6713_v32 }
 0x582   : > { %v8214_v17 = vpop.f32.mrf.mxu2 }
 0x584   : > { %v2876_v15 = vpop.f32.mrf.mxu3 }
 0x585   : > { %v2886_v22 = vpack.c.bf16 %v2876_v15, %v2874_v46  ;;  %v6092_v15 = vld [vmem:[%s8835_s6 + $0x20] sm:$0xf] }
 0x586   : > { %v8218_v18 = vpop.f32.mrf.mxu1 }
 0x587   : > { %5995 = vmatmul.msk.bf16.gmra.mxu0 %vm2468_vm12, %v2886_v22 }
 0x589   : > { %6091 = vmatmul.msk.bf16.gmra.mxu3 %vm2345_vm11, %v6726_v30  ;;  %v3415_v30 = vsel %vm2481_vm2, %v6092_v15, 0 }
 0x58a   : > { %v2548_v51 = vpop.f32.mrf.mxu2  ;;  %3424 = vmatpush.bf16.msrb.mxu0 %v3415_v30 }
 0x58b   : > { %v2549_v10 = vadd.f32 %v2548_v51, %v2504_v4 }
 0x58c   : > { %v2879_v60 = vpop.f32.mrf.mxu3 }
 0x58e   : > { %v2509_v37 = vpop.f32.mrf.mxu1 }
 0x591   : > { %6016 = vmatmul.msk.bf16.gmra.mxu1 %vm2345_vm11, %v6714_v57 }
 0x592   : > { %v8221_v8 = vpop.f32.mrf.mxu2 }
 0x594   : > { %v2881_v25 = vpop.f32.mrf.mxu3 }
 0x595   : > { %v2887_v59 = vpack.c.bf16 %v2881_v25, %v2879_v60 }
 0x596   : > { %v8225_v5 = vpop.f32.mrf.mxu1 }
 0x597   : > { %5996 = vmatmul.msk.bf16.gmra.mxu0 %vm2468_vm12, %v2887_v59 }
 0x59a   : > { %v2553_v53 = vpop.f32.mrf.mxu2 }
 0x59b   : > { %v2554_v13 = vadd.f32 %v2553_v53, %v2509_v37 }
 0x59c   : > { %v3120_v38 = vpop.f32.mrf.mxu3 }
 0x59e   : > { %v2736_v63 = vpop.f32.mrf.mxu1 }
 0x5a1   : > { %6063 = vmatmul.msk.bf16.vlgmr.msra.gmra.mxu1 %vm2345_vm11, %v6719_v49  ;;  %v6067_v49 = vld [vmem:[%s8835_s6 + $0x1c] sm:$0xf] }
 0x5a4   : > { %v2658_v54 = vpop.f32.mrf.mxu0  ;;  %v3122_v41 = vpop.f32.mrf.mxu3 }
 0x5a5   : > { %v8230_v19 = vadd.f32 %v2658_v54, %v2539_v1  ;;  %v3140_v40 = vpack.c.bf16 %v3122_v41, %v3120_v38  ;;  %v8285_v41 = vpop.f32.mrf.mxu2 }
 0x5a6   : > { %v2738_v26 = vpop.f32.mrf.mxu1 }
 0x5a7   : > { %v2756_v35 = vpack.c.bf16 %v2738_v26, %v2736_v63  ;;  %6043 = vmatmul.msk.bf16.vlgmr.msra.gmra.mxu0 %vm2468_vm12, %v3140_v40  ;;  %v3287_v63 = vsel %vm2481_vm2, %v6067_v49, 0 }
 0x5a9   : > { %5968 = vmatmul.msk.bf16.vlgmr.msra.gmra.mxu2 %vm2468_vm12, %v2756_v35 }
 0x5aa   : > { %3296 = vmatpush.bf16.msra.mxu2 %v3287_v63 }
 0x5ac   : > { %v8233_v27 = vpop.f32.mrf.mxu0  ;;  %v3125_v58 = vpop.f32.mrf.mxu3 }
 0x5ae   : > { %v2741_v52 = vpop.f32.mrf.mxu1 }
 0x5b1   : > { %6064 = vmatmul.msk.bf16.gmra.mxu1 %vm2345_vm11, %v6720_v0 }
 0x5b4   : > { %v2663_v16 = vpop.f32.mrf.mxu0  ;;  %v3127_v20 = vpop.f32.mrf.mxu3 }
 0x5b5   : > { %v8237_v29 = vadd.f32 %v2663_v16, %v2544_v9  ;;  %v3141_v23 = vpack.c.bf16 %v3127_v20, %v3125_v58 }
 0x5b6   : > { %v2743_v2 = vpop.f32.mrf.mxu1 }
 0x5b7   : > { %v2757_v62 = vpack.c.bf16 %v2743_v2, %v2741_v52  ;;  %6044 = vmatmul.msk.bf16.gmra.mxu0 %vm2468_vm12, %v3141_v23 }
 0x5b9   : > { %5969 = vmatmul.msk.bf16.gmra.mxu2 %vm2468_vm12, %v2757_v62 }
 0x5bc   : > { %v8244_v6 = vpop.f32.mrf.mxu0  ;;  %v3130_v50 = vpop.f32.mrf.mxu3 }
 0x5be   : > { %v2746_v24 = vpop.f32.mrf.mxu1 }
 0x5c1   : > { %6065 = vmatmul.msk.bf16.gmra.mxu1 %vm2345_vm11, %v6721_v14 }
 0x5c4   : > { %v2668_v47 = vpop.f32.mrf.mxu0  ;;  %v3132_v55 = vpop.f32.mrf.mxu3 }
 0x5c5   : > { %v8252_v1 = vadd.f32 %v2668_v47, %v2549_v10  ;;  %v3142_v48 = vpack.c.bf16 %v3132_v55, %v3130_v50 }
 0x5c6   : > { %v2748_v31 = vpop.f32.mrf.mxu1 }
 0x5c7   : > { %v2758_v34 = vpack.c.bf16 %v2748_v31, %v2746_v24  ;;  %6045 = vmatmul.msk.bf16.gmra.mxu0 %vm2468_vm12, %v3142_v48 }
 0x5c9   : > { %5970 = vmatmul.msk.bf16.gmra.mxu2 %vm2468_vm12, %v2758_v34 }
 0x5cc   : > { %v8255_v7 = vpop.f32.mrf.mxu0  ;;  %v3135_v57 = vpop.f32.mrf.mxu3 }
 0x5ce   : > { %v2751_v9 = vpop.f32.mrf.mxu1 }
 0x5d1   : > { %6066 = vmatmul.msk.bf16.gmra.mxu1 %vm2345_vm11, %v6722_v45 }
 0x5d4   : > { %v2673_v32 = vpop.f32.mrf.mxu0  ;;  %v3137_v61 = vpop.f32.mrf.mxu3 }
 0x5d5   : > { %v8259_v12 = vadd.f32 %v2673_v32, %v2554_v13  ;;  %v3143_v11 = vpack.c.bf16 %v3137_v61, %v3135_v57 }
 0x5d6   : > { %v2753_v4 = vpop.f32.mrf.mxu1 }
 0x5d7   : > { %v2759_v21 = vpack.c.bf16 %v2753_v4, %v2751_v9  ;;  %6046 = vmatmul.msk.bf16.gmra.mxu0 %vm2468_vm12, %v3143_v11 }
 0x5d9   : > { %5971 = vmatmul.msk.bf16.gmra.mxu2 %vm2468_vm12, %v2759_v21 }
 0x5dc   : > { %v3376_v53 = vpop.f32.mrf.mxu3  ;;  %v8265_v13 = vpop.f32.mrf.mxu0 }
 0x5de   : > { %v2992_v36 = vpop.f32.mrf.mxu1 }
 0x5e4   : > { %v3378_v54 = vpop.f32.mrf.mxu3  ;;  %v2914_v26 = vpop.f32.mrf.mxu0 }
 0x5e5   : > { %v3396_v35 = vpack.c.bf16 %v3378_v54, %v3376_v53 }
 0x5e6   : > { %v2994_v51 = vpop.f32.mrf.mxu1 }
 0x5e7   : > { %v3012_v10 = vpack.c.bf16 %v2994_v51, %v2992_v36  ;;  %6093 = vmatmul.msk.bf16.vlgmr.msrb.gmra.mxu0 %vm2468_vm12, %v3396_v35 }
 0x5e9   : > { %6018 = vmatmul.msk.bf16.vlgmr.msrb.gmra.mxu2 %vm2468_vm12, %v3012_v10 }
 0x5ec   : > { %v3381_v52 = vpop.f32.mrf.mxu3  ;;  %v8278_v25 = vpop.f32.mrf.mxu0 }
 0x5ee   : > { %v2997_v37 = vpop.f32.mrf.mxu1 }
 0x5f4   : > { %v3383_v16 = vpop.f32.mrf.mxu3  ;;  %v2919_v62 = vpop.f32.mrf.mxu0 }
 0x5f5   : > { %v3397_v2 = vpack.c.bf16 %v3383_v16, %v3381_v52 }
 0x5f6   : > { %v2999_v28 = vpop.f32.mrf.mxu1 }
 0x5f7   : > { %v3013_v46 = vpack.c.bf16 %v2999_v28, %v2997_v37  ;;  %6094 = vmatmul.msk.bf16.gmra.mxu0 %vm2468_vm12, %v3397_v2 }
 0x5f9   : > { %6019 = vmatmul.msk.bf16.gmra.mxu2 %vm2468_vm12, %v3013_v46 }
 0x5fc   : > { %v3386_v39 = vpop.f32.mrf.mxu3  ;;  %v8282_v3 = vpop.f32.mrf.mxu0 }
 0x5fe   : > { %v3002_v22 = vpop.f32.mrf.mxu1 }
 0x604   : > { %v3388_v24 = vpop.f32.mrf.mxu3  ;;  %v2924_v34 = vpop.f32.mrf.mxu0 }
 0x605   : > { %v3398_v43 = vpack.c.bf16 %v3388_v24, %v3386_v39 }
 0x606   : > { %v3004_v60 = vpop.f32.mrf.mxu1 }
 0x607   : > { %v3014_v0 = vpack.c.bf16 %v3004_v60, %v3002_v22  ;;  %6095 = vmatmul.msk.bf16.gmra.mxu0 %vm2468_vm12, %v3398_v43 }
 0x609   : > { %6020 = vmatmul.msk.bf16.gmra.mxu2 %vm2468_vm12, %v3014_v0 }
 0x60c   : > { %v3391_v31 = vpop.f32.mrf.mxu3  ;;  %v8289_v4 = vpop.f32.mrf.mxu0 }
 0x60e   : > { %v3007_v59 = vpop.f32.mrf.mxu1 }
 0x614   : > { %v3393_v20 = vpop.f32.mrf.mxu3  ;;  %v2929_v48 = vpop.f32.mrf.mxu0 }
 0x615   : > { %v3399_v32 = vpack.c.bf16 %v3393_v20, %v3391_v31 }
 0x616   : > { %v3009_v38 = vpop.f32.mrf.mxu1 }
 0x617   : > { %v3015_v42 = vpack.c.bf16 %v3009_v38, %v3007_v59  ;;  %6096 = vmatmul.msk.bf16.gmra.mxu0 %vm2468_vm12, %v3399_v32  ;;  %v2541_v32 = vadd.f32 %v8200_v56, %v8197_v44  ;;  %v2546_v44 = vadd.f32 %v8214_v17, %v8203_v33 }
 0x619   : > { %6021 = vmatmul.msk.bf16.gmra.mxu2 %vm2468_vm12, %v3015_v42 }
 0x61c   : > { %v8294_v61 = vpop.f32.mrf.mxu0 }
 0x61e   : > { %v3248_v14 = vpop.f32.mrf.mxu1 }
 0x624   : > { %v3170_v63 = vpop.f32.mrf.mxu0 }
 0x626   : > { %v3250_v40 = vpop.f32.mrf.mxu1 }
 0x627   : > { %v3268_v47 = vpack.c.bf16 %v3250_v40, %v3248_v14 }
 0x629   : > { %6068 = vmatmul.msk.bf16.vlgmr.msra.gmra.mxu2 %vm2468_vm12, %v3268_v47 }
 0x62c   : > { %v2786_v58 = vpop.f32.mrf.mxu2 }
 0x62d   : > { %v2806_v45 = vadd.f32 %v2786_v58, %v8230_v19 }
 0x62e   : > { %v3253_v9 = vpop.f32.mrf.mxu1 }
 0x62f   : > { %v2934_v23 = vadd.f32 %v2914_v26, %v2806_v45 }
 0x634   : > { %v2788_v21 = vpop.f32.mrf.mxu2 }
 0x636   : > { %v3255_v50 = vpop.f32.mrf.mxu1 }
 0x637   : > { %v3269_v36 = vpack.c.bf16 %v3255_v50, %v3253_v9  ;;  %v2679_v50 = vadd.f32 %v8233_v27, %v2541_v32 }
 0x639   : > { %6069 = vmatmul.msk.bf16.gmra.mxu2 %vm2468_vm12, %v3269_v36  ;;  %v2807_v36 = vadd.f32 %v2788_v21, %v2679_v50  ;;  %v2681_v21 = vadd.f32 %v8244_v6, %v2546_v44 }
 0x63c   : > { %v2791_v55 = vpop.f32.mrf.mxu2 }
 0x63d   : > { %v2808_v51 = vadd.f32 %v2791_v55, %v8237_v29  ;;  %v3172_v29 = vpop.f32.mrf.mxu0 }
 0x63e   : > { %v3258_v10 = vpop.f32.mrf.mxu1 }
 0x63f   : > { %v2936_v57 = vadd.f32 %v2919_v62, %v2808_v51  ;;  %v2935_v51 = vadd.f32 %v8278_v25, %v2807_v36  ;;  %v2556_v36 = vadd.f32 %v8285_v41, %v8225_v5 }
 0x644   : > { %v2793_v19 = vpop.f32.mrf.mxu2 }
 0x645   : > { %v3175_v0 = vpop.f32.mrf.mxu0 }
 0x646   : > { %v3260_v37 = vpop.f32.mrf.mxu1 }
 0x647   : > { %v3270_v11 = vpack.c.bf16 %v3260_v37, %v3258_v10 }
 0x649   : > { %6070 = vmatmul.msk.bf16.gmra.mxu2 %vm2468_vm12, %v3270_v11  ;;  %v8319_v11 = vld [vmem:[%s8836_s7] ss:$0 sm:$0xff] }
 0x64c   : > { %v2796_v28 = vpop.f32.mrf.mxu2 }
 0x64d   : > { %v2810_v46 = vadd.f32 %v2796_v28, %v8252_v1  ;;  %v3177_v1 = vpop.f32.mrf.mxu0 }
 0x64e   : > { %v3263_v53 = vpop.f32.mrf.mxu1 }
 0x64f   : > { %v2938_v49 = vadd.f32 %v2924_v34, %v2810_v46 }
 0x654   : > { %v8298_v15 = vpop.f32.mrf.mxu2 }
 0x655   : > { %v3180_v62 = vpop.f32.mrf.mxu0 }
 0x656   : > { %v3265_v22 = vpop.f32.mrf.mxu1 }
 0x657   : > { %v3271_v30 = vpack.c.bf16 %v3265_v22, %v3263_v53 }
 0x659   : > { %6071 = vmatmul.msk.bf16.gmra.mxu2 %vm2468_vm12, %v3271_v30 }
 0x65c   : > { %v2801_v54 = vpop.f32.mrf.mxu2 }
 0x65d   : > { %v2812_v26 = vadd.f32 %v2801_v54, %v8259_v12  ;;  %v8304_v14 = vpop.f32.mrf.mxu0 }
 0x65f   : > { %v2940_v35 = vadd.f32 %v2929_v48, %v2812_v26 }
 0x664   : > { %v8302_v60 = vpop.f32.mrf.mxu2 }
 0x665   : > { %v3185_v40 = vpop.f32.mrf.mxu0 }
 0x66c   : > { %v3042_v52 = vpop.f32.mrf.mxu2 }
 0x66d   : > { %v3062_v59 = vadd.f32 %v3042_v52, %v2934_v23  ;;  %v8306_v34 = vpop.f32.mrf.mxu0 }
 0x66f   : > { %v3190_v16 = vadd.f32 %v3170_v63, %v3062_v59 }
 0x674   : > { %v3044_v2 = vpop.f32.mrf.mxu2 }
 0x675   : > { %v3426_v20 = vpop.f32.mrf.mxu0 }
 0x67c   : > { %v3047_v38 = vpop.f32.mrf.mxu2 }
 0x67d   : > { %v3064_v42 = vadd.f32 %v3047_v38, %v2936_v57  ;;  %v3428_v55 = vpop.f32.mrf.mxu0  ;;  %v3063_v57 = vadd.f32 %v3044_v2, %v2935_v51  ;;  %v2685_v51 = vadd.f32 %v8265_v13, %v2556_v36  ;;  %v6735_v36 = vld [vmem:[%s8837_s8 + $0x40] sm:$0xff] }
 0x67f   : > { %v3192_v39 = vadd.f32 %v3175_v0, %v3064_v42  ;;  %v3191_v28 = vadd.f32 %v3172_v29, %v3063_v57 }
 0x684   : > { %v3049_v24 = vpop.f32.mrf.mxu2 }
 0x685   : > { %v3431_v46 = vpop.f32.mrf.mxu0 }
 0x68c   : > { %v3052_v43 = vpop.f32.mrf.mxu2 }
 0x68d   : > { %v3066_v47 = vadd.f32 %v3052_v43, %v2938_v49  ;;  %v2809_v49 = vadd.f32 %v2793_v19, %v2681_v21  ;;  %v3433_v17 = vpop.f32.mrf.mxu0  ;;  %v2551_v19 = vadd.f32 %v8221_v8, %v8218_v18 }
 0x68f   : > { %v3194_v12 = vadd.f32 %v3180_v62, %v3066_v47  ;;  %v2937_v29 = vadd.f32 %v8282_v3, %v2809_v49  ;;  %v2683_v38 = vadd.f32 %v8255_v7, %v2551_v19 }
 0x691   : > { %v3065_v52 = vadd.f32 %v3049_v24, %v2937_v29  ;;  %v2811_v43 = vadd.f32 %v8298_v15, %v2683_v38 }
 0x693   : > { %v3193_v6 = vadd.f32 %v3177_v1, %v3065_v52  ;;  %v2939_v47 = vadd.f32 %v8289_v4, %v2811_v43  ;;  %v6730_v43 = vld [vmem:[%s8837_s8 + $0x18] sm:$0xff] }
 0x694   : > { %v3054_v31 = vpop.f32.mrf.mxu2 }
 0x695   : > { %v3436_v3 = vpop.f32.mrf.mxu0 }
 0x69c   : > { %v3057_v58 = vpop.f32.mrf.mxu2 }
 0x69d   : > { %v3068_v45 = vadd.f32 %v3057_v58, %v2940_v35  ;;  %v3438_v32 = vpop.f32.mrf.mxu0 }
 0x69f   : > { %v8308_v9 = vadd.f32 %v3185_v40, %v3068_v45 }
 0x6a4   : > { %v8310_v23 = vpop.f32.mrf.mxu2 }
 0x6ac   : > { %v3298_v48 = vpop.f32.mrf.mxu2 }
 0x6ad   : > { %v3318_v10 = vadd.f32 %v3298_v48, %v3190_v16 }
 0x6af   : > { %v3446_v37 = vadd.f32 %v3426_v20, %v3318_v10  ;;  %v3067_v20 = vadd.f32 %v3054_v31, %v2939_v47  ;;  %v2813_v10 = vadd.f32 %v8302_v60, %v2685_v51 }
 0x6b1   : > { %v3458_v56 = vadd.f32 %v8319_v11, %v3446_v37  ;;  %v3195_v50 = vadd.f32 %v8304_v14, %v3067_v20  ;;  %v3441_v37 = vpop.f32.mrf.mxu0 }
 0x6b3   : > { %v3474_v63 = vmul.f32 0.2, %v3458_v56  ;;  %vm3466_vm13 = vcmp.gt.f32.partialorder %v3458_v56, 0.0 }
 0x6b4   : > { %v3300_v53 = vpop.f32.mrf.mxu2 }
 0x6b5   : > { %v3319_v27 = vadd.f32 %v3300_v53, %v3191_v28  ;;  %v3482_v26 = vsel %vm3466_vm13, %v3458_v56, %v3474_v63  ;;  %v2941_v28 = vadd.f32 %v8294_v61, %v2813_v10  ;;  %v6732_v10 = vld [vmem:[%s8837_s8 + $0x28] sm:$0xff] }
 0x6b7   : > { %v3447_v25 = vadd.f32 %v3428_v55, %v3319_v27  ;;  %v3069_v13 = vadd.f32 %v8310_v23, %v2941_v28  ;;  %v6727_v23 = vld [vmem:[%s8837_s8] sm:$0xff] }
 0x6b9   : > { %v3459_v22 = vadd.f32 %v8319_v11, %v3447_v25  ;;  %v3197_v60 = vadd.f32 %v8306_v34, %v3069_v13  ;;  %v3443_v25 = vpop.f32.mrf.mxu0  ;;  %v3519_v34 = vld [vmem:[%s8838_s9] sm:$0xf] }
 0x6ba   : > { %v3572_v29 = vsel %vm2481_vm2, %v3519_v34, 0  ;;  %v6173_v13 = vld [vmem:[%s8838_s9 + $0x20] sm:$0xf] }
 0x6bb   : > { %vm3467_vm14 = vcmp.gt.f32.partialorder %v3459_v22, 0.0  ;;  %v3475_v30 = vmul.f32 0.2, %v3459_v22 }
 0x6bc   : > { %v3303_v54 = vpop.f32.mrf.mxu2 }
 0x6bd   : > { %v3483_v35 = vsel %vm3467_vm14, %v3459_v22, %v3475_v30  ;;  %v3320_v0 = vadd.f32 %v3303_v54, %v3192_v39 }
 0x6be   : > { %v8327_v33 = vpack.c.bf16 %v3483_v35, %v3482_v26  ;;  %v6128_v26 = vld [vmem:[%s8838_s9 + $0xc] sm:$0xf] }
 0x6bf   : > { %v3448_v59 = vadd.f32 %v3431_v46, %v3320_v0  ;;  %v3670_v35 = vsel %vm2481_vm2, %v6128_v26, 0  ;;  %v6729_v0 = vld [vmem:[%s8837_s8 + $0x10] sm:$0xff] }
 0x6c1   : > { %v3460_v2 = vadd.f32 %v8319_v11, %v3448_v59  ;;  %v6119_v59 = vld [vmem:[%s8838_s9 + $0x8] sm:$0xf] }
 0x6c3   : > { %v3476_v39 = vmul.f32 0.2, %v3460_v2  ;;  %vm3468_vm15 = vcmp.gt.f32.partialorder %v3460_v2, 0.0 }
 0x6c4   : > { %v3305_v16 = vpop.f32.mrf.mxu2 }
 0x6c5   : > { %v3321_v62 = vadd.f32 %v3305_v16, %v3193_v6  ;;  %v3484_v58 = vsel %vm3468_vm15, %v3460_v2, %v3476_v39  ;;  %v3620_v6 = vsel %vm2481_vm2, %v6119_v59, 0 }
 0x6c7   : > { %v3449_v42 = vadd.f32 %v3433_v17, %v3321_v62  ;;  %v6109_v17 = vld [vmem:[%s8838_s9 + $0x4] sm:$0xf] }
 0x6c8   : > { %v3552_v52 = vsel %vm2481_vm2, %v6109_v17, 0 }
 0x6c9   : > { %v3461_v40 = vadd.f32 %v8319_v11, %v3449_v42  ;;  %3561 = vmatpush.bf16.msrb.mxu3 %v3552_v52 }
 0x6cb   : > { %vm3469_vm0 = vcmp.gt.f32.partialorder %v3461_v40, 0.0  ;;  %v3477_v24 = vmul.f32 0.2, %v3461_v40 }
 0x6cc   : > { %v3308_v1 = vpop.f32.mrf.mxu2 }
 0x6cd   : > { %v3485_v18 = vsel %vm3469_vm0, %v3461_v40, %v3477_v24  ;;  %v3322_v8 = vadd.f32 %v3308_v1, %v3194_v12  ;;  %3629 = vmatpush.bf16.msra.mxu3 %v3620_v6  ;;  %v6731_v24 = vld [vmem:[%s8837_s8 + $0x20] sm:$0xff] }
 0x6ce   : > { %v8336_v45 = vpack.c.bf16 %v3485_v18, %v3484_v58  ;;  %v6733_v58 = vld [vmem:[%s8837_s8 + $0x30] sm:$0xff] }
 0x6cf   : > { %v3450_v7 = vadd.f32 %v3436_v3, %v3322_v8 }
 0x6d1   : > { %v3462_v55 = vadd.f32 %v8319_v11, %v3450_v7  ;;  %v6137_v7 = vld [vmem:[%s8838_s9 + $0x10] sm:$0xf] }
 0x6d3   : > { %v3478_v12 = vmul.f32 0.2, %v3462_v55  ;;  %vm3470_vm1 = vcmp.gt.f32.partialorder %v3462_v55, 0.0 }
 0x6d4   : > { %v3310_v15 = vpop.f32.mrf.mxu2 }
 0x6d5   : > { %v3323_v48 = vadd.f32 %v3310_v15, %v3195_v50  ;;  %v3486_v46 = vsel %vm3470_vm1, %v3462_v55, %v3478_v12  ;;  %v3720_v50 = vsel %vm2481_vm2, %v6137_v7, 0 }
 0x6d7   : > { %v3451_v4 = vadd.f32 %v3438_v32, %v3323_v48 }
 0x6d9   : > { %v3463_v57 = vadd.f32 %v8319_v11, %v3451_v4 }
 0x6db   : > { %vm3471_vm3 = vcmp.gt.f32.partialorder %v3463_v57, 0.0  ;;  %v3479_v31 = vmul.f32 0.2, %v3463_v57 }
 0x6dc   : > { %v3313_v14 = vpop.f32.mrf.mxu2 }
 0x6dd   : > { %v3487_v5 = vsel %vm3471_vm3, %v3463_v57, %v3479_v31  ;;  %v3324_v41 = vadd.f32 %v3313_v14, %v8308_v9  ;;  %v6155_v14 = vld [vmem:[%s8838_s9 + $0x18] sm:$0xf] }
 0x6de   : > { %v8347_v53 = vpack.c.bf16 %v3487_v5, %v3486_v46  ;;  %v6146_v5 = vld [vmem:[%s8838_s9 + $0x14] sm:$0xf] }
 0x6df   : > { %v3452_v44 = vadd.f32 %v3441_v37, %v3324_v41  ;;  %v6734_v37 = vld [vmem:[%s8837_s8 + $0x38] sm:$0xff]  ;;  %v3770_v41 = vsel %vm2481_vm2, %v6146_v5, 0 }
 0x6e1   : > { %v3464_v27 = vadd.f32 %v8319_v11, %v3452_v44 }
 0x6e3   : > { %v3480_v63 = vmul.f32 0.2, %v3464_v27  ;;  %vm3472_vm4 = vcmp.gt.f32.partialorder %v3464_v27, 0.0 }
 0x6e4   : > { %v3315_v56 = vpop.f32.mrf.mxu2 }
 0x6e5   : > { %v3325_v21 = vadd.f32 %v3315_v56, %v3197_v60  ;;  %v3488_v9 = vsel %vm3472_vm4, %v3464_v27, %v3480_v63  ;;  %v3920_v60 = vsel %vm2481_vm2, %v6173_v13, 0 }
 0x6e7   : > { %v3453_v49 = vadd.f32 %v3443_v25, %v3325_v21  ;;  %v6164_v25 = vld [vmem:[%s8838_s9 + $0x1c] sm:$0xf] }
 0x6e8   : > { %v3870_v63 = vsel %vm2481_vm2, %v6164_v25, 0 }
 0x6e9   : > { %v3465_v61 = vadd.f32 %v8319_v11, %v3453_v49  ;;  %v6728_v11 = vld [vmem:[%s8837_s8 + $0x8] sm:$0xff] }
 0x6eb   : > { %vm3473_vm5 = vcmp.gt.f32.partialorder %v3465_v61, 0.0  ;;  %v3481_v22 = vmul.f32 0.2, %v3465_v61 }
 0x6ed   : > { %v3489_v30 = vsel %vm3473_vm5, %v3465_v61, %v3481_v22 }
 0x6ee   : > { %v8353_v54 = vpack.c.bf16 %v3489_v30, %v3488_v9 }
 0x6f0   : > { %3508 = vmatpush.bf16.msrb.mxu1 %v8353_v54  ;;  %3535 = vmatpush.bf16.msrb.mxu2 %v8353_v54 }
 0x6f1   : > { %3803 = vmatpush.bf16.msra.mxu0 %v8353_v54 }
 0x6f4   : > { %3509 = vmatpush.bf16.msrb.mxu1 %v8347_v53  ;;  %3536 = vmatpush.bf16.msrb.mxu2 %v8347_v53 }
 0x6f5   : > { %3804 = vmatpush.bf16.msra.mxu0 %v8347_v53 }
 0x6f8   : > { %3510 = vmatpush.bf16.msrb.mxu1 %v8336_v45  ;;  %3537 = vmatpush.bf16.msrb.mxu2 %v8336_v45 }
 0x6f9   : > { %3805 = vmatpush.bf16.msra.mxu0 %v8336_v45 }
 0x6fc   : > { %3511 = vmatpush.bf16.msrb.mxu1 %v8327_v33  ;;  %3538 = vmatpush.bf16.msrb.mxu2 %v8327_v33 }
 0x6fd   : > { %3806 = vmatpush.bf16.msra.mxu0 %v8327_v33 }
 0x6ff   : > { %6101 = vmatmul.msk.bf16.vlgmr.msrb.gmra.mxu1 %vm2345_vm11, %v6727_v23  ;;  %6108 = vmatmul.msk.bf16.vlgmr.msrb.gmra.mxu2 %vm2345_vm11, %v6728_v11 }
 0x700   : > { %3603 = vmatpush.bf16.msra.mxu2 %v8353_v54  ;;  %3581 = vmatpush.bf16.msra.mxu1 %v3572_v29 }
 0x701   : > { %3903 = vmatpush.bf16.msrb.mxu0 %v8353_v54 }
 0x702   : > { %6154 = vmatmul.msk.bf16.vlgmr.msra.gmra.mxu0 %vm2345_vm11, %v6733_v58 }
 0x704   : > { %3653 = vmatpush.bf16.msrb.mxu1 %v8353_v54  ;;  %3604 = vmatpush.bf16.msra.mxu2 %v8347_v53 }
 0x705   : > { %3904 = vmatpush.bf16.msrb.mxu0 %v8347_v53 }
 0x708   : > { %3654 = vmatpush.bf16.msrb.mxu1 %v8347_v53  ;;  %3605 = vmatpush.bf16.msra.mxu2 %v8336_v45 }
 0x709   : > { %3905 = vmatpush.bf16.msrb.mxu0 %v8336_v45 }
 0x70c   : > { %3655 = vmatpush.bf16.msrb.mxu1 %v8336_v45  ;;  %3606 = vmatpush.bf16.msra.mxu2 %v8327_v33 }
 0x70d   : > { %3906 = vmatpush.bf16.msrb.mxu0 %v8327_v33 }
 0x70f   : > { %6118 = vmatmul.msk.bf16.vlgmr.msra.gmra.mxu2 %vm2345_vm11, %v6729_v0 }
 0x710   : > { %3679 = vmatpush.bf16.msrb.mxu2 %v3670_v35  ;;  %3656 = vmatpush.bf16.msrb.mxu1 %v8327_v33  ;;  %v6739_v35 = vld [vmem:[%s8841_s12 + $0x8] sm:$0xff] }
 0x711   : > { %4024 = vmatpush.bf16.msra.mxu0 %v6739_v35 }
 0x712   : > { %6172 = vmatmul.msk.bf16.vlgmr.msrb.gmra.mxu0 %vm2345_vm11, %v6735_v36 }
 0x714   : > { %3753 = vmatpush.bf16.msra.mxu2 %v8353_v54 }
 0x718   : > { %3754 = vmatpush.bf16.msra.mxu2 %v8347_v53 }
 0x71c   : > { %3755 = vmatpush.bf16.msra.mxu2 %v8336_v45 }
 0x720   : > { %3756 = vmatpush.bf16.msra.mxu2 %v8327_v33 }
 0x77c   : > { %v3513_v16 = vpop.f32.mrf.mxu1 }
 0x782   : > { %v3540_v19 = vpop.f32.mrf.mxu2 }
 0x784   : > { %v3515_v2 = vpop.f32.mrf.mxu1 }
 0x785   : > { %v3518_v62 = vpack.c.bf16 %v3515_v2, %v3513_v16 }
 0x787   : > { %6111 = vmatmul.msk.bf16.vlgmr.msra.gmra.mxu1 %vm2468_vm12, %v3518_v62 }
 0x788   : > { %3729 = vmatpush.bf16.msra.mxu1 %v3720_v50 }
 0x78a   : > { %v3542_v38 = vpop.f32.mrf.mxu2 }
 0x78b   : > { %v3545_v42 = vpack.c.bf16 %v3542_v38, %v3540_v19 }
 0x78d   : > { %6110 = vmatmul.msk.bf16.vlgmr.msrb.gmra.mxu3 %vm2468_vm12, %v3545_v42 }
 0x78e   : > { %3703 = vmatpush.bf16.msrb.mxu3 %v8353_v54 }
 0x792   : > { %3704 = vmatpush.bf16.msrb.mxu3 %v8347_v53  ;;  %v3608_v3 = vpop.f32.mrf.mxu2 }
 0x796   : > { %3705 = vmatpush.bf16.msrb.mxu3 %v8336_v45 }
 0x797   : > { %6127 = vmatmul.msk.bf16.vlgmr.msrb.gmra.mxu1 %vm2345_vm11, %v6730_v43 }
 0x79a   : > { %3706 = vmatpush.bf16.msrb.mxu3 %v8327_v33  ;;  %v3610_v39 = vpop.f32.mrf.mxu2 }
 0x79b   : > { %v3613_v40 = vpack.c.bf16 %v3610_v39, %v3608_v3 }
 0x79d   : > { %6120 = vmatmul.msk.bf16.vlgmr.msra.gmra.mxu3 %vm2468_vm12, %v3613_v40  ;;  %v6896_v40 = vld [vmem:[%s8839_s10] ss:$0 sm:$0xff] }
 0x79e   : > { %3779 = vmatpush.bf16.msra.mxu3 %v3770_v41  ;;  %v6742_v41 = vld [vmem:[%s8840_s11 + $0x18] sm:$0xff] }
 0x7ad   : > { %6136 = vmatmul.msk.bf16.vlgmr.msrb.gmra.mxu3 %vm2345_vm11, %v6731_v24 }
 0x7ae   : > { %3879 = vmatpush.bf16.msrb.mxu3 %v3870_v63  ;;  %v6749_v63 = vld [vmem:[%s8841_s12 + $0x30] sm:$0xff] }
 0x804   : > { %v3583_v1 = vpop.f32.mrf.mxu1 }
 0x80c   : > { %v8426_v47 = vpop.f32.mrf.mxu1 }
 0x810   : > { %v3563_v18 = vpop.f32.mrf.mxu3 }
 0x811   : > { %v3584_v8 = vadd.f32 %v3583_v1, %v3563_v18 }
 0x814   : > { %v3658_v20 = vpop.f32.mrf.mxu1 }
 0x818   : > { %v8435_v32 = vpop.f32.mrf.mxu3 }
 0x819   : > { %v3586_v59 = vadd.f32 %v8426_v47, %v8435_v32 }
 0x81c   : > { %v3660_v15 = vpop.f32.mrf.mxu1 }
 0x81d   : > { %v3663_v55 = vpack.c.bf16 %v3660_v15, %v3658_v20 }
 0x81f   : > { %6129 = vmatmul.msk.bf16.vlgmr.msrb.gmra.mxu2 %vm2468_vm12, %v3663_v55  ;;  %v6736_v55 = vld [vmem:[%s8840_s11] sm:$0xff] }
 0x820   : > { %3853 = vmatpush.bf16.msrb.mxu2 %v8353_v54  ;;  %v3631_v48 = vpop.f32.mrf.mxu3 }
 0x821   : > { %v3636_v51 = vadd.f32 %v3631_v48, %v3584_v8  ;;  %v6738_v48 = vld [vmem:[%s8840_s11 + $0x8] sm:$0xff] }
 0x824   : > { %3854 = vmatpush.bf16.msrb.mxu2 %v8347_v53 }
 0x828   : > { %3855 = vmatpush.bf16.msrb.mxu2 %v8336_v45  ;;  %v3633_v4 = vpop.f32.mrf.mxu3  ;;  %v3808_v45 = vpop.f32.mrf.mxu0 }
 0x829   : > { %v3637_v16 = vadd.f32 %v3633_v4, %v3586_v59  ;;  %v6744_v4 = vld [vmem:[%s8840_s11 + $0x20] sm:$0xff] }
 0x82c   : > { %3856 = vmatpush.bf16.msrb.mxu2 %v8327_v33  ;;  %v3820_v33 = vsel %vm2481_vm2, %v6155_v14, 0 }
 0x82d   : > { %3829 = vmatpush.bf16.msrb.mxu1 %v3820_v33 }
 0x82f   : > { %6145 = vmatmul.msk.bf16.vlgmr.msra.gmra.mxu2 %vm2345_vm11, %v6732_v10  ;;  %v6737_v10 = vld [vmem:[%s8841_s12] sm:$0xff] }
 0x830   : > { %v3708_v12 = vpop.f32.mrf.mxu3  ;;  %v3810_v28 = vpop.f32.mrf.mxu0 }
 0x831   : > { %v3813_v46 = vpack.c.bf16 %v3810_v28, %v3808_v45  ;;  %v6752_v45 = vld [vmem:[%s8840_s11 + $0x40] sm:$0xff] }
 0x838   : > { %v3710_v57 = vpop.f32.mrf.mxu3  ;;  %v3908_v53 = vpop.f32.mrf.mxu0 }
 0x839   : > { %v3713_v31 = vpack.c.bf16 %v3710_v57, %v3708_v12  ;;  %v6748_v12 = vld [vmem:[%s8840_s11 + $0x30] sm:$0xff] }
 0x83a   : > { %v6741_v57 = vld [vmem:[%s8841_s12 + $0x10] sm:$0xff] }
 0x83b   : > { %6138 = vmatmul.msk.bf16.vlgmr.msra.gmra.mxu1 %vm2468_vm12, %v3713_v31 }
 0x83c   : > { %3929 = vmatpush.bf16.msra.mxu1 %v3920_v60  ;;  %v6750_v60 = vld [vmem:[%s8840_s11 + $0x38] sm:$0xff] }
 0x83f   : > { %6163 = vmatmul.msk.bf16.vlgmr.msrb.gmra.mxu2 %vm2345_vm11, %v6734_v37  ;;  %vm5286_vm11 = vcmask 122880  }
 0x840   : > { %v3910_v27 = vpop.f32.mrf.mxu0 }
 0x841   : > { %v3913_v21 = vpack.c.bf16 %v3910_v27, %v3908_v53  ;;  %v6745_v27 = vld [vmem:[%s8841_s12 + $0x20] sm:$0xff] }
 0x84b   : > { %6156 = vmatmul.msk.bf16.vlgmr.msrb.gmra.mxu1 %vm2468_vm12, %v3813_v46 }
 0x84c   : > { %4047 = vmatpush.bf16.msrb.mxu1 %v6737_v10 }
 0x85b   : > { %6174 = vmatmul.msk.bf16.vlgmr.msra.gmra.mxu1 %vm2468_vm12, %v3913_v21 }
 0x8a2   : > { %v3681_v44 = vpop.f32.mrf.mxu2 }
 0x8a3   : > { %v3686_v56 = vadd.f32 %v3681_v44, %v3636_v51  ;;  %v6740_v51 = vld [vmem:[%s8840_s11 + $0x10] sm:$0xff]  ;;  %v6746_v44 = vld [vmem:[%s8840_s11 + $0x28] sm:$0xff] }
 0x8aa   : > { %v3683_v49 = vpop.f32.mrf.mxu2 }
 0x8ab   : > { %v3687_v19 = vadd.f32 %v3683_v49, %v3637_v16 }
 0x8b2   : > { %v3758_v61 = vpop.f32.mrf.mxu2 }
 0x8b8   : > { %v3731_v23 = vpop.f32.mrf.mxu1 }
 0x8b9   : > { %v3736_v52 = vadd.f32 %v3731_v23, %v3686_v56 }
 0x8ba   : > { %v3760_v22 = vpop.f32.mrf.mxu2 }
 0x8bb   : > { %v3763_v9 = vpack.c.bf16 %v3760_v22, %v3758_v61 }
 0x8bd   : > { %6147 = vmatmul.msk.bf16.vlgmr.msra.gmra.mxu3 %vm2468_vm12, %v3763_v9  ;;  %v6743_v9 = vld [vmem:[%s8841_s12 + $0x18] sm:$0xff] }
 0x8be   : > { %4153 = vmatpush.bf16.msra.mxu1 %v6743_v9  ;;  %v6762_v9 = vld [vmem:[#allocation6 + $0x34] sm:$0xf0] }
 0x8c0   : > { %v3733_v11 = vpop.f32.mrf.mxu1 }
 0x8c1   : > { %v3737_v42 = vadd.f32 %v3733_v11, %v3687_v19 }
 0x8c2   : > { %v3858_v30 = vpop.f32.mrf.mxu2 }
 0x8c8   : > { %v3831_v29 = vpop.f32.mrf.mxu1 }
 0x8ca   : > { %v3860_v54 = vpop.f32.mrf.mxu2 }
 0x8cb   : > { %v3863_v34 = vpack.c.bf16 %v3860_v54, %v3858_v30 }
 0x8cd   : > { %6165 = vmatmul.msk.bf16.vlgmr.msrb.gmra.mxu3 %vm2468_vm12, %v3863_v34  ;;  %v6753_v34 = vld [vmem:[%s8841_s12 + $0x40] sm:$0xff] }
 0x8d0   : > { %v3833_v0 = vpop.f32.mrf.mxu1 }
 0x8d8   : > { %v3931_v38 = vpop.f32.mrf.mxu1 }
 0x8e0   : > { %v3933_v8 = vpop.f32.mrf.mxu1 }
 0x940   : > { %v3781_v26 = vpop.f32.mrf.mxu3 }
 0x941   : > { %v3786_v6 = vadd.f32 %v3781_v26, %v3736_v52 }
 0x943   : > { %v3836_v2 = vadd.f32 %v3831_v29, %v3786_v6  ;;  %v6747_v29 = vld [vmem:[%s8841_s12 + $0x28] sm:$0xff] }
 0x948   : > { %v3783_v17 = vpop.f32.mrf.mxu3 }
 0x949   : > { %v3787_v43 = vadd.f32 %v3783_v17, %v3737_v42  ;;  %v6751_v17 = vld [vmem:[%s8841_s12 + $0x38] sm:$0xff] }
 0x94b   : > { %v3837_v24 = vadd.f32 %v3833_v0, %v3787_v43 }
 0x950   : > { %v3881_v62 = vpop.f32.mrf.mxu3 }
 0x951   : > { %v3886_v3 = vadd.f32 %v3881_v62, %v3836_v2 }
 0x953   : > { %v3936_v39 = vadd.f32 %v3931_v38, %v3886_v3 }
 0x955   : > { %v3942_v58 = vadd.f32 %v6896_v40, %v3936_v39 }
 0x957   : > { %v3946_v20 = vmul.f32 0.2, %v3942_v58  ;;  %vm3944_vm2 = vcmp.gt.f32.partialorder %v3942_v58, 0.0 }
 0x958   : > { %v3883_v1 = vpop.f32.mrf.mxu3 }
 0x959   : > { %v3887_v18 = vadd.f32 %v3883_v1, %v3837_v24  ;;  %v3948_v50 = vsel %vm3944_vm2, %v3942_v58, %v3946_v20 }
 0x95b   : > { %v3937_v47 = vadd.f32 %v3933_v8, %v3887_v18 }
 0x95d   : > { %v3943_v7 = vadd.f32 %v6896_v40, %v3937_v47 }
 0x95f   : > { %vm3945_vm6 = vcmp.gt.f32.partialorder %v3943_v7, 0.0  ;;  %v3947_v32 = vmul.f32 0.2, %v3943_v7 }
 0x961   : > { %v3949_v15 = vsel %vm3945_vm6, %v3943_v7, %v3947_v32 }
 0x962   : > { %v3950_v36 = vpack.c.bf16 %v3949_v15, %v3948_v50  ;;  %v6755_v50 = vld [vmem:[#allocation6 + $0x4] sm:$0xf] }
 0x963   : > { %v6306_v15 = vld [vmem:[#allocation6 + $0x20] sm:$0xf0] }
 0x964   : > { %3969 = vmatpush.bf16.msra.mxu2 %v3950_v36  ;;  %3997 = vmatpush.bf16.msra.mxu3 %v3950_v36 }
 0x965   : > { %4126 = vmatpush.bf16.msrb.mxu0 %v3950_v36 }
 0x967   : > { %6179 = vmatmul.msk.bf16.vlgmr.msra.gmra.mxu2 %vm3958_vm7, %v6736_v55  ;;  %6186 = vmatmul.msk.bf16.vlgmr.msra.gmra.mxu3 %vm3958_vm7, %v6738_v48  ;;  %v6309_v48 = vor.u32 %v6755_v50, %v6306_v15  ;;  %v6330_v50 = vld [vmem:[#allocation6 + $0x38] sm:$0xf0] }
 0x968   : > { %4072 = vmatpush.bf16.msrb.mxu2 %v3950_v36  ;;  %4099 = vmatpush.bf16.msrb.mxu3 %v6741_v57 }
 0x96c   : > { %4180 = vmatpush.bf16.msra.mxu2 %v3950_v36  ;;  %4207 = vmatpush.bf16.msra.mxu3 %v6745_v27  ;;  %v7054_v27 = vmov 16.0  }
 0x96d   : > { %6898 = vrcp.f32 %v7054_v27  ;;  %v6765_v27 = vld [vmem:[%s8847_s18 + $0x10] sm:$0xff] }
 0x977   : > { %6205 = vmatmul.msk.bf16.vlgmr.msrb.gmra.mxu2 %vm3958_vm7, %v6740_v51  ;;  %v6312_v51 = vld [vmem:[#allocation6 + $0x8] sm:$0xf] }
 0x978   : > { %4288 = vmatpush.bf16.msrb.mxu2 %v3950_v36 }
 0x987   : > { %6233 = vmatmul.msk.bf16.vlgmr.msra.gmra.mxu2 %vm3958_vm7, %v6744_v4  ;;  %v6760_v4 = vld [vmem:[#allocation6 + $0x24] sm:$0xf0] }
 0x988   : > { %4396 = vmatpush.bf16.msra.mxu2 %v3950_v36  ;;  %v6313_v57 = vor.u32 %v6760_v4, %v6312_v51  ;;  %v6786_v51 = vld [vmem:[%s8847_s18 + $0xb8] sm:$0xff] }
 0x989   : > { %v6770_v4 = vld [vmem:[%s8847_s18 + $0x38] sm:$0xff] }
 0x997   : > { %6261 = vmatmul.msk.bf16.vlgmr.msrb.gmra.mxu2 %vm3958_vm7, %v6748_v12 }
 0x998   : > { %4576 = vmatpush.bf16.msrb.mxu2 %v6309_v48  ;;  %v6778_v48 = vld [vmem:[%s8847_s18 + $0x78] sm:$0xff] }
 0x9a7   : > { %6289 = vmatmul.msk.bf16.vlgmr.msra.gmra.mxu2 %vm3958_vm7, %v6752_v45 }
 0x9ea   : > { %v3999_v31 = vpop.f32.mrf.mxu3  ;;  %v3971_v37 = vpop.f32.mrf.mxu2 }
 0x9f2   : > { %v4001_v14 = vpop.f32.mrf.mxu3  ;;  %v3973_v33 = vpop.f32.mrf.mxu2 }
 0x9f3   : > { %v4004_v28 = vpack.c.bf16 %v4001_v14, %v3999_v31  ;;  %v3976_v46 = vpack.c.bf16 %v3973_v33, %v3971_v37  ;;  %v8557_v37 = vld [vmem:[%s677_s27] sm:$0x1]  ;;  %s669_s27 = scalar_lea.vmem [#allocation8], %s5410_s30 }
 0x9f4   : > { %6335 = vmatmul.msk.bf16.vlgmr.msrb.gmra.mxu2 %vm3958_vm7, %v8557_v37  ;;  %s5309_s23 = sshll.u32 %s669_s27, 4  ;;  %s5310_s23 = int_to_ptr.vmem [resolvable:$true] %s5309_s23 }
 0x9f5   : > { %6193 = vmatmul.msk.bf16.vlgmr.msra.gmra.mxu0 %vm3958_vm7, %v4004_v28  ;;  %6198 = vmatmul.msk.bf16.vlgmr.msrb.gmra.mxu1 %vm3958_vm7, %v3976_v46 }
 0x9f6   : > { %4234 = vmatpush.bf16.msra.mxu0 %v3950_v36  ;;  %4261 = vmatpush.bf16.msrb.mxu1 %v6747_v29 }
 0x9fa   : > { %v4074_v5 = vpop.f32.mrf.mxu2 }
 0xa02   : > { %v4076_v53 = vpop.f32.mrf.mxu2 }
 0xa03   : > { %v4079_v13 = vpack.c.bf16 %v4076_v53, %v4074_v5  ;;  %v6754_v5 = vld [vmem:[%s8843_s14] sm:$0xff] }
 0xa04   : > { %v6759_v53 = vld [vmem:[#allocation6 + $0x1c] sm:$0xf0] }
 0xa05   : > { %6219 = vmatmul.msk.bf16.vlgmr.msrb.gmra.mxu0 %vm3958_vm7, %v6742_v41  ;;  %6212 = vmatmul.msk.bf16.vlgmr.msrb.gmra.mxu3 %vm3958_vm7, %v4079_v13  ;;  %v6304_v41 = vld [vmem:[#allocation6] sm:$0xf] }
 0xa06   : > { %4342 = vmatpush.bf16.msrb.mxu0 %v3950_v36  ;;  %4315 = vmatpush.bf16.msrb.mxu3 %v6749_v63 }
 0xa0a   : > { %v4182_v56 = vpop.f32.mrf.mxu2 }
 0xa12   : > { %v4184_v21 = vpop.f32.mrf.mxu2 }
 0xa13   : > { %v4187_v25 = vpack.c.bf16 %v4184_v21, %v4182_v56  ;;  %v6305_v56 = vor.u32 %v6759_v53, %v6304_v41  ;;  %v6756_v21 = vld [vmem:[#allocation6 + $0xc] sm:$0xf]  ;;  %v6774_v41 = vld [vmem:[%s8847_s18 + $0x58] sm:$0xff] }
 0xa14   : > { %v6782_v53 = vld [vmem:[%s8847_s18 + $0x98] sm:$0xff] }
 0xa15   : > { %6247 = vmatmul.msk.bf16.vlgmr.msra.gmra.mxu0 %vm3958_vm7, %v6746_v44  ;;  %6240 = vmatmul.msk.bf16.vlgmr.msra.gmra.mxu3 %vm3958_vm7, %v4187_v25  ;;  %v6314_v25 = vld [vmem:[#allocation6 + $0x28] sm:$0xf0] }
 0xa16   : > { %4423 = vmatpush.bf16.msra.mxu3 %v6753_v34  ;;  %4481 = vmatpush.bf16.msra.mxu0 %v6754_v5  ;;  %v6317_v63 = vor.u32 %v6756_v21, %v6314_v25  ;;  %v6794_v5 = vld [vmem:[%s8847_s18 + $0xf8] sm:$0xff]  ;;  %v6792_v21 = vld [vmem:[%s8847_s18 + $0xe8] sm:$0xff] }
 0xa17   : > { %v6772_v25 = vld [vmem:[%s8847_s18 + $0x48] sm:$0xff] }
 0xa1a   : > { %v4290_v49 = vpop.f32.mrf.mxu2 }
 0xa22   : > { %v4292_v61 = vpop.f32.mrf.mxu2 }
 0xa23   : > { %v4295_v22 = vpack.c.bf16 %v4292_v61, %v4290_v49  ;;  %v6757_v49 = vld [vmem:[#allocation6 + $0x14] sm:$0xf] }
 0xa24   : > { %v6322_v61 = vld [vmem:[#allocation6 + $0x30] sm:$0xf0] }
 0xa25   : > { %6275 = vmatmul.msk.bf16.vlgmr.msrb.gmra.mxu0 %vm3958_vm7, %v6750_v60  ;;  %6268 = vmatmul.msk.bf16.vlgmr.msrb.gmra.mxu3 %vm3958_vm7, %v4295_v22  ;;  %v6897_v60 = vld [vmem:[%s8842_s13] ss:$0 sm:$0xff]  ;;  %v6328_v22 = vld [vmem:[#allocation6 + $0x18] sm:$0xf]  ;;  %v6325_v34 = vor.u32 %v6757_v49, %v6322_v61  ;;  %v6780_v49 = vld [vmem:[%s8847_s18 + $0x88] sm:$0xff] }
 0xa26   : > { %4589 = vmatpush.bf16.msrb.mxu3 %v6313_v57  ;;  %4602 = vmatpush.bf16.msrb.mxu0 %v6317_v63  ;;  %v6769_v57 = vld [vmem:[%s8847_s18 + $0x30] sm:$0xff]  ;;  %v6764_v63 = vld [vmem:[%s8847_s18 + $0x8] sm:$0xff]  ;;  %v6791_v61 = vld [vmem:[%s8847_s18 + $0xe0] sm:$0xff] }
 0xa27   : > { %4628 = vmatpush.bf16.msra.mxu2 %v6325_v34  ;;  %v6763_v34 = vld [vmem:[%s8847_s18] sm:$0xff] }
 0xa2a   : > { %v4398_v30 = vpop.f32.mrf.mxu2  ;;  %6339 = vmatmul.msk.bf16.vlgmr.msra.gmra.mxu2 %vm3958_vm7, %v8557_v37 }
 0xa2b   : > { %5194 = vmatpush.bf16.msrb.mxu2 %v6778_v48  ;;  %v6825_v48 = vld [vmem:[%s8847_s18 + $0x1f0] sm:$0xff] }
 0xa32   : > { %v4400_v23 = vpop.f32.mrf.mxu2 }
 0xa33   : > { %v4403_v11 = vpack.c.bf16 %v4400_v23, %v4398_v30  ;;  %v6329_v23 = vor.u32 %v6762_v9, %v6328_v22  ;;  %v6771_v22 = vld [vmem:[%s8847_s18 + $0x40] sm:$0xff] }
 0xa34   : > { %v6779_v9 = vld [vmem:[%s8847_s18 + $0x80] sm:$0xff] }
 0xa35   : > { %6296 = vmatmul.msk.bf16.vlgmr.msra.gmra.mxu3 %vm3958_vm7, %v4403_v11 }
 0xa36   : > { %4641 = vmatpush.bf16.msra.mxu3 %v6329_v23  ;;  %v6790_v23 = vld [vmem:[%s8847_s18 + $0xd8] sm:$0xff] }
 0xa45   : > { %6336 = vmatmul.msk.bf16.vlgmr.msrb.gmra.mxu3 %vm3958_vm7, %v8557_v37 }
 0xa46   : > { %5207 = vmatpush.bf16.msrb.mxu3 %v6786_v51 }
 0xa55   : > { %6340 = vmatmul.msk.bf16.vlgmr.msra.gmra.mxu3 %vm3958_vm7, %v8557_v37 }
 0xa72   : > { %v4026_v54 = vpop.f32.mrf.mxu0  ;;  %v4049_v42 = vpop.f32.mrf.mxu1 }
 0xa73   : > { %v4050_v8 = vadd.f32 %v4049_v42, %v4026_v54  ;;  %v6320_v42 = vld [vmem:[#allocation6 + $0x10] sm:$0xf] }
 0xa7a   : > { %v4028_v26 = vpop.f32.mrf.mxu0  ;;  %v4051_v43 = vpop.f32.mrf.mxu1 }
 0xa7b   : > { %v4052_v36 = vadd.f32 %v4051_v43, %v4028_v26  ;;  %v6899_v26 = vpop.eup %6898 }
 0xa7c   : > { %vm4458_vm10 = vweird.f32 %v6899_v26 }
 0xa82   : > { %v4128_v35 = vpop.f32.mrf.mxu0 }
 0xa88   : > { %v4101_v38 = vpop.f32.mrf.mxu3 }
 0xa89   : > { %v4106_v47 = vadd.f32 %v4101_v38, %v4050_v8 }
 0xa8a   : > { %v4130_v0 = vpop.f32.mrf.mxu0 }
 0xa8b   : > { %v4133_v52 = vpack.c.bf16 %v4130_v0, %v4128_v35 }
 0xa8d   : > { %6226 = vmatmul.msk.bf16.vlgmr.msra.gmra.mxu1 %vm3958_vm7, %v4133_v52 }
 0xa8e   : > { %4369 = vmatpush.bf16.msra.mxu1 %v6751_v17 }
 0xa90   : > { %v4103_v3 = vpop.f32.mrf.mxu3 }
 0xa91   : > { %v4107_v10 = vadd.f32 %v4103_v3, %v4052_v36  ;;  %v6761_v3 = vld [vmem:[#allocation6 + $0x2c] sm:$0xf0] }
 0xa92   : > { %v4236_v59 = vpop.f32.mrf.mxu0 }
 0xa98   : > { %v4209_v39 = vpop.f32.mrf.mxu3 }
 0xa9a   : > { %v4238_v6 = vpop.f32.mrf.mxu0 }
 0xa9b   : > { %v4241_v16 = vpack.c.bf16 %v4238_v6, %v4236_v59  ;;  %v4454_v59 = vmul.f32 16.0, %v6899_v26 }
 0xa9d   : > { %6254 = vmatmul.msk.bf16.vlgmr.msrb.gmra.mxu1 %vm3958_vm7, %v4241_v16 }
 0xa9e   : > { %4563 = vmatpush.bf16.msrb.mxu1 %v6305_v56  ;;  %v6781_v56 = vld [vmem:[%s8847_s18 + $0x90] sm:$0xff] }
 0xaa0   : > { %v4211_v24 = vpop.f32.mrf.mxu3 }
 0xaa2   : > { %v4344_v19 = vpop.f32.mrf.mxu0 }
 0xaa8   : > { %v4317_v58 = vpop.f32.mrf.mxu3 }
 0xaaa   : > { %v4346_v2 = vpop.f32.mrf.mxu0 }
 0xaab   : > { %v4349_v62 = vpack.c.bf16 %v4346_v2, %v4344_v19  ;;  %v4455_v2 = vsub.f32 1.0, %v4454_v59 }
 0xaad   : > { %6282 = vmatmul.msk.bf16.vlgmr.msra.gmra.mxu1 %vm3958_vm7, %v4349_v62 }
 0xab0   : > { %v4319_v7 = vpop.f32.mrf.mxu3 }
 0xab8   : > { %v4425_v33 = vpop.f32.mrf.mxu3 }
 0xabd   : > { %6334 = vmatmul.msk.bf16.vlgmr.msrb.gmra.mxu1 %vm3958_vm7, %v8557_v37 }
 0xac0   : > { %v4427_v35 = vpop.f32.mrf.mxu3 }
 0xb0a   : > { %v4155_v40 = vpop.f32.mrf.mxu1 }
 0xb0b   : > { %v4160_v20 = vadd.f32 %v4155_v40, %v4106_v47 }
 0xb0d   : > { %v4214_v55 = vadd.f32 %v4209_v39, %v4160_v20  ;;  %v6321_v39 = vor.u32 %v6761_v3, %v6320_v42  ;;  %v4591_v42 = vpop.f32.mrf.mxu3  ;;  %v6815_v3 = vld [vmem:[%s8847_s18 + $0x1a0] sm:$0xff] }
 0xb0f   : > { %4615 = vmatpush.bf16.msra.mxu1 %v6321_v39 }
 0xb12   : > { %v4157_v1 = vpop.f32.mrf.mxu1  ;;  %6338 = vmatmul.msk.bf16.vlgmr.msra.gmra.mxu1 %vm3958_vm7, %v8557_v37 }
 0xb13   : > { %v4161_v31 = vadd.f32 %v4157_v1, %v4107_v10  ;;  %v6777_v10 = vld [vmem:[%s8847_s18 + $0x70] sm:$0xff]  ;;  %5181 = vmatpush.bf16.msrb.mxu1 %v6770_v4 }
 0xb14   : > { %5195 = vmatpush.bf16.msrb.mxu2 %v6777_v10  ;;  %v6813_v4 = vld [vmem:[%s8847_s18 + $0x190] sm:$0xff]  ;;  %v6824_v10 = vld [vmem:[%s8847_s18 + $0x1e8] sm:$0xff] }
 0xb15   : > { %v4215_v28 = vadd.f32 %v4211_v24, %v4161_v31  ;;  %v4456_v24 = vmul.f32 %v6899_v26, %v4455_v2  ;;  %v6776_v31 = vld [vmem:[%s8847_s18 + $0x68] sm:$0xff]  ;;  %v4593_v51 = vpop.f32.mrf.mxu3 }
 0xb16   : > { %v6788_v2 = vld [vmem:[%s8847_s18 + $0xc8] sm:$0xff] }
 0xb17   : > { %5182 = vmatpush.bf16.msrb.mxu1 %v6769_v57  ;;  %v6797_v57 = vld [vmem:[%s8847_s18 + $0x110] sm:$0xff] }
 0xb18   : > { %5196 = vmatpush.bf16.msrb.mxu2 %v6776_v31  ;;  %v6804_v31 = vld [vmem:[%s8847_s18 + $0x148] sm:$0xff] }
 0xb1a   : > { %v4263_v18 = vpop.f32.mrf.mxu1 }
 0xb1b   : > { %v4268_v12 = vadd.f32 %v4263_v18, %v4214_v55  ;;  %v4457_v18 = vadd.f32 %v6899_v26, %v4456_v24 }
 0xb1d   : > { %v4322_v45 = vadd.f32 %v4317_v58, %v4268_v12  ;;  %v4459_v20 = vsel %vm4458_vm10, %v6899_v26, %v4457_v18  ;;  %v6785_v12 = vld [vmem:[%s8847_s18 + $0xb0] sm:$0xff]  ;;  %v6799_v18 = vld [vmem:[%s8847_s18 + $0x120] sm:$0xff] }
 0xb1e   : > { %5208 = vmatpush.bf16.msrb.mxu3 %v6785_v12  ;;  %v6809_v26 = vld [vmem:[%s8847_s18 + $0x170] sm:$0xff] }
 0xb22   : > { %v4265_v32 = vpop.f32.mrf.mxu1 }
 0xb23   : > { %v4269_v13 = vadd.f32 %v4265_v32, %v4215_v28  ;;  %v6758_v32 = vld [vmem:[#allocation6 + $0x1c] sm:$0xf] }
 0xb24   : > { %v6333_v36 = vor.u32 %v6758_v32, %v6330_v50  ;;  %v6783_v28 = vld [vmem:[%s8847_s18 + $0xa0] sm:$0xff] }
 0xb25   : > { %v4323_v30 = vadd.f32 %v4319_v7, %v4269_v13  ;;  %v6766_v13 = vld [vmem:[%s8847_s18 + $0x18] sm:$0xff] }
 0xb2a   : > { %v4371_v14 = vpop.f32.mrf.mxu1 }
 0xb2b   : > { %v4376_v46 = vadd.f32 %v4371_v14, %v4322_v45  ;;  %v6784_v45 = vld [vmem:[%s8847_s18 + $0xa8] sm:$0xff] }
 0xb2c   : > { %v6768_v14 = vld [vmem:[%s8847_s18 + $0x28] sm:$0xff]  ;;  %5209 = vmatpush.bf16.msrb.mxu3 %v6784_v45 }
 0xb2d   : > { %v4430_v44 = vadd.f32 %v4425_v33, %v4376_v46  ;;  %v6775_v33 = vld [vmem:[%s8847_s18 + $0x60] sm:$0xff]  ;;  %5183 = vmatpush.bf16.msrb.mxu1 %v6768_v14  ;;  %v6812_v45 = vld [vmem:[%s8847_s18 + $0x188] sm:$0xff] }
 0xb2e   : > { %v6767_v46 = vld [vmem:[%s8847_s18 + $0x20] sm:$0xff]  ;;  %5197 = vmatpush.bf16.msrb.mxu2 %v6775_v33 }
 0xb2f   : > { %v4436_v54 = vadd.f32 %v6897_v60, %v4430_v44  ;;  %v6793_v44 = vld [vmem:[%s8847_s18 + $0xf0] sm:$0xff] }
 0xb30   : > { %5210 = vmatpush.bf16.msrb.mxu3 %v6783_v28  ;;  %v6796_v28 = vld [vmem:[%s8847_s18 + $0x108] sm:$0xff] }
 0xb31   : > { %v4440_v0 = vmul.f32 0.2, %v4436_v54  ;;  %vm4438_vm8 = vcmp.gt.f32.partialorder %v4436_v54, 0.0  ;;  %5184 = vmatpush.bf16.msrb.mxu1 %v6767_v46  ;;  %v6803_v46 = vld [vmem:[%s8847_s18 + $0x140] sm:$0xff] }
 0xb32   : > { %v4373_v11 = vpop.f32.mrf.mxu1  ;;  %5198 = vmatpush.bf16.msrb.mxu2 %v6774_v41 }
 0xb33   : > { %v4377_v29 = vadd.f32 %v4373_v11, %v4323_v30  ;;  %v4442_v6 = vsel %vm4438_vm8, %v4436_v54, %v4440_v0  ;;  %v6810_v30 = vld [vmem:[%s8847_s18 + $0x178] sm:$0xff]  ;;  %v6789_v11 = vld [vmem:[%s8847_s18 + $0xd0] sm:$0xff]  ;;  %v6808_v0 = vld [vmem:[%s8847_s18 + $0x168] sm:$0xff] }
 0xb34   : > { %v4444_v62 = vsel %vm3958_vm7, %v4442_v6, 0.0  ;;  %5211 = vmatpush.bf16.msrb.mxu3 %v6782_v53  ;;  %v6818_v54 = vld [vmem:[%s8847_s18 + $0x1b8] sm:$0xff]  ;;  %v4578_v6 = vpop.f32.mrf.mxu2  ;;  %v6823_v53 = vld [vmem:[%s8847_s18 + $0x1e0] sm:$0xff] }
 0xb35   : > { %v4431_v17 = vadd.f32 %v4427_v35, %v4377_v29  ;;  %5185 = vmatpush.bf16.msrb.mxu1 %v6766_v13  ;;  %v6802_v29 = vld [vmem:[%s8847_s18 + $0x138] sm:$0xff]  ;;  %v6801_v35 = vld [vmem:[%s8847_s18 + $0x130] sm:$0xff]  ;;  %v4643_v13 = vpop.f32.mrf.mxu3 }
 0xb37   : > { %v4437_v52 = vadd.f32 %v6897_v60, %v4431_v17  ;;  %v6773_v60 = vld [vmem:[%s8847_s18 + $0x50] sm:$0xff]  ;;  %v8702_v17 = vld [vmem:[%s8846_s17] sm:$0xff] }
 0xb38   : > { %5199 = vmatpush.bf16.msrb.mxu2 %v6773_v60  ;;  %5212 = vmatpush.bf16.msrb.mxu3 %v6781_v56  ;;  %v4538_v59 = vperm.slane %v8702_v17, 1  ;;  %v4537_v24 = vperm.slane %v8702_v17, 0  ;;  %v4542_v14 = vperm.slane %v8702_v17, 5  ;;  %v4543_v41 = vperm.slane %v8702_v17, 6 }
 0xb39   : > { %vm4439_vm9 = vcmp.gt.f32.partialorder %v4437_v52, 0.0  ;;  %v4441_v16 = vmul.f32 0.2, %v4437_v52  ;;  %5186 = vmatpush.bf16.msrb.mxu1 %v6765_v27  ;;  %v4541_v27 = vperm.slane %v8702_v17, 4 }
 0xb3a   : > { %v4644_v56 = vadd.f32 %v4643_v13, %v4543_v41 }
 0xb3b   : > { %v4443_v19 = vsel %vm4439_vm9, %v4437_v52, %v4441_v16  ;;  %v6816_v52 = vld [vmem:[%s8847_s18 + $0x1a8] sm:$0xff] }
 0xb3c   : > { %v4445_v38 = vsel %vm3958_vm7, %v4443_v19, 0.0  ;;  %5200 = vmatpush.bf16.msrb.mxu2 %v6772_v25  ;;  %5213 = vmatpush.bf16.msrb.mxu3 %v6780_v49  ;;  %v6800_v16 = vld [vmem:[%s8847_s18 + $0x128] sm:$0xff]  ;;  %v6807_v19 = vld [vmem:[%s8847_s18 + $0x160] sm:$0xff]  ;;  %v4580_v50 = vpop.f32.mrf.mxu2  ;;  %v4666_v49 = vpack.c.bf16 %v4644_v56, %v4644_v56 }
 0xb3d   : > { %v4446_v43 = vadd.f32 %v4445_v38, %v4444_v62  ;;  %5187 = vmatpush.bf16.msrb.mxu1 %v6764_v63  ;;  %v4579_v62 = vadd.f32 %v4578_v6, %v4538_v59  ;;  %v4539_v38 = vperm.slane %v8702_v17, 2  ;;  %v6795_v25 = vld [vmem:[%s8847_s18 + $0x100] sm:$0xff]  ;;  %v4544_v6 = vperm.slane %v8702_v17, 7 }
 0xb3f   : > { %v4447_v40 = vrot.slane %v4446_v43, 4  ;;  %v4661_v39 = vpack.c.bf16 %v4579_v62, %v4579_v62 }
 0xb40   : > { %5201 = vmatpush.bf16.msrb.mxu2 %v6771_v22  ;;  %5214 = vmatpush.bf16.msrb.mxu3 %v6779_v9 }
 0xb41   : > { %v4448_v1 = vadd.f32 %v4447_v40, %v4446_v43  ;;  %5188 = vmatpush.bf16.msrb.mxu1 %v6763_v34  ;;  %v6787_v43 = vld [vmem:[%s8847_s18 + $0xc0] sm:$0xff]  ;;  %v4592_v40 = vadd.f32 %v4591_v42, %v4539_v38  ;;  %v6820_v34 = vld [vmem:[%s8847_s18 + $0x1c8] sm:$0xff] }
 0xb43   : > { %v4449_v58 = vrot.slane %v4448_v1, 2  ;;  %5202 = vmatmul.bf16.vlgmr.msrb.gmra.mxu2 %v4661_v39 }
 0xb44   : > { %5246 = vmatpush.bf16.msra.mxu2 %v6810_v30  ;;  %5259 = vmatpush.bf16.msra.mxu3 %v6818_v54  ;;  %v4630_v33 = vpop.f32.mrf.mxu2  ;;  %v6821_v30 = vld [vmem:[%s8847_s18 + $0x1d0] sm:$0xff]  ;;  %v4645_v54 = vpop.f32.mrf.mxu3 }
 0xb45   : > { %v4450_v8 = vadd.f32 %v4449_v58, %v4448_v1  ;;  %5233 = vmatpush.bf16.msra.mxu1 %v6802_v29  ;;  %v6826_v1 = vld [vmem:[%s8847_s18 + $0x1f8] sm:$0xff]  ;;  %v4565_v58 = vpop.f32.mrf.mxu1  ;;  %v6819_v29 = vld [vmem:[%s8847_s18 + $0x1c0] sm:$0xff] }
 0xb47   : > { %v4451_v47 = vrot.slane %v4450_v8, 1 }
 0xb48   : > { %5247 = vmatpush.bf16.msra.mxu2 %v6809_v26 }
 0xb49   : > { %v4452_v7 = vadd.f32 %v4451_v47, %v4450_v8  ;;  %5234 = vmatpush.bf16.msra.mxu1 %v6801_v35  ;;  %v6806_v8 = vld [vmem:[%s8847_s18 + $0x158] sm:$0xff]  ;;  %v4662_v47 = vpack.c.bf16 %v4592_v40, %v4592_v40 }
 0xb4b   : > { %v8579_v15 = vmul.f32 %v4459_v20, %v4452_v7  ;;  %v4566_v20 = vadd.f32 %v4565_v58, %v4537_v24  ;;  %v6814_v7 = vld [vmem:[%s8847_s18 + $0x198] sm:$0xff]  ;;  %5215 = vmatmul.bf16.vlgmr.msrb.gmra.mxu3 %v4662_v47 }
 0xb4c   : > { %5248 = vmatpush.bf16.msra.mxu2 %v6808_v0  ;;  %v4632_v9 = vpop.f32.mrf.mxu2 }
 0xb4d   : > { %v4461_v55 = vpack.c.bf16 %v8579_v15, %v8579_v15  ;;  %5235 = vmatpush.bf16.msra.mxu1 %v6800_v16  ;;  %v4660_v32 = vpack.c.bf16 %v4566_v20, %v4566_v20  ;;  %v4567_v12 = vpop.f32.mrf.mxu1 }
 0xb4f   : > { %6301 = vmatmul.msk.bf16.vlgmr.msra.gmra.mxu0 %vm3958_vm7, %v4461_v55  ;;  %v6805_v55 = vld [vmem:[%s8847_s18 + $0x150] sm:$0xff]  ;;  %5189 = vmatmul.bf16.vlgmr.msrb.gmra.mxu1 %v4660_v32 }
 0xb50   : > { %4654 = vmatpush.bf16.msra.mxu0 %v6333_v36  ;;  %5249 = vmatpush.bf16.msra.mxu2 %v6807_v19  ;;  %v6798_v36 = vld [vmem:[%s8847_s18 + $0x118] sm:$0xff] }
 0xb51   : > { %5236 = vmatpush.bf16.msra.mxu1 %v6799_v18 }
 0xb54   : > { %5250 = vmatpush.bf16.msra.mxu2 %v6806_v8 }
 0xb55   : > { %5237 = vmatpush.bf16.msra.mxu1 %v6798_v36 }
 0xb58   : > { %5251 = vmatpush.bf16.msra.mxu2 %v6805_v55 }
 0xb59   : > { %5238 = vmatpush.bf16.msra.mxu1 %v6797_v57 }
 0xb5c   : > { %5252 = vmatpush.bf16.msra.mxu2 %v6804_v31 }
 0xb5d   : > { %5239 = vmatpush.bf16.msra.mxu1 %v6796_v28 }
 0xb5f   : > { %6337 = vmatmul.msk.bf16.vlgmr.msrb.gmra.mxu0 %vm3958_vm7, %v8557_v37 }
 0xb60   : > { %5220 = vmatpush.bf16.msrb.mxu0 %v6794_v5  ;;  %v4631_v5 = vadd.f32 %v4630_v33, %v4542_v14  ;;  %5253 = vmatpush.bf16.msra.mxu2 %v6803_v46  ;;  %v4464_v14 = vld [vmem:[#allocation2] sm:$0x1] }
 0xb61   : > { %5240 = vmatpush.bf16.msra.mxu1 %v6795_v25 }
 0xb62   : > { %v4665_v60 = vpack.c.bf16 %v4631_v5, %v4631_v5 }
 0xb64   : > { %5221 = vmatpush.bf16.msrb.mxu0 %v6793_v44  ;;  %v6811_v44 = vld [vmem:[%s8847_s18 + $0x180] sm:$0xff]  ;;  %5254 = vmatmul.bf16.vlgmr.msra.gmra.mxu2 %v4665_v60 }
 0xb68   : > { %5222 = vmatpush.bf16.msrb.mxu0 %v6792_v21 }
 0xb6c   : > { %5223 = vmatpush.bf16.msrb.mxu0 %v6791_v61  ;;  %v6822_v61 = vld [vmem:[%s8847_s18 + $0x1d8] sm:$0xff] }
 0xb6f   : > { %6341 = vmatmul.msk.bf16.vlgmr.msra.gmra.mxu0 %vm3958_vm7, %v8557_v37  ;;  %v6817_v37 = vld [vmem:[%s8847_s18 + $0x1b0] sm:$0xff] }
 0xb70   : > { %5224 = vmatpush.bf16.msrb.mxu0 %v6790_v23  ;;  %5260 = vmatpush.bf16.msra.mxu3 %v6817_v37  ;;  %v4540_v37 = vperm.slane %v8702_v17, 3  ;;  %v4796_v17 = vld [vmem:[%s8848_s19] sm:$0x1] }
 0xb74   : > { %5225 = vmatpush.bf16.msrb.mxu0 %v6789_v11  ;;  %5261 = vmatpush.bf16.msra.mxu3 %v6816_v52 }
 0xb78   : > { %5226 = vmatpush.bf16.msrb.mxu0 %v6788_v2  ;;  %5262 = vmatpush.bf16.msra.mxu3 %v6815_v3 }
 0xb7c   : > { %5227 = vmatpush.bf16.msrb.mxu0 %v6787_v43  ;;  %5263 = vmatpush.bf16.msra.mxu3 %v6814_v7 }
 0xb80   : > { %5272 = vmatpush.bf16.msra.mxu0 %v6826_v1  ;;  %5264 = vmatpush.bf16.msra.mxu3 %v6813_v4 }
 0xb84   : > { %5273 = vmatpush.bf16.msra.mxu0 %v6825_v48  ;;  %5265 = vmatpush.bf16.msra.mxu3 %v6812_v45 }
 0xb88   : > { %5274 = vmatpush.bf16.msra.mxu0 %v6824_v10  ;;  %5266 = vmatpush.bf16.msra.mxu3 %v6811_v44 }
 0xb8b   : > { %5267 = vmatmul.bf16.vlgmr.msra.gmra.mxu3 %v4666_v49 }
 0xb8c   : > { %5275 = vmatpush.bf16.msra.mxu0 %v6823_v53 }
 0xb8f   : > { %v4617_v21 = vpop.f32.mrf.mxu1 }
 0xb90   : > { %v4618_v63 = vadd.f32 %v4617_v21, %v4541_v27  ;;  %5276 = vmatpush.bf16.msra.mxu0 %v6822_v61 }
 0xb92   : > { %v4664_v22 = vpack.c.bf16 %v4618_v63, %v4618_v63 }
 0xb94   : > { %5241 = vmatmul.bf16.vlgmr.msra.gmra.mxu1 %v4664_v22  ;;  %5277 = vmatpush.bf16.msra.mxu0 %v6821_v30 }
 0xb97   : > { %v4619_v23 = vpop.f32.mrf.mxu1 }
 0xb98   : > { %5278 = vmatpush.bf16.msra.mxu0 %v6820_v34 }
 0xb9c   : > { %5279 = vmatpush.bf16.msra.mxu0 %v6819_v29 }
 0xbc6   : > { %v5203_v42 = vpop.f32.mrf.mxu2 }
 0xbcc   : > { %v4483_v11 = vpop.f32.mrf.mxu0  ;;  %v5190_v38 = vpop.f32.mrf.mxu1 }
 0xbcd   : > { %v5191_v20 = vadd.f32 %v5190_v38, %v4796_v17  ;;  %v4484_v33 = vadd.f32 %v4483_v11, %v4464_v14 }
 0xbce   : > { %v5216_v3 = vpop.f32.mrf.mxu3  ;;  %v5205_v39 = vpop.f32.mrf.mxu2 }
 0xbcf   : > { %v5204_v7 = vadd.f32 %v5203_v42, %v5191_v20 }
 0xbd1   : > { %v5217_v32 = vadd.f32 %v5216_v3, %v5204_v7 }
 0xbd4   : > { %v4485_v26 = vpop.f32.mrf.mxu0  ;;  %v5192_v43 = vpop.f32.mrf.mxu1 }
 0xbd6   : > { %v5218_v40 = vpop.f32.mrf.mxu3 }
 0xbdc   : > { %v4604_v35 = vpop.f32.mrf.mxu0 }
 0xbdd   : > { %v4605_v0 = vadd.f32 %v4604_v35, %v4540_v37 }
 0xbdf   : > { %v4663_v52 = vpack.c.bf16 %v4605_v0, %v4605_v0 }
 0xbe1   : > { %5228 = vmatmul.bf16.vlgmr.msrb.gmra.mxu0 %v4663_v52 }
 0xbe4   : > { %v4606_v59 = vpop.f32.mrf.mxu0 }
 0xbe7   : > { %v5255_v1 = vpop.f32.mrf.mxu2 }
 0xbec   : > { %v4656_v16 = vpop.f32.mrf.mxu0 }
 0xbed   : > { %v4657_v19 = vadd.f32 %v4656_v16, %v4544_v6 }
 0xbef   : > { %v4667_v2 = vpack.c.bf16 %v4657_v19, %v4657_v19  ;;  %v5257_v8 = vpop.f32.mrf.mxu2 }
 0xbf1   : > { %5280 = vmatmul.bf16.vlgmr.msra.gmra.mxu0 %v4667_v2 }
 0xbf4   : > { %v4658_v62 = vpop.f32.mrf.mxu0 }
 0xc0e   : > { %v5268_v58 = vpop.f32.mrf.mxu3 }
 0xc11   : > { %v5242_v24 = vpop.f32.mrf.mxu1 }
 0xc16   : > { %v5270_v47 = vpop.f32.mrf.mxu3 }
 0xc19   : > { %v5244_v18 = vpop.f32.mrf.mxu1 }
 0xc5e   : > { %v5229_v50 = vpop.f32.mrf.mxu0 }
 0xc5f   : > { %v5230_v36 = vadd.f32 %v5229_v50, %v5217_v32 }
 0xc61   : > { %v5243_v55 = vadd.f32 %v5242_v24, %v5230_v36 }
 0xc63   : > { %v5256_v51 = vadd.f32 %v5255_v1, %v5243_v55 }
 0xc65   : > { %v5269_v4 = vadd.f32 %v5268_v58, %v5256_v51 }
 0xc66   : > { %v5231_v48 = vpop.f32.mrf.mxu0 }
 0xc6e   : > { %v5281_v10 = vpop.f32.mrf.mxu0 }
 0xc6f   : > { %v5282_v12 = vadd.f32 %v5281_v10, %v5269_v4 }
 0xc71   : > { %v5285_v57 = vmul.f32 %v5282_v12, %v8579_v15 }
 0xc73   : > { %v5287_v31 = vsel %vm5286_vm11, %v5285_v57, 0.0 }
 0xc74   : > { %5288 = vadd.xlane.f32.xlu0 %v5287_v31 }
 0xc76   : > { %v5283_v45 = vpop.f32.mrf.mxu0 }
 0xce7   : > { %v5289_v28 = vpop.xlane.xlu0 %5288 }
 0xce8   : > { %v5290_v46 = vadd.f32 %v5289_v28, %v4484_v33 }
 0xcea   : > { %6827 = vpush %v5290_v46 }
 0xd1b   : > { %s6828_s21 = spop %6827 }
 0xd1c   : > { %v5293_v15 = vstv %s6828_s21 }
 0xd1d   : > { %5295 = vst [vmem:[%s669_s27] sm:$0xff] %v5293_v15 }
 0xd1e   : > { %7003 = shalt.err (!%p7000_p8)
}
 0xd1f   : > { %6837 = dma.vmem_to_hbm [thread:$0]  (%p7201_p5), %s5310_s23, 128, %s5312_s28, %s5297_s1  }
 0xd20 PF: > { %s8882_s4 = sld [smem:[#allocation14_spill]] }
 0xd21   : > { %s8883_s0 = sld [smem:[#allocation12_spill]] }
 0xd26   : > { %p6854_p9 = scmp.ge.s32.totalorder %s8882_s4, 2 }
 0xd27   : > { %s5323_s27 = sand.u32 1, %s8883_s0  }
 0xd28   : > { %p6847_p10 = pnand %p6854_p9, %p7205_p6  ;;  %s5324_s3 = scalar_lea.sflag [#allocation5], %s5323_s27 }
 0xd2a   : > { %p6848_p11 = pneg %p6847_p10 }
 0xd2c   : > { %7029 = dma.done.wait (%p6848_p11), %s5324_s3, 128  }
 0xd2d   : > { %7031 = vsyncadd (%p6848_p11), %s5324_s3, 4294967168  ;;  %s8885_s25 = sld [smem:[#allocation15_spill]]  ;;  %s8888_s23 = smov %s7038_s24 }
 0xd2e   : > { %s8886_s21 = sld [smem:[#allocation13_spill]] }
 0xd2f   : > { %s8887_s2 = sld [smem:[#allocation16_spill]] }
 0xd33   : > { %p34_p12 = scmp.ge.s32.totalorder %s8885_s25, 4  }
 0xd34   : > { %s8889_s24 = smov %s8886_s21 }
 0xd35   :  { %36 = sbr.rel (!%p34_p12) target bundleno = 13 (0xd), region = 211 }
 0xd3a   :  { %5330 = vsyncpa [#allocation4], 1 }
 0xd3b   :  { %5332 = vsyncpa [#allocation4 + $0x1], 1 }
 0xd3c   :  { %5333 = vsyncpa [#allocation7], 1 }
 0xd3d   :  { %5334 = vsyncpa [#allocation5], 1 }
 0xd3e   :  { %5336 = vsyncpa [#allocation5 + $0x1], 1 }

</bundles_post_ra>
